<compile_context>
chip_gen: v7x
topology: tpu7x:2x2x1
jax: 0.10.0
libtpu: 0.0.40
codegen_flags: <defaults>
</compile_context>

<pallas_src>
import functools

import jax
import jax.numpy as jnp
from jax.experimental import pallas as pl
from jax.experimental.pallas import tpu as pltpu

# MXU operand dtype (accumulation stays f32 via preferred_element_type).
MXU_DTYPE = jnp.bfloat16
# Inter-kernel activation dtype (halves HBM traffic between pallas_calls).
ACT_DTYPE = jnp.bfloat16

EPS = 1e-5
_MiB = 1024 * 1024


def _pick_tile(n, prefs):
    for t in prefs:
        if n >= t and n % t == 0:
            return t
    return n


def _round_up(n, m):
    return -(-n // m) * m


def _pad_last(a, np_):
    n = a.shape[-1]
    if n == np_:
        return a
    return jnp.pad(a, [(0, 0)] * (a.ndim - 1) + [(0, np_ - n)])


def _compiler_params(sems, working_bytes):
    """dimension_semantics + explicit VMEM limit when blocks exceed the default."""
    kwargs = dict(dimension_semantics=sems)
    needed = int(2 * working_bytes) + 2 * _MiB          # double-buffered + headroom
    if needed > 16 * _MiB:                              # default scoped limit 16-32 MiB
        kwargs["vmem_limit_bytes"] = int(min(needed, 100 * _MiB))
    return pltpu.CompilerParams(**kwargs)


# ---------------------------------------------------------------------------
# q/kv bank: one matmul over the 6C-row stacked weight, six lane-dense outputs
# ---------------------------------------------------------------------------
def _bank_kernel(w_ref, x_ref, b_ref, *o_refs, C):
    y = jnp.dot(w_ref[...].astype(MXU_DTYPE), x_ref[0].astype(MXU_DTYPE),
                preferred_element_type=jnp.float32)
    y = y + b_ref[...]
    for i, o_ref in enumerate(o_refs):
        o_ref[0] = y[i * C:(i + 1) * C, :].astype(o_ref.dtype)


def qkv_bank(w, x, b, C, n_out):
    """w:(n_out*C, K)  x:(B,K,N) -> n_out tensors (B,C,N) in ACT_DTYPE."""
    B, K, N = x.shape
    M = w.shape[0]
    Np = _round_up(N, 128)
    xs = _pad_last(x, Np)
    tn = _pick_tile(Np, (512, 256, 128))
    grid = (B, Np // tn)
    out_spec = pl.BlockSpec((1, C, tn), lambda bb, j: (bb, 0, j))
    working = (M * K + K * tn + M + n_out * C * tn) * 4
    outs = pl.pallas_call(
        functools.partial(_bank_kernel, C=C),
        out_shape=tuple(jax.ShapeDtypeStruct((B, C, Np), ACT_DTYPE)
                        for _ in range(n_out)),
        grid=grid,
        in_specs=[
            pl.BlockSpec((M, K), lambda bb, j: (0, 0)),
            pl.BlockSpec((1, K, tn), lambda bb, j: (bb, 0, j)),
            pl.BlockSpec((M, 1), lambda bb, j: (0, 0)),
        ],
        out_specs=tuple(out_spec for _ in range(n_out)),
        compiler_params=_compiler_params(("parallel", "parallel"), working),
    )(w.astype(MXU_DTYPE), xs, b.reshape(M, 1))
    if Np != N:
        outs = tuple(o[:, :, :N] for o in outs)
    return outs


# ---------------------------------------------------------------------------
# Final 1x1 conv with fused residual add
# ---------------------------------------------------------------------------
def _mm_res_kernel(w_ref, x_ref, b_ref, r_ref, o_ref):
    y = jnp.dot(w_ref[...].astype(MXU_DTYPE), x_ref[0].astype(MXU_DTYPE),
                preferred_element_type=jnp.float32)
    o_ref[0] = (y + b_ref[...] + r_ref[0]).astype(o_ref.dtype)


def conv1x1_residual(w, x, b, residual, out_dtype):
    """out[b] = w @ x[b] + bias + residual[b].   w:(M,K)  x:(B,K,N)."""
    B, K, N = x.shape
    M = w.shape[0]
    Np = _round_up(N, 128)
    xs, rs = _pad_last(x, Np), _pad_last(residual, Np)
    tm = _pick_tile(M, (256, 128))
    tn = _pick_tile(Np, (512, 256, 128))
    grid = (B, M // tm, Np // tn)
    working = (tm * K + K * tn + tm + 2 * tm * tn) * 4
    out = pl.pallas_call(
        _mm_res_kernel,
        out_shape=jax.ShapeDtypeStruct((B, M, Np), out_dtype),
        grid=grid,
        in_specs=[
            pl.BlockSpec((tm, K), lambda bb, i, j: (i, 0)),
            pl.BlockSpec((1, K, tn), lambda bb, i, j: (bb, 0, j)),
            pl.BlockSpec((tm, 1), lambda bb, i, j: (i, 0)),
            pl.BlockSpec((1, tm, tn), lambda bb, i, j: (bb, i, j)),
        ],
        out_specs=pl.BlockSpec((1, tm, tn), lambda bb, i, j: (bb, i, j)),
        compiler_params=_compiler_params(("parallel", "parallel", "parallel"),
                                         working),
    )(w.astype(MXU_DTYPE), xs, b.reshape(M, 1), rs)
    return out[:, :, :N] if Np != N else out


# ---------------------------------------------------------------------------
# Dual projection + gated residual + norm2 affine, one pass, two outputs
#   y = x_res + W1 @ x1 + W2 @ x2 + bias   (W1/W2 pre-scaled by sigmoid gates)
#   n = s * y + t                          (norm2 affine, inference)
# ---------------------------------------------------------------------------
def _gated_proj_kernel(w1_ref, x1_ref, w2_ref, x2_ref, b_ref, r_ref, s_ref, t_ref,
                       o_ref, n_ref):
    y = jnp.dot(w1_ref[...].astype(MXU_DTYPE), x1_ref[0].astype(MXU_DTYPE),
                preferred_element_type=jnp.float32)
    y = y + jnp.dot(w2_ref[...].astype(MXU_DTYPE), x2_ref[0].astype(MXU_DTYPE),
                    preferred_element_type=jnp.float32)
    y = y + b_ref[...] + r_ref[0]
    o_ref[0] = y.astype(o_ref.dtype)
    n_ref[0] = (y * s_ref[...] + t_ref[...]).astype(n_ref.dtype)


def gated_dual_proj(w1, x1, w2, x2, b, residual, n_scale, n_shift):
    B, C, N = x1.shape
    Np = _round_up(N, 128)
    x1s, x2s, rs = _pad_last(x1, Np), _pad_last(x2, Np), _pad_last(residual, Np)
    tn = _pick_tile(Np, (512, 256, 128))
    grid = (B, Np // tn)
    vec = pl.BlockSpec((C, 1), lambda bb, j: (0, 0))
    mat = pl.BlockSpec((1, C, tn), lambda bb, j: (bb, 0, j))
    wsp = pl.BlockSpec((C, C), lambda bb, j: (0, 0))
    working = (2 * C * C + 5 * C * tn + 3 * C) * 4
    res_out = jax.ShapeDtypeStruct((B, C, Np), residual.dtype)   # residual stream f32
    nrm_out = jax.ShapeDtypeStruct((B, C, Np), ACT_DTYPE)
    xr, n2 = pl.pallas_call(
        _gated_proj_kernel,
        out_shape=(res_out, nrm_out),
        grid=grid,
        in_specs=[wsp, mat, wsp, mat, vec, mat, vec, vec],
        out_specs=(mat, mat),
        compiler_params=_compiler_params(("parallel", "parallel"), working),
    )(w1.astype(MXU_DTYPE), x1s, w2.astype(MXU_DTYPE), x2s, b.reshape(C, 1), rs,
      n_scale.reshape(C, 1), n_shift.reshape(C, 1))
    if Np != N:
        xr, n2 = xr[:, :, :N], n2[:, :, :N]
    return xr, n2


# ---------------------------------------------------------------------------
# Fused attention: softmax(q k^T) v   (scale pre-folded into q weights)
# ---------------------------------------------------------------------------
def _attn_kernel(q_ref, k_ref, v_ref, o_ref):
    q = q_ref[...].astype(MXU_DTYPE)
    k = k_ref[...].astype(MXU_DTYPE)
    v = v_ref[...].astype(MXU_DTYPE)
    s = jnp.einsum('gtd,gsd->gts', q, k, preferred_element_type=jnp.float32)
    s = s - jnp.max(s, axis=-1, keepdims=True)
    p = jnp.exp(s)
    inv_l = pl.reciprocal(jnp.sum(p, axis=-1, keepdims=True), approx=True)
    o = jnp.einsum('gts,gsd->gtd', p.astype(MXU_DTYPE), v,
                   preferred_element_type=jnp.float32)
    o_ref[...] = (o * inv_l).astype(o_ref.dtype)   # scale the (g,T,D) output, not P


def fused_attention(q, k, v):
    """q,k,v:(G,T,D) -> (G,T,D). Softmax scale must already be folded into q."""
    G, T, D = q.shape
    gb = 1
    for cand in (8, 4, 2, 1):
        if G % cand:
            continue
        if G >= 2 and G // cand < 2:                 # keep >=2 steps for dual-TC chips
            continue
        vmem = cand * (8 * T * D * q.dtype.itemsize + 4 * T * T)
        if vmem <= 24 * _MiB:
            gb = cand
            break
    grid = (G // gb,)
    spec = pl.BlockSpec((gb, T, D), lambda g: (g, 0, 0))
    working = gb * (4 * T * D * q.dtype.itemsize + 4 * T * T)
    # TODO(synk): for T beyond ~512 this should become a KV-tiled (flash) variant.
    return pl.pallas_call(
        _attn_kernel,
        out_shape=jax.ShapeDtypeStruct((G, T, D), ACT_DTYPE),
        grid=grid,
        in_specs=[spec] * 3,
        out_specs=spec,
        compiler_params=_compiler_params(("parallel",), working),
    )(q, k, v)


# ---------------------------------------------------------------------------
# 3x3 / stride-1 / pad-1 conv + folded BN affine + ReLU, WITHOUT im2col:
# nine accumulated matmuls over lane-shifted views of the flat feature map,
# grouped into 3 partial sums per ddx so boundary masks hit the partials only.
# ---------------------------------------------------------------------------
def _conv3x3_kernel(x_ref, w_ref, b_ref, m_ref, o_ref, *, W, HW, pad):
    accs = [None, None, None]                        # grouped by ddx in {-1, 0, +1}
    for t in range(9):
        ddy, ddx = t // 3 - 1, t % 3 - 1
        off = ddy * W + ddx
        xs = x_ref[0, :, pad + off: pad + off + HW]  # (Cin, HW) shifted view
        prt = jnp.dot(w_ref[t].astype(MXU_DTYPE), xs.astype(MXU_DTYPE),
                      preferred_element_type=jnp.float32)
        j = ddx + 1
        accs[j] = prt if accs[j] is None else accs[j] + prt
    acc = accs[1] + accs[0] * m_ref[0] + accs[2] * m_ref[1]   # 2 masked partials
    o_ref[0] = jnp.maximum(acc + b_ref[...], 0.0).astype(o_ref.dtype)


def conv3x3_bn_relu(x, w4d, bias, masks, *, W):
    """x:(B,Cin,H*W)  w4d:(Cout,Cin,3,3) pre-scaled by BN scale, bias = BN shift."""
    B, Cin, HW = x.shape
    Cout = w4d.shape[0]
    pad = W + 1
    xp = jnp.pad(x, ((0, 0), (0, 0), (pad, pad)))    # flat zero halo
    w9 = jnp.transpose(w4d, (2, 3, 0, 1)).reshape(9, Cout, Cin).astype(MXU_DTYPE)
    tm = _pick_tile(Cout, (256, 128))
    grid = (B, Cout // tm)
    working = (Cin * (HW + 2 * pad) + 9 * tm * Cin + tm + 2 * HW + tm * HW) * 4
    # TODO(synk): for very large H*W the full-row x block should be HW-tiled with a halo
    #             DMA (and W padded to a multiple of 128 so ddy shifts stay lane-aligned).
    return pl.pallas_call(
        functools.partial(_conv3x3_kernel, W=W, HW=HW, pad=pad),
        out_shape=jax.ShapeDtypeStruct((B, Cout, HW), ACT_DTYPE),
        grid=grid,
        in_specs=[
            pl.BlockSpec((1, Cin, HW + 2 * pad), lambda bb, m: (bb, 0, 0)),
            pl.BlockSpec((9, tm, Cin), lambda bb, m: (0, m, 0)),
            pl.BlockSpec((tm, 1), lambda bb, m: (m, 0)),
            pl.BlockSpec((2, 1, HW), lambda bb, m: (0, 0, 0)),
        ],
        out_specs=pl.BlockSpec((1, tm, HW), lambda bb, m: (bb, m, 0)),
        compiler_params=_compiler_params(("parallel", "parallel"), working),
    )(xp, w9, bias.reshape(Cout, 1), masks)


# ---------------------------------------------------------------------------
# Parameter-folding helpers (plain JAX; trace-time on small weight tensors)
# ---------------------------------------------------------------------------
def _bn_scale_shift(bnp, eps=EPS):
    s = bnp['gamma'] / jnp.sqrt(bnp['var'] + eps)
    t = bnp['beta'] - bnp['mean'] * s
    return s, t


def _fold_pre_bn(w, b, s, t):
    # conv1x1(BN(x)) == conv1x1'(x) with W' = W * s (per in-channel), b' = b + W @ t
    return w * s[None, :], b + w @ t


# ---------------------------------------------------------------------------
# SelfAttention forward (Pallas)
# ---------------------------------------------------------------------------
def self_attention_pallas(x, P, *, p, nh):
    B, C, H, W = x.shape
    HW = H * W
    xf = x.reshape(B, C, HW)

    hd = C // nh
    nhp, nwp = H // p, W // p
    T, D = nhp * nwp, hd * p * p
    Dp = _round_up(D, 128)

    # ---- norm1 + softmax scales folded into the four q/kv 1x1 convs; one bank ----
    s1, t1 = _bn_scale_shift(P['norm1'])
    sa, ca = P['sa'], P['ca']
    wq_s, bq_s = _fold_pre_bn(sa['wq'], sa['bq'], s1, t1)
    wkv_s, bkv_s = _fold_pre_bn(sa['wkv'], sa['bkv'], s1, t1)
    wq_c, bq_c = _fold_pre_bn(ca['wq'], ca['bq'], s1, t1)
    wkv_c, bkv_c = _fold_pre_bn(ca['wkv'], ca['bkv'], s1, t1)
    scale_s, scale_c = float(D) ** -0.5, float(HW) ** -0.5
    wq_s, bq_s = wq_s * scale_s, bq_s * scale_s
    wq_c, bq_c = wq_c * scale_c, bq_c * scale_c

    w_bank = jnp.concatenate([wq_s, wkv_s, wq_c, wkv_c], axis=0)   # (6C, C)
    b_bank = jnp.concatenate([bq_s, bkv_s, bq_c, bkv_c], axis=0)   # (6C,)
    q_s, k_s, v_s, q_c, k_c, v_c = qkv_bank(w_bank, xf, b_bank, C, 6)

    # ---- spatial-view attention ----
    # TODO(synk): patchwise encode/decode rearranges stay in XLA (reshape/transpose);
    #             emitting q/k/v directly in patch layout needs a custom out index_map.
    def encode(v_):
        v_ = v_.reshape(B, nh, hd, nhp, p, nwp, p)
        v_ = jnp.transpose(v_, (0, 1, 2, 4, 6, 3, 5)).reshape(B * nh, D, T)
        v_ = jnp.swapaxes(v_, 1, 2)                                 # (B*nh, T, D)
        if Dp != D:
            v_ = jnp.pad(v_, ((0, 0), (0, 0), (0, Dp - D)))
        return v_

    sa_o = fused_attention(encode(q_s), encode(k_s), encode(v_s))[:, :, :D]
    sa_o = jnp.swapaxes(sa_o, 1, 2).reshape(B, nh, hd, p, p, nhp, nwp)
    dec_sa = jnp.transpose(sa_o, (0, 1, 2, 5, 3, 6, 4)).reshape(B, C, HW)

    # ---- channel-view attention ----
    qc = q_c.reshape(B * nh, hd, HW)
    kc = k_c.reshape(B * nh, hd, HW)
    vc = v_c.reshape(B * nh, hd, HW)
    ca_att = fused_attention(qc, kc, vc).reshape(B, C, HW)

    # ---- fused output projections + gated residual + norm2 affine (one pass) ----
    ga = jax.nn.sigmoid(P['alpha'])
    gbe = jax.nn.sigmoid(P['beta'])
    s2, t2 = _bn_scale_shift(P['norm2'])
    xf2, n2 = gated_dual_proj(ga * sa['wp'], dec_sa, gbe * ca['wp'], ca_att,
                              ga * sa['bp'] + gbe * ca['bp'], xf, s2, t2)

    # ---- ConvFFN: two 3x3 convs (post-conv BN folded into weights) + 1x1 + residual ----
    ffn = P['ffn']
    sb0, tb0 = _bn_scale_shift(ffn['bn0'])
    sb1, tb1 = _bn_scale_shift(ffn['bn1'])
    w0f = ffn['w0'] * sb0[:, None, None, None]
    w1f = ffn['w1'] * sb1[:, None, None, None]

    col = jnp.arange(HW, dtype=jnp.int32) % W
    masks = jnp.stack([(col >= 1).astype(jnp.float32),          # ddx = -1 validity
                       (col <= W - 2).astype(jnp.float32)       # ddx = +1 validity
                       ]).reshape(2, 1, HW)

    h = conv3x3_bn_relu(n2, w0f, tb0, masks, W=W)
    h = conv3x3_bn_relu(h, w1f, tb1, masks, W=W)
    out = conv1x1_residual(ffn['wf'], h, ffn['bf'], xf2, x.dtype)
    return out.reshape(B, C, H, W)


# ---------------------------------------------------------------------------
# Deterministic parameter construction (synthetic; no checkpoint loading)
# ---------------------------------------------------------------------------
def init_params(key, dim, ffn_expand):
    keys = iter(jax.random.split(key, 40))

    def nrm(shape, scale=0.2):
        return scale * jax.random.normal(next(keys), shape, jnp.float32)

    def bn_params(c):
        return dict(
            gamma=1.0 + 0.1 * jax.random.normal(next(keys), (c,), jnp.float32),
            beta=0.1 * jax.random.normal(next(keys), (c,), jnp.float32),
            mean=0.1 * jax.random.normal(next(keys), (c,), jnp.float32),
            var=jax.random.uniform(next(keys), (c,), jnp.float32, 0.5, 1.5),
        )

    hid = dim * ffn_expand
    return dict(
        norm1=bn_params(dim),
        norm2=bn_params(dim),
        alpha=jnp.zeros((), jnp.float32),
        beta=jnp.zeros((), jnp.float32),
        sa=dict(wq=nrm((dim, dim)), bq=nrm((dim,), 0.1),
                wkv=nrm((2 * dim, dim)), bkv=nrm((2 * dim,), 0.1),
                wp=nrm((dim, dim)), bp=nrm((dim,), 0.1)),
        ca=dict(wq=nrm((dim, dim)), bq=nrm((dim,), 0.1),
                wkv=nrm((2 * dim, dim)), bkv=nrm((2 * dim,), 0.1),
                wp=nrm((dim, dim)), bp=nrm((dim,), 0.1)),
        ffn=dict(w0=nrm((hid, dim, 3, 3), 0.1), bn0=bn_params(hid),
                 w1=nrm((hid, hid, 3, 3), 0.1), bn1=bn_params(hid),
                 wf=nrm((dim, hid), 0.1), bf=nrm((dim,), 0.1)),
    )


# ---------------------------------------------------------------------------
# Pure-JAX f32 reference (for correctness check)
# ---------------------------------------------------------------------------
def reference_forward(x, P, *, p, nh):
    eps = 1e-5
    B, C, H, W = x.shape

    def bn(x4, bp):
        s = bp['gamma'] / jnp.sqrt(bp['var'] + eps)
        t = bp['beta'] - bp['mean'] * s
        return x4 * s[None, :, None, None] + t[None, :, None, None]

    def conv1x1_ref(x4, w, b):
        return jnp.einsum('oc,bchw->bohw', w, x4) + b[None, :, None, None]

    def conv3x3(x4, w):
        return jax.lax.conv_general_dilated(
            x4, w, window_strides=(1, 1), padding=((1, 1), (1, 1)),
            dimension_numbers=('NCHW', 'OIHW', 'NCHW'))

    n1 = bn(x, P['norm1'])

    sa = P['sa']
    q = conv1x1_ref(n1, sa['wq'], sa['bq'])
    kv = conv1x1_ref(n1, sa['wkv'], sa['bkv'])
    k_, v_ = kv[:, :C], kv[:, C:]
    hd = C // nh

    def enc(t):
        t = t.reshape(B, nh, hd, H // p, p, W // p, p)
        return jnp.transpose(t, (0, 1, 2, 4, 6, 3, 5)).reshape(
            B, nh, hd * p * p, (H // p) * (W // p))

    qe, ke, ve = enc(q), enc(k_), enc(v_)
    qk = jnp.einsum('bndx,bndy->bnxy', qe, ke) * (hd * p * p) ** -0.5
    qk = jax.nn.softmax(qk, axis=-1)
    qkv = jnp.einsum('bnxy,bndy->bndx', qk, ve)
    qkv = qkv.reshape(B, nh, hd, p, p, H // p, W // p)
    qkv = jnp.transpose(qkv, (0, 1, 2, 5, 3, 6, 4)).reshape(B, C, H, W)
    sa_o = conv1x1_ref(qkv, sa['wp'], sa['bp'])

    ca = P['ca']
    qc = conv1x1_ref(n1, ca['wq'], ca['bq']).reshape(B, nh, C // nh, H * W)
    kvc = conv1x1_ref(n1, ca['wkv'], ca['bkv'])
    kc = kvc[:, :C].reshape(B, nh, C // nh, H * W)
    vc = kvc[:, C:].reshape(B, nh, C // nh, H * W)
    qc = qc * (H * W) ** -0.5
    qk_c = jax.nn.softmax(qc @ jnp.swapaxes(kc, -1, -2), axis=-1)
    qkv_c = (qk_c @ vc).reshape(B, C, H, W)
    ca_o = conv1x1_ref(qkv_c, ca['wp'], ca['bp'])

    x = x + jax.nn.sigmoid(P['alpha']) * sa_o + jax.nn.sigmoid(P['beta']) * ca_o

    ffn = P['ffn']
    n2 = bn(x, P['norm2'])
    h = jnp.maximum(bn(conv3x3(n2, ffn['w0']), ffn['bn0']), 0.0)
    h = jnp.maximum(bn(conv3x3(h, ffn['w1']), ffn['bn1']), 0.0)
    h = conv1x1_ref(h, ffn['wf'], ffn['bf'])
    return x + h


# ---------------------------------------------------------------------------
if __name__ == "__main__":
    dim, p, nh, ffn_expand = 8, 4, 2, 4
    B, H, W = 2, 16, 16

    key = jax.random.PRNGKey(0)
    kx, kp = jax.random.split(key)
    x = jax.random.normal(kx, (B, dim, H, W), jnp.float32)
    P = init_params(kp, dim, ffn_expand)

    fwd = jax.jit(functools.partial(self_attention_pallas, p=p, nh=nh))
    out = fwd(x, P)
    jax.block_until_ready(out)

    ref = reference_forward(x, P, p=p, nh=nh)
    assert out.shape == x.shape
    abs_err = float(jnp.max(jnp.abs(out - ref)))
    rel_err = abs_err / max(float(jnp.max(jnp.abs(ref))), 1e-6)
    # bf16 MXU operands + bf16 inter-kernel activations => relaxed tolerance vs f32.
    assert rel_err < 3e-2, f"error too large: abs={abs_err} rel={rel_err}"

    print("KERNEL_OK")
</pallas_src>

<mosaic_0001>
module attributes {stable_mosaic.version = 11 : i64} {
  func.func @_bank_kernel(%arg0: i32, %arg1: i32, %arg2: memref<48x8xbf16, #tpu.memory_space<vmem>>, %arg3: memref<1x8x256xf32, #tpu.memory_space<vmem>>, %arg4: memref<48x1xf32, #tpu.memory_space<vmem>>, %arg5: memref<1x8x256xbf16, #tpu.memory_space<vmem>>, %arg6: memref<1x8x256xbf16, #tpu.memory_space<vmem>>, %arg7: memref<1x8x256xbf16, #tpu.memory_space<vmem>>, %arg8: memref<1x8x256xbf16, #tpu.memory_space<vmem>>, %arg9: memref<1x8x256xbf16, #tpu.memory_space<vmem>>, %arg10: memref<1x8x256xbf16, #tpu.memory_space<vmem>>) attributes {dimension_semantics = [#tpu.dimension_semantics<parallel>, #tpu.dimension_semantics<parallel>], iteration_bounds = array<i64: 2, 1>, scalar_prefetch = 0 : i64, scratch_operands = 0 : i64, tpu.core_type = #tpu.core_type<tc>, window_params = [{pipeline_mode = #tpu.pipeline_mode<synchronous>, transform_indices = @transform_0, window_bounds = array<i64: 48, 8>}, {transform_indices = @transform_1, window_bounds = array<i64: 1, 8, 256>}, {pipeline_mode = #tpu.pipeline_mode<synchronous>, transform_indices = @transform_2, window_bounds = array<i64: 48, 1>}, {transform_indices = @transform_3, window_bounds = array<i64: 1, 8, 256>}, {transform_indices = @transform_4, window_bounds = array<i64: 1, 8, 256>}, {transform_indices = @transform_5, window_bounds = array<i64: 1, 8, 256>}, {transform_indices = @transform_6, window_bounds = array<i64: 1, 8, 256>}, {transform_indices = @transform_7, window_bounds = array<i64: 1, 8, 256>}, {transform_indices = @transform_8, window_bounds = array<i64: 1, 8, 256>}]} {
    %c0 = arith.constant 0 : index
    %c0_0 = arith.constant 0 : index
    %0 = vector.load %arg2[%c0, %c0_0] : memref<48x8xbf16, #tpu.memory_space<vmem>>, vector<48x8xbf16>
    %c0_1 = arith.constant 0 : index
    %c0_2 = arith.constant 0 : index
    %c0_3 = arith.constant 0 : index
    %1 = vector.load %arg3[%c0_1, %c0_2, %c0_3] : memref<1x8x256xf32, #tpu.memory_space<vmem>>, vector<1x8x256xf32>
    %2 = vector.shape_cast %1 : vector<1x8x256xf32> to vector<8x256xf32>
    %3 = arith.truncf %2 : vector<8x256xf32> to vector<8x256xbf16>
    %cst = arith.constant dense<0.000000e+00> : vector<48x256xf32>
    %4 = tpu.matmul %0, %3, %cst {dimension_numbers = #tpu.dot_dimension_numbers<[1], [0], [0], [1], [0, 0, 1, 1], [], []>} : vector<48x8xbf16>, vector<8x256xbf16>, vector<48x256xf32> -> vector<48x256xf32>
    %c0_4 = arith.constant 0 : index
    %c0_5 = arith.constant 0 : index
    %5 = vector.load %arg4[%c0_4, %c0_5] : memref<48x1xf32, #tpu.memory_space<vmem>>, vector<48x1xf32>
    %6 = vector.broadcast %5 : vector<48x1xf32> to vector<48x256xf32>
    %7 = arith.addf %4, %6 : vector<48x256xf32>
    %8 = vector.extract_strided_slice %7 {offsets = [0, 0], sizes = [8, 256], strides = [1, 1]} : vector<48x256xf32> to vector<8x256xf32>
    %9 = arith.truncf %8 : vector<8x256xf32> to vector<8x256xbf16>
    %c0_6 = arith.constant 0 : index
    %c0_7 = arith.constant 0 : index
    %c0_8 = arith.constant 0 : index
    %10 = vector.load %arg5[%c0_6, %c0_7, %c0_8] : memref<1x8x256xbf16, #tpu.memory_space<vmem>>, vector<1x8x256xbf16>
    %11 = vector.shape_cast %10 : vector<1x8x256xbf16> to vector<8x256xbf16>
    %12 = vector.shape_cast %9 : vector<8x256xbf16> to vector<1x8x256xbf16>
    tpu.vector_store %arg5[%c0_6, %c0_7, %c0_8], %12 {strides = array<i32>} : memref<1x8x256xbf16, #tpu.memory_space<vmem>>, vector<1x8x256xbf16>,
    %13 = vector.extract_strided_slice %7 {offsets = [8, 0], sizes = [8, 256], strides = [1, 1]} : vector<48x256xf32> to vector<8x256xf32>
    %14 = arith.truncf %13 : vector<8x256xf32> to vector<8x256xbf16>
    %c0_9 = arith.constant 0 : index
    %c0_10 = arith.constant 0 : index
    %c0_11 = arith.constant 0 : index
    %15 = vector.load %arg6[%c0_9, %c0_10, %c0_11] : memref<1x8x256xbf16, #tpu.memory_space<vmem>>, vector<1x8x256xbf16>
    %16 = vector.shape_cast %15 : vector<1x8x256xbf16> to vector<8x256xbf16>
    %17 = vector.shape_cast %14 : vector<8x256xbf16> to vector<1x8x256xbf16>
    tpu.vector_store %arg6[%c0_9, %c0_10, %c0_11], %17 {strides = array<i32>} : memref<1x8x256xbf16, #tpu.memory_space<vmem>>, vector<1x8x256xbf16>,
    %18 = vector.extract_strided_slice %7 {offsets = [16, 0], sizes = [8, 256], strides = [1, 1]} : vector<48x256xf32> to vector<8x256xf32>
    %19 = arith.truncf %18 : vector<8x256xf32> to vector<8x256xbf16>
    %c0_12 = arith.constant 0 : index
    %c0_13 = arith.constant 0 : index
    %c0_14 = arith.constant 0 : index
    %20 = vector.load %arg7[%c0_12, %c0_13, %c0_14] : memref<1x8x256xbf16, #tpu.memory_space<vmem>>, vector<1x8x256xbf16>
    %21 = vector.shape_cast %20 : vector<1x8x256xbf16> to vector<8x256xbf16>
    %22 = vector.shape_cast %19 : vector<8x256xbf16> to vector<1x8x256xbf16>
    tpu.vector_store %arg7[%c0_12, %c0_13, %c0_14], %22 {strides = array<i32>} : memref<1x8x256xbf16, #tpu.memory_space<vmem>>, vector<1x8x256xbf16>,
    %23 = vector.extract_strided_slice %7 {offsets = [24, 0], sizes = [8, 256], strides = [1, 1]} : vector<48x256xf32> to vector<8x256xf32>
    %24 = arith.truncf %23 : vector<8x256xf32> to vector<8x256xbf16>
    %c0_15 = arith.constant 0 : index
    %c0_16 = arith.constant 0 : index
    %c0_17 = arith.constant 0 : index
    %25 = vector.load %arg8[%c0_15, %c0_16, %c0_17] : memref<1x8x256xbf16, #tpu.memory_space<vmem>>, vector<1x8x256xbf16>
    %26 = vector.shape_cast %25 : vector<1x8x256xbf16> to vector<8x256xbf16>
    %27 = vector.shape_cast %24 : vector<8x256xbf16> to vector<1x8x256xbf16>
    tpu.vector_store %arg8[%c0_15, %c0_16, %c0_17], %27 {strides = array<i32>} : memref<1x8x256xbf16, #tpu.memory_space<vmem>>, vector<1x8x256xbf16>,
    %28 = vector.extract_strided_slice %7 {offsets = [32, 0], sizes = [8, 256], strides = [1, 1]} : vector<48x256xf32> to vector<8x256xf32>
    %29 = arith.truncf %28 : vector<8x256xf32> to vector<8x256xbf16>
    %c0_18 = arith.constant 0 : index
    %c0_19 = arith.constant 0 : index
    %c0_20 = arith.constant 0 : index
    %30 = vector.load %arg9[%c0_18, %c0_19, %c0_20] : memref<1x8x256xbf16, #tpu.memory_space<vmem>>, vector<1x8x256xbf16>
    %31 = vector.shape_cast %30 : vector<1x8x256xbf16> to vector<8x256xbf16>
    %32 = vector.shape_cast %29 : vector<8x256xbf16> to vector<1x8x256xbf16>
    tpu.vector_store %arg9[%c0_18, %c0_19, %c0_20], %32 {strides = array<i32>} : memref<1x8x256xbf16, #tpu.memory_space<vmem>>, vector<1x8x256xbf16>,
    %33 = vector.extract_strided_slice %7 {offsets = [40, 0], sizes = [8, 256], strides = [1, 1]} : vector<48x256xf32> to vector<8x256xf32>
    %34 = arith.truncf %33 : vector<8x256xf32> to vector<8x256xbf16>
    %c0_21 = arith.constant 0 : index
    %c0_22 = arith.constant 0 : index
    %c0_23 = arith.constant 0 : index
    %35 = vector.load %arg10[%c0_21, %c0_22, %c0_23] : memref<1x8x256xbf16, #tpu.memory_space<vmem>>, vector<1x8x256xbf16>
    %36 = vector.shape_cast %35 : vector<1x8x256xbf16> to vector<8x256xbf16>
    %37 = vector.shape_cast %34 : vector<8x256xbf16> to vector<1x8x256xbf16>
    tpu.vector_store %arg10[%c0_21, %c0_22, %c0_23], %37 {strides = array<i32>} : memref<1x8x256xbf16, #tpu.memory_space<vmem>>, vector<1x8x256xbf16>,
    return
  }
  func.func @transform_0(%arg0: i32, %arg1: i32) -> (i32, i32) {
    %c0_i32 = arith.constant 0 : i32
    %c0_i32_0 = arith.constant 0 : i32
    %c0_i32_1 = arith.constant 0 : i32
    return %c0_i32, %c0_i32_0 : i32, i32
  }
  func.func @transform_1(%arg0: i32, %arg1: i32) -> (i32, i32, i32) {
    %c0_i32 = arith.constant 0 : i32
    %c0_i32_0 = arith.constant 0 : i32
    return %arg0, %c0_i32, %arg1 : i32, i32, i32
  }
  func.func @transform_2(%arg0: i32, %arg1: i32) -> (i32, i32) {
    %c0_i32 = arith.constant 0 : i32
    %c0_i32_0 = arith.constant 0 : i32
    %c0_i32_1 = arith.constant 0 : i32
    return %c0_i32, %c0_i32_0 : i32, i32
  }
  func.func @transform_3(%arg0: i32, %arg1: i32) -> (i32, i32, i32) {
    %c0_i32 = arith.constant 0 : i32
    %c0_i32_0 = arith.constant 0 : i32
    return %arg0, %c0_i32, %arg1 : i32, i32, i32
  }
  func.func @transform_4(%arg0: i32, %arg1: i32) -> (i32, i32, i32) {
    %c0_i32 = arith.constant 0 : i32
    %c0_i32_0 = arith.constant 0 : i32
    return %arg0, %c0_i32, %arg1 : i32, i32, i32
  }
  func.func @transform_5(%arg0: i32, %arg1: i32) -> (i32, i32, i32) {
    %c0_i32 = arith.constant 0 : i32
    %c0_i32_0 = arith.constant 0 : i32
    return %arg0, %c0_i32, %arg1 : i32, i32, i32
  }
  func.func @transform_6(%arg0: i32, %arg1: i32) -> (i32, i32, i32) {
    %c0_i32 = arith.constant 0 : i32
    %c0_i32_0 = arith.constant 0 : i32
    return %arg0, %c0_i32, %arg1 : i32, i32, i32
  }
  func.func @transform_7(%arg0: i32, %arg1: i32) -> (i32, i32, i32) {
    %c0_i32 = arith.constant 0 : i32
    %c0_i32_0 = arith.constant 0 : i32
    return %arg0, %c0_i32, %arg1 : i32, i32, i32
  }
  func.func @transform_8(%arg0: i32, %arg1: i32) -> (i32, i32, i32) {
    %c0_i32 = arith.constant 0 : i32
    %c0_i32_0 = arith.constant 0 : i32
    return %arg0, %c0_i32, %arg1 : i32, i32, i32
  }
}

module attributes {stable_mosaic.version = 11 : i64} {
  func.func @_attn_kernel(%arg0: i32, %arg1: memref<2x16x128xbf16, #tpu.memory_space<vmem>>, %arg2: memref<2x16x128xbf16, #tpu.memory_space<vmem>>, %arg3: memref<2x16x128xbf16, #tpu.memory_space<vmem>>, %arg4: memref<2x16x128xbf16, #tpu.memory_space<vmem>>) attributes {dimension_semantics = [#tpu.dimension_semantics<parallel>], iteration_bounds = array<i64: 2>, scalar_prefetch = 0 : i64, scratch_operands = 0 : i64, tpu.core_type = #tpu.core_type<tc>, window_params = [{transform_indices = @transform_0, window_bounds = array<i64: 2, 16, 128>}, {transform_indices = @transform_1, window_bounds = array<i64: 2, 16, 128>}, {transform_indices = @transform_2, window_bounds = array<i64: 2, 16, 128>}, {transform_indices = @transform_3, window_bounds = array<i64: 2, 16, 128>}]} {
    %c0 = arith.constant 0 : index
    %c0_0 = arith.constant 0 : index
    %c0_1 = arith.constant 0 : index
    %0 = vector.load %arg1[%c0, %c0_0, %c0_1] : memref<2x16x128xbf16, #tpu.memory_space<vmem>>, vector<2x16x128xbf16>
    %c0_2 = arith.constant 0 : index
    %c0_3 = arith.constant 0 : index
    %c0_4 = arith.constant 0 : index
    %1 = vector.load %arg2[%c0_2, %c0_3, %c0_4] : memref<2x16x128xbf16, #tpu.memory_space<vmem>>, vector<2x16x128xbf16>
    %c0_5 = arith.constant 0 : index
    %c0_6 = arith.constant 0 : index
    %c0_7 = arith.constant 0 : index
    %2 = vector.load %arg3[%c0_5, %c0_6, %c0_7] : memref<2x16x128xbf16, #tpu.memory_space<vmem>>, vector<2x16x128xbf16>
    "tpu.trace_start"() <{level = 10 : i32, message = "gtd,gsd->gts"}> : () -> ()
    %cst = arith.constant dense<0.000000e+00> : vector<2x16x16xf32>
    %3 = tpu.matmul %0, %1, %cst {dimension_numbers = #tpu.dot_dimension_numbers<[2], [2], [1], [1], [0, 0, 0, 1, 1, 1], [0], [0]>} : vector<2x16x128xbf16>, vector<2x16x128xbf16>, vector<2x16x16xf32> -> vector<2x16x16xf32>
    "tpu.trace_stop"() : () -> ()
    %cst_8 = arith.constant dense<0xFF800000> : vector<2x16xf32>
    %4 = vector.multi_reduction <maximumf>, %3, %cst_8 [2] : vector<2x16x16xf32> to vector<2x16xf32>
    %5 = vector.shape_cast %4 : vector<2x16xf32> to vector<2x16x1xf32>
    %6 = vector.broadcast %5 : vector<2x16x1xf32> to vector<2x16x16xf32>
    %7 = arith.subf %3, %6 : vector<2x16x16xf32>
    %8 = math.exp %7 : vector<2x16x16xf32>
    %cst_9 = arith.constant dense<0.000000e+00> : vector<2x16xf32>
    %9 = vector.multi_reduction <add>, %8, %cst_9 [2] : vector<2x16x16xf32> to vector<2x16xf32>
    %10 = vector.shape_cast %9 : vector<2x16xf32> to vector<2x16x1xf32>
    %11 = tpu.reciprocal %10 {approx = true} : vector<2x16x1xf32> -> vector<2x16x1xf32>
    %12 = arith.truncf %8 : vector<2x16x16xf32> to vector<2x16x16xbf16>
    "tpu.trace_start"() <{level = 10 : i32, message = "gts,gsd->gtd"}> : () -> ()
    %cst_10 = arith.constant dense<0.000000e+00> : vector<2x16x128xf32>
    %13 = tpu.matmul %12, %2, %cst_10 {dimension_numbers = #tpu.dot_dimension_numbers<[2], [1], [1], [2], [0, 0, 0, 1, 1, 2], [0], [0]>} : vector<2x16x16xbf16>, vector<2x16x128xbf16>, vector<2x16x128xf32> -> vector<2x16x128xf32>
    "tpu.trace_stop"() : () -> ()
    %14 = vector.broadcast %11 : vector<2x16x1xf32> to vector<2x16x128xf32>
    %15 = arith.mulf %13, %14 : vector<2x16x128xf32>
    %16 = arith.truncf %15 : vector<2x16x128xf32> to vector<2x16x128xbf16>
    %c0_11 = arith.constant 0 : index
    %c0_12 = arith.constant 0 : index
    %c0_13 = arith.constant 0 : index
    %17 = vector.load %arg4[%c0_11, %c0_12, %c0_13] : memref<2x16x128xbf16, #tpu.memory_space<vmem>>, vector<2x16x128xbf16>
    tpu.vector_store %arg4[%c0_11, %c0_12, %c0_13], %16 {strides = array<i32>} : memref<2x16x128xbf16, #tpu.memory_space<vmem>>, vector<2x16x128xbf16>,
    return
  }
  func.func @transform_0(%arg0: i32) -> (i32, i32, i32) {
    %c0_i32 = arith.constant 0 : i32
    %c0_i32_0 = arith.constant 0 : i32
    %c0_i32_1 = arith.constant 0 : i32
    return %arg0, %c0_i32, %c0_i32_0 : i32, i32, i32
  }
  func.func @transform_1(%arg0: i32) -> (i32, i32, i32) {
    %c0_i32 = arith.constant 0 : i32
    %c0_i32_0 = arith.constant 0 : i32
    %c0_i32_1 = arith.constant 0 : i32
    return %arg0, %c0_i32, %c0_i32_0 : i32, i32, i32
  }
  func.func @transform_2(%arg0: i32) -> (i32, i32, i32) {
    %c0_i32 = arith.constant 0 : i32
    %c0_i32_0 = arith.constant 0 : i32
    %c0_i32_1 = arith.constant 0 : i32
    return %arg0, %c0_i32, %c0_i32_0 : i32, i32, i32
  }
  func.func @transform_3(%arg0: i32) -> (i32, i32, i32) {
    %c0_i32 = arith.constant 0 : i32
    %c0_i32_0 = arith.constant 0 : i32
    %c0_i32_1 = arith.constant 0 : i32
    return %arg0, %c0_i32, %c0_i32_0 : i32, i32, i32
  }
}

module attributes {stable_mosaic.version = 11 : i64} {
  func.func @_attn_kernel(%arg0: i32, %arg1: memref<2x4x256xbf16, #tpu.memory_space<vmem>>, %arg2: memref<2x4x256xbf16, #tpu.memory_space<vmem>>, %arg3: memref<2x4x256xbf16, #tpu.memory_space<vmem>>, %arg4: memref<2x4x256xbf16, #tpu.memory_space<vmem>>) attributes {dimension_semantics = [#tpu.dimension_semantics<parallel>], iteration_bounds = array<i64: 2>, scalar_prefetch = 0 : i64, scratch_operands = 0 : i64, tpu.core_type = #tpu.core_type<tc>, window_params = [{transform_indices = @transform_0, window_bounds = array<i64: 2, 4, 256>}, {transform_indices = @transform_1, window_bounds = array<i64: 2, 4, 256>}, {transform_indices = @transform_2, window_bounds = array<i64: 2, 4, 256>}, {transform_indices = @transform_3, window_bounds = array<i64: 2, 4, 256>}]} {
    %c0 = arith.constant 0 : index
    %c0_0 = arith.constant 0 : index
    %c0_1 = arith.constant 0 : index
    %0 = vector.load %arg1[%c0, %c0_0, %c0_1] : memref<2x4x256xbf16, #tpu.memory_space<vmem>>, vector<2x4x256xbf16>
    %c0_2 = arith.constant 0 : index
    %c0_3 = arith.constant 0 : index
    %c0_4 = arith.constant 0 : index
    %1 = vector.load %arg2[%c0_2, %c0_3, %c0_4] : memref<2x4x256xbf16, #tpu.memory_space<vmem>>, vector<2x4x256xbf16>
    %c0_5 = arith.constant 0 : index
    %c0_6 = arith.constant 0 : index
    %c0_7 = arith.constant 0 : index
    %2 = vector.load %arg3[%c0_5, %c0_6, %c0_7] : memref<2x4x256xbf16, #tpu.memory_space<vmem>>, vector<2x4x256xbf16>
    "tpu.trace_start"() <{level = 10 : i32, message = "gtd,gsd->gts"}> : () -> ()
    %cst = arith.constant dense<0.000000e+00> : vector<2x4x4xf32>
    %3 = tpu.matmul %0, %1, %cst {dimension_numbers = #tpu.dot_dimension_numbers<[2], [2], [1], [1], [0, 0, 0, 1, 1, 1], [0], [0]>} : vector<2x4x256xbf16>, vector<2x4x256xbf16>, vector<2x4x4xf32> -> vector<2x4x4xf32>
    "tpu.trace_stop"() : () -> ()
    %cst_8 = arith.constant dense<0xFF800000> : vector<2x4xf32>
    %4 = vector.multi_reduction <maximumf>, %3, %cst_8 [2] : vector<2x4x4xf32> to vector<2x4xf32>
    %5 = vector.shape_cast %4 : vector<2x4xf32> to vector<2x4x1xf32>
    %6 = vector.broadcast %5 : vector<2x4x1xf32> to vector<2x4x4xf32>
    %7 = arith.subf %3, %6 : vector<2x4x4xf32>
    %8 = math.exp %7 : vector<2x4x4xf32>
    %cst_9 = arith.constant dense<0.000000e+00> : vector<2x4xf32>
    %9 = vector.multi_reduction <add>, %8, %cst_9 [2] : vector<2x4x4xf32> to vector<2x4xf32>
    %10 = vector.shape_cast %9 : vector<2x4xf32> to vector<2x4x1xf32>
    %11 = tpu.reciprocal %10 {approx = true} : vector<2x4x1xf32> -> vector<2x4x1xf32>
    %12 = arith.truncf %8 : vector<2x4x4xf32> to vector<2x4x4xbf16>
    "tpu.trace_start"() <{level = 10 : i32, message = "gts,gsd->gtd"}> : () -> ()
    %cst_10 = arith.constant dense<0.000000e+00> : vector<2x4x256xf32>
    %13 = tpu.matmul %12, %2, %cst_10 {dimension_numbers = #tpu.dot_dimension_numbers<[2], [1], [1], [2], [0, 0, 0, 1, 1, 2], [0], [0]>} : vector<2x4x4xbf16>, vector<2x4x256xbf16>, vector<2x4x256xf32> -> vector<2x4x256xf32>
    "tpu.trace_stop"() : () -> ()
    %14 = vector.broadcast %11 : vector<2x4x1xf32> to vector<2x4x256xf32>
    %15 = arith.mulf %13, %14 : vector<2x4x256xf32>
    %16 = arith.truncf %15 : vector<2x4x256xf32> to vector<2x4x256xbf16>
    %c0_11 = arith.constant 0 : index
    %c0_12 = arith.constant 0 : index
    %c0_13 = arith.constant 0 : index
    %17 = vector.load %arg4[%c0_11, %c0_12, %c0_13] : memref<2x4x256xbf16, #tpu.memory_space<vmem>>, vector<2x4x256xbf16>
    tpu.vector_store %arg4[%c0_11, %c0_12, %c0_13], %16 {strides = array<i32>} : memref<2x4x256xbf16, #tpu.memory_space<vmem>>, vector<2x4x256xbf16>,
    return
  }
  func.func @transform_0(%arg0: i32) -> (i32, i32, i32) {
    %c0_i32 = arith.constant 0 : i32
    %c0_i32_0 = arith.constant 0 : i32
    %c0_i32_1 = arith.constant 0 : i32
    return %arg0, %c0_i32, %c0_i32_0 : i32, i32, i32
  }
  func.func @transform_1(%arg0: i32) -> (i32, i32, i32) {
    %c0_i32 = arith.constant 0 : i32
    %c0_i32_0 = arith.constant 0 : i32
    %c0_i32_1 = arith.constant 0 : i32
    return %arg0, %c0_i32, %c0_i32_0 : i32, i32, i32
  }
  func.func @transform_2(%arg0: i32) -> (i32, i32, i32) {
    %c0_i32 = arith.constant 0 : i32
    %c0_i32_0 = arith.constant 0 : i32
    %c0_i32_1 = arith.constant 0 : i32
    return %arg0, %c0_i32, %c0_i32_0 : i32, i32, i32
  }
  func.func @transform_3(%arg0: i32) -> (i32, i32, i32) {
    %c0_i32 = arith.constant 0 : i32
    %c0_i32_0 = arith.constant 0 : i32
    %c0_i32_1 = arith.constant 0 : i32
    return %arg0, %c0_i32, %c0_i32_0 : i32, i32, i32
  }
}

module attributes {stable_mosaic.version = 11 : i64} {
  func.func @_gated_proj_kernel(%arg0: i32, %arg1: i32, %arg2: memref<8x8xbf16, #tpu.memory_space<vmem>>, %arg3: memref<1x8x256xbf16, #tpu.memory_space<vmem>>, %arg4: memref<8x8xbf16, #tpu.memory_space<vmem>>, %arg5: memref<1x8x256xbf16, #tpu.memory_space<vmem>>, %arg6: memref<8x1xf32, #tpu.memory_space<vmem>>, %arg7: memref<1x8x256xf32, #tpu.memory_space<vmem>>, %arg8: memref<8x1xf32, #tpu.memory_space<vmem>>, %arg9: memref<8x1xf32, #tpu.memory_space<vmem>>, %arg10: memref<1x8x256xf32, #tpu.memory_space<vmem>>, %arg11: memref<1x8x256xbf16, #tpu.memory_space<vmem>>) attributes {dimension_semantics = [#tpu.dimension_semantics<parallel>, #tpu.dimension_semantics<parallel>], iteration_bounds = array<i64: 2, 1>, scalar_prefetch = 0 : i64, scratch_operands = 0 : i64, tpu.core_type = #tpu.core_type<tc>, window_params = [{pipeline_mode = #tpu.pipeline_mode<synchronous>, transform_indices = @transform_0, window_bounds = array<i64: 8, 8>}, {transform_indices = @transform_1, window_bounds = array<i64: 1, 8, 256>}, {pipeline_mode = #tpu.pipeline_mode<synchronous>, transform_indices = @transform_2, window_bounds = array<i64: 8, 8>}, {transform_indices = @transform_3, window_bounds = array<i64: 1, 8, 256>}, {pipeline_mode = #tpu.pipeline_mode<synchronous>, transform_indices = @transform_4, window_bounds = array<i64: 8, 1>}, {transform_indices = @transform_5, window_bounds = array<i64: 1, 8, 256>}, {pipeline_mode = #tpu.pipeline_mode<synchronous>, transform_indices = @transform_6, window_bounds = array<i64: 8, 1>}, {pipeline_mode = #tpu.pipeline_mode<synchronous>, transform_indices = @transform_7, window_bounds = array<i64: 8, 1>}, {transform_indices = @transform_8, window_bounds = array<i64: 1, 8, 256>}, {transform_indices = @transform_9, window_bounds = array<i64: 1, 8, 256>}]} {
    %c0 = arith.constant 0 : index
    %c0_0 = arith.constant 0 : index
    %0 = vector.load %arg2[%c0, %c0_0] : memref<8x8xbf16, #tpu.memory_space<vmem>>, vector<8x8xbf16>
    %c0_1 = arith.constant 0 : index
    %c0_2 = arith.constant 0 : index
    %c0_3 = arith.constant 0 : index
    %1 = vector.load %arg3[%c0_1, %c0_2, %c0_3] : memref<1x8x256xbf16, #tpu.memory_space<vmem>>, vector<1x8x256xbf16>
    %2 = vector.shape_cast %1 : vector<1x8x256xbf16> to vector<8x256xbf16>
    %cst = arith.constant dense<0.000000e+00> : vector<8x256xf32>
    %3 = tpu.matmul %0, %2, %cst {dimension_numbers = #tpu.dot_dimension_numbers<[1], [0], [0], [1], [0, 0, 1, 1], [], []>} : vector<8x8xbf16>, vector<8x256xbf16>, vector<8x256xf32> -> vector<8x256xf32>
    %c0_4 = arith.constant 0 : index
    %c0_5 = arith.constant 0 : index
    %4 = vector.load %arg4[%c0_4, %c0_5] : memref<8x8xbf16, #tpu.memory_space<vmem>>, vector<8x8xbf16>
    %c0_6 = arith.constant 0 : index
    %c0_7 = arith.constant 0 : index
    %c0_8 = arith.constant 0 : index
    %5 = vector.load %arg5[%c0_6, %c0_7, %c0_8] : memref<1x8x256xbf16, #tpu.memory_space<vmem>>, vector<1x8x256xbf16>
    %6 = vector.shape_cast %5 : vector<1x8x256xbf16> to vector<8x256xbf16>
    %cst_9 = arith.constant dense<0.000000e+00> : vector<8x256xf32>
    %7 = tpu.matmul %4, %6, %cst_9 {dimension_numbers = #tpu.dot_dimension_numbers<[1], [0], [0], [1], [0, 0, 1, 1], [], []>} : vector<8x8xbf16>, vector<8x256xbf16>, vector<8x256xf32> -> vector<8x256xf32>
    %8 = arith.addf %3, %7 : vector<8x256xf32>
    %c0_10 = arith.constant 0 : index
    %c0_11 = arith.constant 0 : index
    %9 = vector.load %arg6[%c0_10, %c0_11] : memref<8x1xf32, #tpu.memory_space<vmem>>, vector<8x1xf32>
    %10 = vector.broadcast %9 : vector<8x1xf32> to vector<8x256xf32>
    %11 = arith.addf %8, %10 : vector<8x256xf32>
    %c0_12 = arith.constant 0 : index
    %c0_13 = arith.constant 0 : index
    %c0_14 = arith.constant 0 : index
    %12 = vector.load %arg7[%c0_12, %c0_13, %c0_14] : memref<1x8x256xf32, #tpu.memory_space<vmem>>, vector<1x8x256xf32>
    %13 = vector.shape_cast %12 : vector<1x8x256xf32> to vector<8x256xf32>
    %14 = arith.addf %11, %13 : vector<8x256xf32>
    %c0_15 = arith.constant 0 : index
    %c0_16 = arith.constant 0 : index
    %c0_17 = arith.constant 0 : index
    %15 = vector.load %arg10[%c0_15, %c0_16, %c0_17] : memref<1x8x256xf32, #tpu.memory_space<vmem>>, vector<1x8x256xf32>
    %16 = vector.shape_cast %15 : vector<1x8x256xf32> to vector<8x256xf32>
    %17 = vector.shape_cast %14 : vector<8x256xf32> to vector<1x8x256xf32>
    tpu.vector_store %arg10[%c0_15, %c0_16, %c0_17], %17 {strides = array<i32>} : memref<1x8x256xf32, #tpu.memory_space<vmem>>, vector<1x8x256xf32>,
    %c0_18 = arith.constant 0 : index
    %c0_19 = arith.constant 0 : index
    %18 = vector.load %arg8[%c0_18, %c0_19] : memref<8x1xf32, #tpu.memory_space<vmem>>, vector<8x1xf32>
    %19 = vector.broadcast %18 : vector<8x1xf32> to vector<8x256xf32>
    %20 = arith.mulf %14, %19 : vector<8x256xf32>
    %c0_20 = arith.constant 0 : index
    %c0_21 = arith.constant 0 : index
    %21 = vector.load %arg9[%c0_20, %c0_21] : memref<8x1xf32, #tpu.memory_space<vmem>>, vector<8x1xf32>
    %22 = vector.broadcast %21 : vector<8x1xf32> to vector<8x256xf32>
    %23 = arith.addf %20, %22 : vector<8x256xf32>
    %24 = arith.truncf %23 : vector<8x256xf32> to vector<8x256xbf16>
    %c0_22 = arith.constant 0 : index
    %c0_23 = arith.constant 0 : index
    %c0_24 = arith.constant 0 : index
    %25 = vector.load %arg11[%c0_22, %c0_23, %c0_24] : memref<1x8x256xbf16, #tpu.memory_space<vmem>>, vector<1x8x256xbf16>
    %26 = vector.shape_cast %25 : vector<1x8x256xbf16> to vector<8x256xbf16>
    %27 = vector.shape_cast %24 : vector<8x256xbf16> to vector<1x8x256xbf16>
    tpu.vector_store %arg11[%c0_22, %c0_23, %c0_24], %27 {strides = array<i32>} : memref<1x8x256xbf16, #tpu.memory_space<vmem>>, vector<1x8x256xbf16>,
    return
  }
  func.func @transform_0(%arg0: i32, %arg1: i32) -> (i32, i32) {
    %c0_i32 = arith.constant 0 : i32
    %c0_i32_0 = arith.constant 0 : i32
    %c0_i32_1 = arith.constant 0 : i32
    return %c0_i32, %c0_i32_0 : i32, i32
  }
  func.func @transform_1(%arg0: i32, %arg1: i32) -> (i32, i32, i32) {
    %c0_i32 = arith.constant 0 : i32
    %c0_i32_0 = arith.constant 0 : i32
    return %arg0, %c0_i32, %arg1 : i32, i32, i32
  }
  func.func @transform_2(%arg0: i32, %arg1: i32) -> (i32, i32) {
    %c0_i32 = arith.constant 0 : i32
    %c0_i32_0 = arith.constant 0 : i32
    %c0_i32_1 = arith.constant 0 : i32
    return %c0_i32, %c0_i32_0 : i32, i32
  }
  func.func @transform_3(%arg0: i32, %arg1: i32) -> (i32, i32, i32) {
    %c0_i32 = arith.constant 0 : i32
    %c0_i32_0 = arith.constant 0 : i32
    return %arg0, %c0_i32, %arg1 : i32, i32, i32
  }
  func.func @transform_4(%arg0: i32, %arg1: i32) -> (i32, i32) {
    %c0_i32 = arith.constant 0 : i32
    %c0_i32_0 = arith.constant 0 : i32
    %c0_i32_1 = arith.constant 0 : i32
    return %c0_i32, %c0_i32_0 : i32, i32
  }
  func.func @transform_5(%arg0: i32, %arg1: i32) -> (i32, i32, i32) {
    %c0_i32 = arith.constant 0 : i32
    %c0_i32_0 = arith.constant 0 : i32
    return %arg0, %c0_i32, %arg1 : i32, i32, i32
  }
  func.func @transform_6(%arg0: i32, %arg1: i32) -> (i32, i32) {
    %c0_i32 = arith.constant 0 : i32
    %c0_i32_0 = arith.constant 0 : i32
    %c0_i32_1 = arith.constant 0 : i32
    return %c0_i32, %c0_i32_0 : i32, i32
  }
  func.func @transform_7(%arg0: i32, %arg1: i32) -> (i32, i32) {
    %c0_i32 = arith.constant 0 : i32
    %c0_i32_0 = arith.constant 0 : i32
    %c0_i32_1 = arith.constant 0 : i32
    return %c0_i32, %c0_i32_0 : i32, i32
  }
  func.func @transform_8(%arg0: i32, %arg1: i32) -> (i32, i32, i32) {
    %c0_i32 = arith.constant 0 : i32
    %c0_i32_0 = arith.constant 0 : i32
    return %arg0, %c0_i32, %arg1 : i32, i32, i32
  }
  func.func @transform_9(%arg0: i32, %arg1: i32) -> (i32, i32, i32) {
    %c0_i32 = arith.constant 0 : i32
    %c0_i32_0 = arith.constant 0 : i32
    return %arg0, %c0_i32, %arg1 : i32, i32, i32
  }
}

module attributes {stable_mosaic.version = 11 : i64} {
  func.func @_conv3x3_kernel(%arg0: i32, %arg1: i32, %arg2: memref<1x8x290xbf16, #tpu.memory_space<vmem>>, %arg3: memref<9x32x8xbf16, #tpu.memory_space<vmem>>, %arg4: memref<32x1xf32, #tpu.memory_space<vmem>>, %arg5: memref<2x1x256xf32, #tpu.memory_space<vmem>>, %arg6: memref<1x32x256xbf16, #tpu.memory_space<vmem>>) attributes {dimension_semantics = [#tpu.dimension_semantics<parallel>, #tpu.dimension_semantics<parallel>], iteration_bounds = array<i64: 2, 1>, scalar_prefetch = 0 : i64, scratch_operands = 0 : i64, tpu.core_type = #tpu.core_type<tc>, window_params = [{transform_indices = @transform_0, window_bounds = array<i64: 1, 8, 290>}, {transform_indices = @transform_1, window_bounds = array<i64: 9, 32, 8>}, {transform_indices = @transform_2, window_bounds = array<i64: 32, 1>}, {pipeline_mode = #tpu.pipeline_mode<synchronous>, transform_indices = @transform_3, window_bounds = array<i64: 2, 1, 256>}, {transform_indices = @transform_4, window_bounds = array<i64: 1, 32, 256>}]} {
    %c0 = arith.constant 0 : index
    %c0_0 = arith.constant 0 : index
    %c0_1 = arith.constant 0 : index
    %0 = vector.load %arg2[%c0, %c0_0, %c0_1] : memref<1x8x290xbf16, #tpu.memory_space<vmem>>, vector<1x8x256xbf16>
    %1 = vector.shape_cast %0 : vector<1x8x256xbf16> to vector<8x256xbf16>
    %c0_2 = arith.constant 0 : index
    %c0_3 = arith.constant 0 : index
    %c0_4 = arith.constant 0 : index
    %2 = vector.load %arg3[%c0_2, %c0_3, %c0_4] : memref<9x32x8xbf16, #tpu.memory_space<vmem>>, vector<1x32x8xbf16>
    %3 = vector.shape_cast %2 : vector<1x32x8xbf16> to vector<32x8xbf16>
    %cst = arith.constant dense<0.000000e+00> : vector<32x256xf32>
    %4 = tpu.matmul %3, %1, %cst {dimension_numbers = #tpu.dot_dimension_numbers<[1], [0], [0], [1], [0, 0, 1, 1], [], []>} : vector<32x8xbf16>, vector<8x256xbf16>, vector<32x256xf32> -> vector<32x256xf32>
    %c0_5 = arith.constant 0 : index
    %c0_6 = arith.constant 0 : index
    %c1 = arith.constant 1 : index
    %5 = vector.load %arg2[%c0_5, %c0_6, %c1] : memref<1x8x290xbf16, #tpu.memory_space<vmem>>, vector<1x8x256xbf16>
    %6 = vector.shape_cast %5 : vector<1x8x256xbf16> to vector<8x256xbf16>
    %c1_7 = arith.constant 1 : index
    %c0_8 = arith.constant 0 : index
    %c0_9 = arith.constant 0 : index
    %7 = vector.load %arg3[%c1_7, %c0_8, %c0_9] : memref<9x32x8xbf16, #tpu.memory_space<vmem>>, vector<1x32x8xbf16>
    %8 = vector.shape_cast %7 : vector<1x32x8xbf16> to vector<32x8xbf16>
    %cst_10 = arith.constant dense<0.000000e+00> : vector<32x256xf32>
    %9 = tpu.matmul %8, %6, %cst_10 {dimension_numbers = #tpu.dot_dimension_numbers<[1], [0], [0], [1], [0, 0, 1, 1], [], []>} : vector<32x8xbf16>, vector<8x256xbf16>, vector<32x256xf32> -> vector<32x256xf32>
    %c0_11 = arith.constant 0 : index
    %c0_12 = arith.constant 0 : index
    %c2 = arith.constant 2 : index
    %10 = vector.load %arg2[%c0_11, %c0_12, %c2] : memref<1x8x290xbf16, #tpu.memory_space<vmem>>, vector<1x8x256xbf16>
    %11 = vector.shape_cast %10 : vector<1x8x256xbf16> to vector<8x256xbf16>
    %c2_13 = arith.constant 2 : index
    %c0_14 = arith.constant 0 : index
    %c0_15 = arith.constant 0 : index
    %12 = vector.load %arg3[%c2_13, %c0_14, %c0_15] : memref<9x32x8xbf16, #tpu.memory_space<vmem>>, vector<1x32x8xbf16>
    %13 = vector.shape_cast %12 : vector<1x32x8xbf16> to vector<32x8xbf16>
    %cst_16 = arith.constant dense<0.000000e+00> : vector<32x256xf32>
    %14 = tpu.matmul %13, %11, %cst_16 {dimension_numbers = #tpu.dot_dimension_numbers<[1], [0], [0], [1], [0, 0, 1, 1], [], []>} : vector<32x8xbf16>, vector<8x256xbf16>, vector<32x256xf32> -> vector<32x256xf32>
    %c0_17 = arith.constant 0 : index
    %c0_18 = arith.constant 0 : index
    %c16 = arith.constant 16 : index
    %15 = vector.load %arg2[%c0_17, %c0_18, %c16] : memref<1x8x290xbf16, #tpu.memory_space<vmem>>, vector<1x8x256xbf16>
    %16 = vector.shape_cast %15 : vector<1x8x256xbf16> to vector<8x256xbf16>
    %c3 = arith.constant 3 : index
    %c0_19 = arith.constant 0 : index
    %c0_20 = arith.constant 0 : index
    %17 = vector.load %arg3[%c3, %c0_19, %c0_20] : memref<9x32x8xbf16, #tpu.memory_space<vmem>>, vector<1x32x8xbf16>
    %18 = vector.shape_cast %17 : vector<1x32x8xbf16> to vector<32x8xbf16>
    %cst_21 = arith.constant dense<0.000000e+00> : vector<32x256xf32>
    %19 = tpu.matmul %18, %16, %cst_21 {dimension_numbers = #tpu.dot_dimension_numbers<[1], [0], [0], [1], [0, 0, 1, 1], [], []>} : vector<32x8xbf16>, vector<8x256xbf16>, vector<32x256xf32> -> vector<32x256xf32>
    %20 = arith.addf %4, %19 : vector<32x256xf32>
    %c0_22 = arith.constant 0 : index
    %c0_23 = arith.constant 0 : index
    %c17 = arith.constant 17 : index
    %21 = vector.load %arg2[%c0_22, %c0_23, %c17] : memref<1x8x290xbf16, #tpu.memory_space<vmem>>, vector<1x8x256xbf16>
    %22 = vector.shape_cast %21 : vector<1x8x256xbf16> to vector<8x256xbf16>
    %c4 = arith.constant 4 : index
    %c0_24 = arith.constant 0 : index
    %c0_25 = arith.constant 0 : index
    %23 = vector.load %arg3[%c4, %c0_24, %c0_25] : memref<9x32x8xbf16, #tpu.memory_space<vmem>>, vector<1x32x8xbf16>
    %24 = vector.shape_cast %23 : vector<1x32x8xbf16> to vector<32x8xbf16>
    %cst_26 = arith.constant dense<0.000000e+00> : vector<32x256xf32>
    %25 = tpu.matmul %24, %22, %cst_26 {dimension_numbers = #tpu.dot_dimension_numbers<[1], [0], [0], [1], [0, 0, 1, 1], [], []>} : vector<32x8xbf16>, vector<8x256xbf16>, vector<32x256xf32> -> vector<32x256xf32>
    %26 = arith.addf %9, %25 : vector<32x256xf32>
    %c0_27 = arith.constant 0 : index
    %c0_28 = arith.constant 0 : index
    %c18 = arith.constant 18 : index
    %27 = vector.load %arg2[%c0_27, %c0_28, %c18] : memref<1x8x290xbf16, #tpu.memory_space<vmem>>, vector<1x8x256xbf16>
    %28 = vector.shape_cast %27 : vector<1x8x256xbf16> to vector<8x256xbf16>
    %c5 = arith.constant 5 : index
    %c0_29 = arith.constant 0 : index
    %c0_30 = arith.constant 0 : index
    %29 = vector.load %arg3[%c5, %c0_29, %c0_30] : memref<9x32x8xbf16, #tpu.memory_space<vmem>>, vector<1x32x8xbf16>
    %30 = vector.shape_cast %29 : vector<1x32x8xbf16> to vector<32x8xbf16>
    %cst_31 = arith.constant dense<0.000000e+00> : vector<32x256xf32>
    %31 = tpu.matmul %30, %28, %cst_31 {dimension_numbers = #tpu.dot_dimension_numbers<[1], [0], [0], [1], [0, 0, 1, 1], [], []>} : vector<32x8xbf16>, vector<8x256xbf16>, vector<32x256xf32> -> vector<32x256xf32>
    %32 = arith.addf %14, %31 : vector<32x256xf32>
    %c0_32 = arith.constant 0 : index
    %c0_33 = arith.constant 0 : index
    %c32 = arith.constant 32 : index
    %33 = vector.load %arg2[%c0_32, %c0_33, %c32] : memref<1x8x290xbf16, #tpu.memory_space<vmem>>, vector<1x8x256xbf16>
    %34 = vector.shape_cast %33 : vector<1x8x256xbf16> to vector<8x256xbf16>
    %c6 = arith.constant 6 : index
    %c0_34 = arith.constant 0 : index
    %c0_35 = arith.constant 0 : index
    %35 = vector.load %arg3[%c6, %c0_34, %c0_35] : memref<9x32x8xbf16, #tpu.memory_space<vmem>>, vector<1x32x8xbf16>
    %36 = vector.shape_cast %35 : vector<1x32x8xbf16> to vector<32x8xbf16>
    %cst_36 = arith.constant dense<0.000000e+00> : vector<32x256xf32>
    %37 = tpu.matmul %36, %34, %cst_36 {dimension_numbers = #tpu.dot_dimension_numbers<[1], [0], [0], [1], [0, 0, 1, 1], [], []>} : vector<32x8xbf16>, vector<8x256xbf16>, vector<32x256xf32> -> vector<32x256xf32>
    %38 = arith.addf %20, %37 : vector<32x256xf32>
    %c0_37 = arith.constant 0 : index
    %c0_38 = arith.constant 0 : index
    %c33 = arith.constant 33 : index
    %39 = vector.load %arg2[%c0_37, %c0_38, %c33] : memref<1x8x290xbf16, #tpu.memory_space<vmem>>, vector<1x8x256xbf16>
    %40 = vector.shape_cast %39 : vector<1x8x256xbf16> to vector<8x256xbf16>
    %c7 = arith.constant 7 : index
    %c0_39 = arith.constant 0 : index
    %c0_40 = arith.constant 0 : index
    %41 = vector.load %arg3[%c7, %c0_39, %c0_40] : memref<9x32x8xbf16, #tpu.memory_space<vmem>>, vector<1x32x8xbf16>
    %42 = vector.shape_cast %41 : vector<1x32x8xbf16> to vector<32x8xbf16>
    %cst_41 = arith.constant dense<0.000000e+00> : vector<32x256xf32>
    %43 = tpu.matmul %42, %40, %cst_41 {dimension_numbers = #tpu.dot_dimension_numbers<[1], [0], [0], [1], [0, 0, 1, 1], [], []>} : vector<32x8xbf16>, vector<8x256xbf16>, vector<32x256xf32> -> vector<32x256xf32>
    %44 = arith.addf %26, %43 : vector<32x256xf32>
    %c0_42 = arith.constant 0 : index
    %c0_43 = arith.constant 0 : index
    %c34 = arith.constant 34 : index
    %45 = vector.load %arg2[%c0_42, %c0_43, %c34] : memref<1x8x290xbf16, #tpu.memory_space<vmem>>, vector<1x8x256xbf16>
    %46 = vector.shape_cast %45 : vector<1x8x256xbf16> to vector<8x256xbf16>
    %c8 = arith.constant 8 : index
    %c0_44 = arith.constant 0 : index
    %c0_45 = arith.constant 0 : index
    %47 = vector.load %arg3[%c8, %c0_44, %c0_45] : memref<9x32x8xbf16, #tpu.memory_space<vmem>>, vector<1x32x8xbf16>
    %48 = vector.shape_cast %47 : vector<1x32x8xbf16> to vector<32x8xbf16>
    %cst_46 = arith.constant dense<0.000000e+00> : vector<32x256xf32>
    %49 = tpu.matmul %48, %46, %cst_46 {dimension_numbers = #tpu.dot_dimension_numbers<[1], [0], [0], [1], [0, 0, 1, 1], [], []>} : vector<32x8xbf16>, vector<8x256xbf16>, vector<32x256xf32> -> vector<32x256xf32>
    %50 = arith.addf %32, %49 : vector<32x256xf32>
    %c0_47 = arith.constant 0 : index
    %c0_48 = arith.constant 0 : index
    %c0_49 = arith.constant 0 : index
    %51 = vector.load %arg5[%c0_47, %c0_48, %c0_49] : memref<2x1x256xf32, #tpu.memory_space<vmem>>, vector<1x1x256xf32>
    %52 = vector.shape_cast %51 : vector<1x1x256xf32> to vector<1x256xf32>
    %53 = vector.broadcast %52 : vector<1x256xf32> to vector<32x256xf32>
    %54 = arith.mulf %38, %53 : vector<32x256xf32>
    %55 = arith.addf %44, %54 : vector<32x256xf32>
    %c1_50 = arith.constant 1 : index
    %c0_51 = arith.constant 0 : index
    %c0_52 = arith.constant 0 : index
    %56 = vector.load %arg5[%c1_50, %c0_51, %c0_52] : memref<2x1x256xf32, #tpu.memory_space<vmem>>, vector<1x1x256xf32>
    %57 = vector.shape_cast %56 : vector<1x1x256xf32> to vector<1x256xf32>
    %58 = vector.broadcast %57 : vector<1x256xf32> to vector<32x256xf32>
    %59 = arith.mulf %50, %58 : vector<32x256xf32>
    %60 = arith.addf %55, %59 : vector<32x256xf32>
    %c0_53 = arith.constant 0 : index
    %c0_54 = arith.constant 0 : index
    %61 = vector.load %arg4[%c0_53, %c0_54] : memref<32x1xf32, #tpu.memory_space<vmem>>, vector<32x1xf32>
    %62 = vector.broadcast %61 : vector<32x1xf32> to vector<32x256xf32>
    %63 = arith.addf %60, %62 : vector<32x256xf32>
    %cst_55 = arith.constant 0.000000e+00 : f32
    %64 = vector.broadcast %cst_55 : f32 to vector<32x256xf32>
    %65 = arith.maximumf %63, %64 : vector<32x256xf32>
    %66 = arith.truncf %65 : vector<32x256xf32> to vector<32x256xbf16>
    %c0_56 = arith.constant 0 : index
    %c0_57 = arith.constant 0 : index
    %c0_58 = arith.constant 0 : index
    %67 = vector.load %arg6[%c0_56, %c0_57, %c0_58] : memref<1x32x256xbf16, #tpu.memory_space<vmem>>, vector<1x32x256xbf16>
    %68 = vector.shape_cast %67 : vector<1x32x256xbf16> to vector<32x256xbf16>
    %69 = vector.shape_cast %66 : vector<32x256xbf16> to vector<1x32x256xbf16>
    tpu.vector_store %arg6[%c0_56, %c0_57, %c0_58], %69 {strides = array<i32>} : memref<1x32x256xbf16, #tpu.memory_space<vmem>>, vector<1x32x256xbf16>,
    return
  }
  func.func @transform_0(%arg0: i32, %arg1: i32) -> (i32, i32, i32) {
    %c0_i32 = arith.constant 0 : i32
    %c0_i32_0 = arith.constant 0 : i32
    %c0_i32_1 = arith.constant 0 : i32
    return %arg0, %c0_i32, %c0_i32_0 : i32, i32, i32
  }
  func.func @transform_1(%arg0: i32, %arg1: i32) -> (i32, i32, i32) {
    %c0_i32 = arith.constant 0 : i32
    %c0_i32_0 = arith.constant 0 : i32
    %c0_i32_1 = arith.constant 0 : i32
    return %c0_i32, %arg1, %c0_i32_0 : i32, i32, i32
  }
  func.func @transform_2(%arg0: i32, %arg1: i32) -> (i32, i32) {
    %c0_i32 = arith.constant 0 : i32
    %c0_i32_0 = arith.constant 0 : i32
    return %arg1, %c0_i32 : i32, i32
  }
  func.func @transform_3(%arg0: i32, %arg1: i32) -> (i32, i32, i32) {
    %c0_i32 = arith.constant 0 : i32
    %c0_i32_0 = arith.constant 0 : i32
    %c0_i32_1 = arith.constant 0 : i32
    %c0_i32_2 = arith.constant 0 : i32
    return %c0_i32, %c0_i32_0, %c0_i32_1 : i32, i32, i32
  }
  func.func @transform_4(%arg0: i32, %arg1: i32) -> (i32, i32, i32) {
    %c0_i32 = arith.constant 0 : i32
    %c0_i32_0 = arith.constant 0 : i32
    return %arg0, %arg1, %c0_i32 : i32, i32, i32
  }
}

module attributes {stable_mosaic.version = 11 : i64} {
  func.func @_conv3x3_kernel(%arg0: i32, %arg1: i32, %arg2: memref<1x32x290xbf16, #tpu.memory_space<vmem>>, %arg3: memref<9x32x32xbf16, #tpu.memory_space<vmem>>, %arg4: memref<32x1xf32, #tpu.memory_space<vmem>>, %arg5: memref<2x1x256xf32, #tpu.memory_space<vmem>>, %arg6: memref<1x32x256xbf16, #tpu.memory_space<vmem>>) attributes {dimension_semantics = [#tpu.dimension_semantics<parallel>, #tpu.dimension_semantics<parallel>], iteration_bounds = array<i64: 2, 1>, scalar_prefetch = 0 : i64, scratch_operands = 0 : i64, tpu.core_type = #tpu.core_type<tc>, window_params = [{transform_indices = @transform_0, window_bounds = array<i64: 1, 32, 290>}, {transform_indices = @transform_1, window_bounds = array<i64: 9, 32, 32>}, {transform_indices = @transform_2, window_bounds = array<i64: 32, 1>}, {pipeline_mode = #tpu.pipeline_mode<synchronous>, transform_indices = @transform_3, window_bounds = array<i64: 2, 1, 256>}, {transform_indices = @transform_4, window_bounds = array<i64: 1, 32, 256>}]} {
    %c0 = arith.constant 0 : index
    %c0_0 = arith.constant 0 : index
    %c0_1 = arith.constant 0 : index
    %0 = vector.load %arg2[%c0, %c0_0, %c0_1] : memref<1x32x290xbf16, #tpu.memory_space<vmem>>, vector<1x32x256xbf16>
    %1 = vector.shape_cast %0 : vector<1x32x256xbf16> to vector<32x256xbf16>
    %c0_2 = arith.constant 0 : index
    %c0_3 = arith.constant 0 : index
    %c0_4 = arith.constant 0 : index
    %2 = vector.load %arg3[%c0_2, %c0_3, %c0_4] : memref<9x32x32xbf16, #tpu.memory_space<vmem>>, vector<1x32x32xbf16>
    %3 = vector.shape_cast %2 : vector<1x32x32xbf16> to vector<32x32xbf16>
    %cst = arith.constant dense<0.000000e+00> : vector<32x256xf32>
    %4 = tpu.matmul %3, %1, %cst {dimension_numbers = #tpu.dot_dimension_numbers<[1], [0], [0], [1], [0, 0, 1, 1], [], []>} : vector<32x32xbf16>, vector<32x256xbf16>, vector<32x256xf32> -> vector<32x256xf32>
    %c0_5 = arith.constant 0 : index
    %c0_6 = arith.constant 0 : index
    %c1 = arith.constant 1 : index
    %5 = vector.load %arg2[%c0_5, %c0_6, %c1] : memref<1x32x290xbf16, #tpu.memory_space<vmem>>, vector<1x32x256xbf16>
    %6 = vector.shape_cast %5 : vector<1x32x256xbf16> to vector<32x256xbf16>
    %c1_7 = arith.constant 1 : index
    %c0_8 = arith.constant 0 : index
    %c0_9 = arith.constant 0 : index
    %7 = vector.load %arg3[%c1_7, %c0_8, %c0_9] : memref<9x32x32xbf16, #tpu.memory_space<vmem>>, vector<1x32x32xbf16>
    %8 = vector.shape_cast %7 : vector<1x32x32xbf16> to vector<32x32xbf16>
    %cst_10 = arith.constant dense<0.000000e+00> : vector<32x256xf32>
    %9 = tpu.matmul %8, %6, %cst_10 {dimension_numbers = #tpu.dot_dimension_numbers<[1], [0], [0], [1], [0, 0, 1, 1], [], []>} : vector<32x32xbf16>, vector<32x256xbf16>, vector<32x256xf32> -> vector<32x256xf32>
    %c0_11 = arith.constant 0 : index
    %c0_12 = arith.constant 0 : index
    %c2 = arith.constant 2 : index
    %10 = vector.load %arg2[%c0_11, %c0_12, %c2] : memref<1x32x290xbf16, #tpu.memory_space<vmem>>, vector<1x32x256xbf16>
    %11 = vector.shape_cast %10 : vector<1x32x256xbf16> to vector<32x256xbf16>
    %c2_13 = arith.constant 2 : index
    %c0_14 = arith.constant 0 : index
    %c0_15 = arith.constant 0 : index
    %12 = vector.load %arg3[%c2_13, %c0_14, %c0_15] : memref<9x32x32xbf16, #tpu.memory_space<vmem>>, vector<1x32x32xbf16>
    %13 = vector.shape_cast %12 : vector<1x32x32xbf16> to vector<32x32xbf16>
    %cst_16 = arith.constant dense<0.000000e+00> : vector<32x256xf32>
    %14 = tpu.matmul %13, %11, %cst_16 {dimension_numbers = #tpu.dot_dimension_numbers<[1], [0], [0], [1], [0, 0, 1, 1], [], []>} : vector<32x32xbf16>, vector<32x256xbf16>, vector<32x256xf32> -> vector<32x256xf32>
    %c0_17 = arith.constant 0 : index
    %c0_18 = arith.constant 0 : index
    %c16 = arith.constant 16 : index
    %15 = vector.load %arg2[%c0_17, %c0_18, %c16] : memref<1x32x290xbf16, #tpu.memory_space<vmem>>, vector<1x32x256xbf16>
    %16 = vector.shape_cast %15 : vector<1x32x256xbf16> to vector<32x256xbf16>
    %c3 = arith.constant 3 : index
    %c0_19 = arith.constant 0 : index
    %c0_20 = arith.constant 0 : index
    %17 = vector.load %arg3[%c3, %c0_19, %c0_20] : memref<9x32x32xbf16, #tpu.memory_space<vmem>>, vector<1x32x32xbf16>
    %18 = vector.shape_cast %17 : vector<1x32x32xbf16> to vector<32x32xbf16>
    %cst_21 = arith.constant dense<0.000000e+00> : vector<32x256xf32>
    %19 = tpu.matmul %18, %16, %cst_21 {dimension_numbers = #tpu.dot_dimension_numbers<[1], [0], [0], [1], [0, 0, 1, 1], [], []>} : vector<32x32xbf16>, vector<32x256xbf16>, vector<32x256xf32> -> vector<32x256xf32>
    %20 = arith.addf %4, %19 : vector<32x256xf32>
    %c0_22 = arith.constant 0 : index
    %c0_23 = arith.constant 0 : index
    %c17 = arith.constant 17 : index
    %21 = vector.load %arg2[%c0_22, %c0_23, %c17] : memref<1x32x290xbf16, #tpu.memory_space<vmem>>, vector<1x32x256xbf16>
    %22 = vector.shape_cast %21 : vector<1x32x256xbf16> to vector<32x256xbf16>
    %c4 = arith.constant 4 : index
    %c0_24 = arith.constant 0 : index
    %c0_25 = arith.constant 0 : index
    %23 = vector.load %arg3[%c4, %c0_24, %c0_25] : memref<9x32x32xbf16, #tpu.memory_space<vmem>>, vector<1x32x32xbf16>
    %24 = vector.shape_cast %23 : vector<1x32x32xbf16> to vector<32x32xbf16>
    %cst_26 = arith.constant dense<0.000000e+00> : vector<32x256xf32>
    %25 = tpu.matmul %24, %22, %cst_26 {dimension_numbers = #tpu.dot_dimension_numbers<[1], [0], [0], [1], [0, 0, 1, 1], [], []>} : vector<32x32xbf16>, vector<32x256xbf16>, vector<32x256xf32> -> vector<32x256xf32>
    %26 = arith.addf %9, %25 : vector<32x256xf32>
    %c0_27 = arith.constant 0 : index
    %c0_28 = arith.constant 0 : index
    %c18 = arith.constant 18 : index
    %27 = vector.load %arg2[%c0_27, %c0_28, %c18] : memref<1x32x290xbf16, #tpu.memory_space<vmem>>, vector<1x32x256xbf16>
    %28 = vector.shape_cast %27 : vector<1x32x256xbf16> to vector<32x256xbf16>
    %c5 = arith.constant 5 : index
    %c0_29 = arith.constant 0 : index
    %c0_30 = arith.constant 0 : index
    %29 = vector.load %arg3[%c5, %c0_29, %c0_30] : memref<9x32x32xbf16, #tpu.memory_space<vmem>>, vector<1x32x32xbf16>
    %30 = vector.shape_cast %29 : vector<1x32x32xbf16> to vector<32x32xbf16>
    %cst_31 = arith.constant dense<0.000000e+00> : vector<32x256xf32>
    %31 = tpu.matmul %30, %28, %cst_31 {dimension_numbers = #tpu.dot_dimension_numbers<[1], [0], [0], [1], [0, 0, 1, 1], [], []>} : vector<32x32xbf16>, vector<32x256xbf16>, vector<32x256xf32> -> vector<32x256xf32>
    %32 = arith.addf %14, %31 : vector<32x256xf32>
    %c0_32 = arith.constant 0 : index
    %c0_33 = arith.constant 0 : index
    %c32 = arith.constant 32 : index
    %33 = vector.load %arg2[%c0_32, %c0_33, %c32] : memref<1x32x290xbf16, #tpu.memory_space<vmem>>, vector<1x32x256xbf16>
    %34 = vector.shape_cast %33 : vector<1x32x256xbf16> to vector<32x256xbf16>
    %c6 = arith.constant 6 : index
    %c0_34 = arith.constant 0 : index
    %c0_35 = arith.constant 0 : index
    %35 = vector.load %arg3[%c6, %c0_34, %c0_35] : memref<9x32x32xbf16, #tpu.memory_space<vmem>>, vector<1x32x32xbf16>
    %36 = vector.shape_cast %35 : vector<1x32x32xbf16> to vector<32x32xbf16>
    %cst_36 = arith.constant dense<0.000000e+00> : vector<32x256xf32>
    %37 = tpu.matmul %36, %34, %cst_36 {dimension_numbers = #tpu.dot_dimension_numbers<[1], [0], [0], [1], [0, 0, 1, 1], [], []>} : vector<32x32xbf16>, vector<32x256xbf16>, vector<32x256xf32> -> vector<32x256xf32>
    %38 = arith.addf %20, %37 : vector<32x256xf32>
    %c0_37 = arith.constant 0 : index
    %c0_38 = arith.constant 0 : index
    %c33 = arith.constant 33 : index
    %39 = vector.load %arg2[%c0_37, %c0_38, %c33] : memref<1x32x290xbf16, #tpu.memory_space<vmem>>, vector<1x32x256xbf16>
    %40 = vector.shape_cast %39 : vector<1x32x256xbf16> to vector<32x256xbf16>
    %c7 = arith.constant 7 : index
    %c0_39 = arith.constant 0 : index
    %c0_40 = arith.constant 0 : index
    %41 = vector.load %arg3[%c7, %c0_39, %c0_40] : memref<9x32x32xbf16, #tpu.memory_space<vmem>>, vector<1x32x32xbf16>
    %42 = vector.shape_cast %41 : vector<1x32x32xbf16> to vector<32x32xbf16>
    %cst_41 = arith.constant dense<0.000000e+00> : vector<32x256xf32>
    %43 = tpu.matmul %42, %40, %cst_41 {dimension_numbers = #tpu.dot_dimension_numbers<[1], [0], [0], [1], [0, 0, 1, 1], [], []>} : vector<32x32xbf16>, vector<32x256xbf16>, vector<32x256xf32> -> vector<32x256xf32>
    %44 = arith.addf %26, %43 : vector<32x256xf32>
    %c0_42 = arith.constant 0 : index
    %c0_43 = arith.constant 0 : index
    %c34 = arith.constant 34 : index
    %45 = vector.load %arg2[%c0_42, %c0_43, %c34] : memref<1x32x290xbf16, #tpu.memory_space<vmem>>, vector<1x32x256xbf16>
    %46 = vector.shape_cast %45 : vector<1x32x256xbf16> to vector<32x256xbf16>
    %c8 = arith.constant 8 : index
    %c0_44 = arith.constant 0 : index
    %c0_45 = arith.constant 0 : index
    %47 = vector.load %arg3[%c8, %c0_44, %c0_45] : memref<9x32x32xbf16, #tpu.memory_space<vmem>>, vector<1x32x32xbf16>
    %48 = vector.shape_cast %47 : vector<1x32x32xbf16> to vector<32x32xbf16>
    %cst_46 = arith.constant dense<0.000000e+00> : vector<32x256xf32>
    %49 = tpu.matmul %48, %46, %cst_46 {dimension_numbers = #tpu.dot_dimension_numbers<[1], [0], [0], [1], [0, 0, 1, 1], [], []>} : vector<32x32xbf16>, vector<32x256xbf16>, vector<32x256xf32> -> vector<32x256xf32>
    %50 = arith.addf %32, %49 : vector<32x256xf32>
    %c0_47 = arith.constant 0 : index
    %c0_48 = arith.constant 0 : index
    %c0_49 = arith.constant 0 : index
    %51 = vector.load %arg5[%c0_47, %c0_48, %c0_49] : memref<2x1x256xf32, #tpu.memory_space<vmem>>, vector<1x1x256xf32>
    %52 = vector.shape_cast %51 : vector<1x1x256xf32> to vector<1x256xf32>
    %53 = vector.broadcast %52 : vector<1x256xf32> to vector<32x256xf32>
    %54 = arith.mulf %38, %53 : vector<32x256xf32>
    %55 = arith.addf %44, %54 : vector<32x256xf32>
    %c1_50 = arith.constant 1 : index
    %c0_51 = arith.constant 0 : index
    %c0_52 = arith.constant 0 : index
    %56 = vector.load %arg5[%c1_50, %c0_51, %c0_52] : memref<2x1x256xf32, #tpu.memory_space<vmem>>, vector<1x1x256xf32>
    %57 = vector.shape_cast %56 : vector<1x1x256xf32> to vector<1x256xf32>
    %58 = vector.broadcast %57 : vector<1x256xf32> to vector<32x256xf32>
    %59 = arith.mulf %50, %58 : vector<32x256xf32>
    %60 = arith.addf %55, %59 : vector<32x256xf32>
    %c0_53 = arith.constant 0 : index
    %c0_54 = arith.constant 0 : index
    %61 = vector.load %arg4[%c0_53, %c0_54] : memref<32x1xf32, #tpu.memory_space<vmem>>, vector<32x1xf32>
    %62 = vector.broadcast %61 : vector<32x1xf32> to vector<32x256xf32>
    %63 = arith.addf %60, %62 : vector<32x256xf32>
    %cst_55 = arith.constant 0.000000e+00 : f32
    %64 = vector.broadcast %cst_55 : f32 to vector<32x256xf32>
    %65 = arith.maximumf %63, %64 : vector<32x256xf32>
    %66 = arith.truncf %65 : vector<32x256xf32> to vector<32x256xbf16>
    %c0_56 = arith.constant 0 : index
    %c0_57 = arith.constant 0 : index
    %c0_58 = arith.constant 0 : index
    %67 = vector.load %arg6[%c0_56, %c0_57, %c0_58] : memref<1x32x256xbf16, #tpu.memory_space<vmem>>, vector<1x32x256xbf16>
    %68 = vector.shape_cast %67 : vector<1x32x256xbf16> to vector<32x256xbf16>
    %69 = vector.shape_cast %66 : vector<32x256xbf16> to vector<1x32x256xbf16>
    tpu.vector_store %arg6[%c0_56, %c0_57, %c0_58], %69 {strides = array<i32>} : memref<1x32x256xbf16, #tpu.memory_space<vmem>>, vector<1x32x256xbf16>,
    return
  }
  func.func @transform_0(%arg0: i32, %arg1: i32) -> (i32, i32, i32) {
    %c0_i32 = arith.constant 0 : i32
    %c0_i32_0 = arith.constant 0 : i32
    %c0_i32_1 = arith.constant 0 : i32
    return %arg0, %c0_i32, %c0_i32_0 : i32, i32, i32
  }
  func.func @transform_1(%arg0: i32, %arg1: i32) -> (i32, i32, i32) {
    %c0_i32 = arith.constant 0 : i32
    %c0_i32_0 = arith.constant 0 : i32
    %c0_i32_1 = arith.constant 0 : i32
    return %c0_i32, %arg1, %c0_i32_0 : i32, i32, i32
  }
  func.func @transform_2(%arg0: i32, %arg1: i32) -> (i32, i32) {
    %c0_i32 = arith.constant 0 : i32
    %c0_i32_0 = arith.constant 0 : i32
    return %arg1, %c0_i32 : i32, i32
  }
  func.func @transform_3(%arg0: i32, %arg1: i32) -> (i32, i32, i32) {
    %c0_i32 = arith.constant 0 : i32
    %c0_i32_0 = arith.constant 0 : i32
    %c0_i32_1 = arith.constant 0 : i32
    %c0_i32_2 = arith.constant 0 : i32
    return %c0_i32, %c0_i32_0, %c0_i32_1 : i32, i32, i32
  }
  func.func @transform_4(%arg0: i32, %arg1: i32) -> (i32, i32, i32) {
    %c0_i32 = arith.constant 0 : i32
    %c0_i32_0 = arith.constant 0 : i32
    return %arg0, %arg1, %c0_i32 : i32, i32, i32
  }
}

module attributes {stable_mosaic.version = 11 : i64} {
  func.func @_mm_res_kernel(%arg0: i32, %arg1: i32, %arg2: i32, %arg3: memref<8x32xbf16, #tpu.memory_space<vmem>>, %arg4: memref<1x32x256xbf16, #tpu.memory_space<vmem>>, %arg5: memref<8x1xf32, #tpu.memory_space<vmem>>, %arg6: memref<1x8x256xf32, #tpu.memory_space<vmem>>, %arg7: memref<1x8x256xf32, #tpu.memory_space<vmem>>) attributes {dimension_semantics = [#tpu.dimension_semantics<parallel>, #tpu.dimension_semantics<parallel>, #tpu.dimension_semantics<parallel>], iteration_bounds = array<i64: 2, 1, 1>, scalar_prefetch = 0 : i64, scratch_operands = 0 : i64, tpu.core_type = #tpu.core_type<tc>, window_params = [{transform_indices = @transform_0, window_bounds = array<i64: 8, 32>}, {transform_indices = @transform_1, window_bounds = array<i64: 1, 32, 256>}, {transform_indices = @transform_2, window_bounds = array<i64: 8, 1>}, {transform_indices = @transform_3, window_bounds = array<i64: 1, 8, 256>}, {transform_indices = @transform_4, window_bounds = array<i64: 1, 8, 256>}]} {
    %c0 = arith.constant 0 : index
    %c0_0 = arith.constant 0 : index
    %0 = vector.load %arg3[%c0, %c0_0] : memref<8x32xbf16, #tpu.memory_space<vmem>>, vector<8x32xbf16>
    %c0_1 = arith.constant 0 : index
    %c0_2 = arith.constant 0 : index
    %c0_3 = arith.constant 0 : index
    %1 = vector.load %arg4[%c0_1, %c0_2, %c0_3] : memref<1x32x256xbf16, #tpu.memory_space<vmem>>, vector<1x32x256xbf16>
    %2 = vector.shape_cast %1 : vector<1x32x256xbf16> to vector<32x256xbf16>
    %cst = arith.constant dense<0.000000e+00> : vector<8x256xf32>
    %3 = tpu.matmul %0, %2, %cst {dimension_numbers = #tpu.dot_dimension_numbers<[1], [0], [0], [1], [0, 0, 1, 1], [], []>} : vector<8x32xbf16>, vector<32x256xbf16>, vector<8x256xf32> -> vector<8x256xf32>
    %c0_4 = arith.constant 0 : index
    %c0_5 = arith.constant 0 : index
    %4 = vector.load %arg5[%c0_4, %c0_5] : memref<8x1xf32, #tpu.memory_space<vmem>>, vector<8x1xf32>
    %5 = vector.broadcast %4 : vector<8x1xf32> to vector<8x256xf32>
    %6 = arith.addf %3, %5 : vector<8x256xf32>
    %c0_6 = arith.constant 0 : index
    %c0_7 = arith.constant 0 : index
    %c0_8 = arith.constant 0 : index
    %7 = vector.load %arg6[%c0_6, %c0_7, %c0_8] : memref<1x8x256xf32, #tpu.memory_space<vmem>>, vector<1x8x256xf32>
    %8 = vector.shape_cast %7 : vector<1x8x256xf32> to vector<8x256xf32>
    %9 = arith.addf %6, %8 : vector<8x256xf32>
    %c0_9 = arith.constant 0 : index
    %c0_10 = arith.constant 0 : index
    %c0_11 = arith.constant 0 : index
    %10 = vector.load %arg7[%c0_9, %c0_10, %c0_11] : memref<1x8x256xf32, #tpu.memory_space<vmem>>, vector<1x8x256xf32>
    %11 = vector.shape_cast %10 : vector<1x8x256xf32> to vector<8x256xf32>
    %12 = vector.shape_cast %9 : vector<8x256xf32> to vector<1x8x256xf32>
    tpu.vector_store %arg7[%c0_9, %c0_10, %c0_11], %12 {strides = array<i32>} : memref<1x8x256xf32, #tpu.memory_space<vmem>>, vector<1x8x256xf32>,
    return
  }
  func.func @transform_0(%arg0: i32, %arg1: i32, %arg2: i32) -> (i32, i32) {
    %c0_i32 = arith.constant 0 : i32
    %c0_i32_0 = arith.constant 0 : i32
    return %arg1, %c0_i32 : i32, i32
  }
  func.func @transform_1(%arg0: i32, %arg1: i32, %arg2: i32) -> (i32, i32, i32) {
    %c0_i32 = arith.constant 0 : i32
    %c0_i32_0 = arith.constant 0 : i32
    return %arg0, %c0_i32, %arg2 : i32, i32, i32
  }
  func.func @transform_2(%arg0: i32, %arg1: i32, %arg2: i32) -> (i32, i32) {
    %c0_i32 = arith.constant 0 : i32
    %c0_i32_0 = arith.constant 0 : i32
    return %arg1, %c0_i32 : i32, i32
  }
  func.func @transform_3(%arg0: i32, %arg1: i32, %arg2: i32) -> (i32, i32, i32) {
    %c0_i32 = arith.constant 0 : i32
    return %arg0, %arg1, %arg2 : i32, i32, i32
  }
  func.func @transform_4(%arg0: i32, %arg1: i32, %arg2: i32) -> (i32, i32, i32) {
    %c0_i32 = arith.constant 0 : i32
    return %arg0, %arg1, %arg2 : i32, i32, i32
  }
}

</mosaic_0001>

<bundles_post_ra>
// kernel: self_attention_pallas.7
= control target key start
LH: loop header
LB: loop body
LE: loop exit
PB: predicated region body
PF: predicated region fallthrough
CT: control target
= control target key end

     0   :  { %s1143_s27 = smov 0   ;;  %s1145_s28 = smov 0   ;;  %s1230_s0 = inlined_call_operand.vmem [shape: bf16[48,8], index: 0, kind: input, shape index: {}]   ;;  %s1231_s1 = inlined_call_operand.vmem [shape: f32[2,8,256], index: 1, kind: input, shape index: {}]   ;;  %s1232_s2 = inlined_call_operand.vmem [shape: f32[48,1], index: 2, kind: input, shape index: {}]   ;;  %s1233_s3 = inlined_call_operand.vmem [shape: bf16[2,8,256], index: 3, kind: output, shape index: {0}]   ;;  %s1234_s4 = inlined_call_operand.vmem [shape: bf16[2,8,256], index: 4, kind: output, shape index: {1}]   ;;  %s1235_s5 = inlined_call_operand.vmem [shape: bf16[2,8,256], index: 5, kind: output, shape index: {2}]   ;;  %s1236_s6 = inlined_call_operand.vmem [shape: bf16[2,8,256], index: 6, kind: output, shape index: {3}]   ;;  %s1237_s7 = inlined_call_operand.vmem [shape: bf16[2,8,256], index: 7, kind: output, shape index: {4}]   ;;  %s1238_s8 = inlined_call_operand.vmem [shape: bf16[2,8,256], index: 8, kind: output, shape index: {5}]  }
   0x1   :  { %s1147_s29 = smov 0  }
   0x2 LB: > { %s31_s30 = sadd.s32 1, %s1091_s28  ;;  %p998_p0 = scmp.ge.s32.totalorder %s1095_s29, 1  ;;  %s1095_s29 = sphi %s1147_s29, %s19_s29   ;;  %s1091_s28 = sphi %s1145_s28, %s1240_s28   ;;  %s1087_s27 = sphi %s1143_s27, %s1239_s27  }
   0x3   : > { %p33_p1 = scmp.ge.s32.totalorder %s31_s30, 2  ;;  %p304_p2 = scmp.lt.s32.totalorder %s1095_s29, 3 }
   0x5   : > { %s1242_s30 = smov (%p33_p1, %s31_s30), 0  ;;  %p305_p3 = pnand %p998_p0, %p304_p2 }
   0x6   : > { %p392_p4 = scmp.lt.s32.totalorder (!%p305_p3), %s1087_s27, 1  ;;  %v1097_v0 = vmov (!%p305_p3), 0   ;;  %v474_v1 = vld [vmem:[%s1232_s2 + $0x10] sm:$0xff] (!%p305_p3)  ;;  %v472_v2 = vld [vmem:[%s1232_s2] sm:$0xff] (!%p305_p3)  ;;  %v475_v3 = vld [vmem:[%s1232_s2 + $0x18] sm:$0xff] (!%p305_p3)  ;;  %vm533_vm0 = vcmask (!%p305_p3), 1043456  }
   0x7   : > { %308 = sbr.rel (%p305_p3) target bundleno = 252 (0xfc), region = 32  ;;  %572 = vmatprep.mubr.bf16.mxu0 (!%p305_p3), %v1097_v0  ;;  %582 = vmatprep.mubr.bf16.mxu1 (!%p305_p3), %v1097_v0  ;;  %v473_v4 = vld [vmem:[%s1232_s2 + $0x8] sm:$0xff] (!%p305_p3)  ;;  %v1070_v9 = vld [vmem:[%s1230_s0] sm:$0xff] (!%p305_p3)   ;;  %vm523_vm1 = vcmask (!%p305_p3), 64512   ;;  %v1072_v14 = vld [vmem:[%s1230_s0 + $0x10] sm:$0xff] (!%p305_p3)  }
   0x8   : > { %1069 = vset.pattern.permute.xlu1 (!%p305_p3), %v1097_v0  ;;  %1068 = vset.pattern.permute.xlu0 (!%p305_p3), %v1097_v0  ;;  %v1071_v11 = vld [vmem:[%s1230_s0 + $0x8] sm:$0xff] (!%p305_p3)   ;;  %v476_v13 = vld [vmem:[%s1232_s2 + $0x20] sm:$0xff] (!%p305_p3) }
   0x9   : > { %490 = vperm.xlu1 (!%p305_p3), %1069, %v474_v1   ;;  %480 = vperm.xlu0 (!%p305_p3), %1068, %v472_v2   ;;  %v477_v12 = vld [vmem:[%s1232_s2 + $0x28] sm:$0xff] (!%p305_p3) }
   0xd   : > { %495 = vperm.xlu1 (!%p305_p3), %1069, %v475_v3   ;;  %485 = vperm.xlu0 (!%p305_p3), %1068, %v473_v4  }
   0xe   : > { %s1244_s27 = smov (!%p392_p4, %s1087_s27), 1 }
   0xf   : > { %s1028_s13 = sshll.u32 %s1244_s27, 4 }
  0x10   : > { %s399_s16 = scalar_lea.vmem %s1231_s1, %s1028_s13  ;;  %s1195_s13 = sshll.u32 %s1244_s27, 3 }
  0x11   : > { %v469_v5 = vld [vmem:[%s399_s16 + $0x8] sm:$0xff]  ;;  %v468_v6 = vld [vmem:[%s399_s16] sm:$0xff]  ;;  %505 = vperm.xlu1 %1069, %v477_v12   ;;  %500 = vperm.xlu0 %1068, %v476_v13   ;;  %s409_s16 = scalar_lea.vmem %s1233_s3, %s1195_s13  ;;  %s429_s18 = scalar_lea.vmem %s1235_s5, %s1195_s13 }
  0x12   : > { %v471_v7 = vpack.c.bf16 %v469_v5, %v469_v5  ;;  %v470_v8 = vpack.c.bf16 %v468_v6, %v468_v6  ;;  %s419_s21 = scalar_lea.vmem %s1234_s4, %s1195_s13  ;;  %s439_s24 = scalar_lea.vmem %s1236_s6, %s1195_s13 }
  0x13   : > { %s449_s9 = scalar_lea.vmem %s1237_s7, %s1195_s13  ;;  %s459_s12 = scalar_lea.vmem %s1238_s8, %s1195_s13 }
  0x14   : > { %1016 = vmatprep.subr.msk.bf16.mxu0 %vm533_vm0, %v471_v7  ;;  %1041 = vmatprep.subr.msk.bf16.mxu1 %vm533_vm0, %v471_v7  ;;  %v535_v10 = vsel %vm533_vm0, %v470_v8, 0 }
  0x15   : > { %541 = vmatpush1.bf16.msra.mxu0 %v535_v10  ;;  %1042 = vmatpush1.bf16.msra.mxu1 %v535_v10 }
  0x18   : > { %1017 = vmatmul.mubr.msk.bf16.vlgmr.msra.gmra.mrb[0].mxu0 %vm523_vm1, %v1070_v9  ;;  %1018 = vmatmul.mubr.msk.bf16.vlgmr.msra.gmra.mrb[0].mxu1 %vm523_vm1, %v1071_v11 }
  0x19   : > { %592 = vmatprep.mubr.bf16.mxu1 %v1097_v0 }
  0x20   : > { %1019 = vmatmul.mubr.msk.bf16.gmra.mrb[4].mxu1 %vm523_vm1, %v1072_v14 }
  0x88   : > { %v491_v15 = vpop.permute.xlu1 %490  ;;  %v481_v16 = vpop.permute.xlu0 %480 }
  0x8c   : > { %v496_v17 = vpop.permute.xlu1 %495  ;;  %v486_v18 = vpop.permute.xlu0 %485 }
  0x90   : > { %v501_v39 = vpop.permute.xlu0 %500  ;;  %v506_v43 = vpop.permute.xlu1 %505 }
  0xeb   : > { %v574_v19 = vpop.f32.mrb[0].mxu0  ;;  %v584_v20 = vpop.f32.mrb[0].mxu1 }
  0xec   : > { %v575_v21 = vadd.f32 %v574_v19, %v481_v16  ;;  %v585_v22 = vadd.f32 %v584_v20, %v491_v15  ;;  %v576_v23 = vpop.f32.mrb[1].mxu0  ;;  %v586_v24 = vpop.f32.mrb[1].mxu1 }
  0xed   : > { %v577_v25 = vadd.f32 %v576_v23, %v481_v16  ;;  %v587_v26 = vadd.f32 %v586_v24, %v491_v15  ;;  %v578_v27 = vpop.f32.mrb[2].mxu0  ;;  %v588_v28 = vpop.f32.mrb[2].mxu1 }
  0xee   : > { %v579_v29 = vadd.f32 %v578_v27, %v486_v18  ;;  %v589_v30 = vadd.f32 %v588_v28, %v496_v17  ;;  %v580_v31 = vpop.f32.mrb[3].mxu0  ;;  %v590_v32 = vpop.f32.mrb[3].mxu1 }
  0xef   : > { %v1035_v33 = vpack.c.bf16 %v577_v25, %v575_v21  ;;  %v1037_v34 = vpack.c.bf16 %v587_v26, %v585_v22  ;;  %v581_v35 = vadd.f32 %v580_v31, %v486_v18  ;;  %v591_v36 = vadd.f32 %v590_v32, %v496_v17 }
  0xf1   : > { %611 = vst [vmem:[%s409_s16] sm:$0xff] %v1035_v33  ;;  %629 = vst [vmem:[%s429_s18] sm:$0xff] %v1037_v34  ;;  %v1036_v37 = vpack.c.bf16 %v581_v35, %v579_v29  ;;  %v1038_v38 = vpack.c.bf16 %v591_v36, %v589_v30 }
  0xf3   : > { %620 = vst [vmem:[%s419_s21] sm:$0xff] %v1036_v37  ;;  %638 = vst [vmem:[%s439_s24] sm:$0xff] %v1038_v38  ;;  %v594_v40 = vpop.f32.mrb[4].mxu1 }
  0xf4   : > { %v595_v41 = vadd.f32 %v594_v40, %v501_v39  ;;  %v596_v42 = vpop.f32.mrb[5].mxu1 }
  0xf5   : > { %v597_v44 = vadd.f32 %v596_v42, %v501_v39  ;;  %v598_v45 = vpop.f32.mrb[6].mxu1 }
  0xf6   : > { %v599_v46 = vadd.f32 %v598_v45, %v506_v43  ;;  %v600_v47 = vpop.f32.mrb[7].mxu1 }
  0xf7   : > { %v1039_v48 = vpack.c.bf16 %v597_v44, %v595_v41  ;;  %v601_v49 = vadd.f32 %v600_v47, %v506_v43 }
  0xf9   : > { %647 = vst [vmem:[%s449_s9] sm:$0xff] %v1039_v48  ;;  %v1040_v50 = vpack.c.bf16 %v601_v49, %v599_v46 }
  0xfb   : > { %656 = vst [vmem:[%s459_s12] sm:$0xff] %v1040_v50 }
  0xfc PF: > { %s19_s29 = sadd.s32 1, %s1095_s29   ;;  %s1239_s27 = smov %s1091_s28 }
  0xfd   : > { %p16_p5 = scmp.ge.s32.totalorder %s19_s29, 4   ;;  %s1240_s28 = smov %s1242_s30 }
  0xff   :  { %18 = sbr.rel (!%p16_p5) target bundleno = 2 (0x2), region = 122 }

// kernel: self_attention_pallas.8
= control target key start
LH: loop header
LB: loop body
LE: loop exit
PB: predicated region body
PF: predicated region fallthrough
CT: control target
= control target key end

     0   :  { %s741_s12 = smov 0   ;;  %s784_s0 = inlined_call_operand.vmem [shape: bf16[4,16,128], index: 0, kind: input, shape index: {}]   ;;  %s785_s1 = inlined_call_operand.vmem [shape: bf16[4,16,128], index: 1, kind: input, shape index: {}]   ;;  %s786_s2 = inlined_call_operand.vmem [shape: bf16[4,16,128], index: 2, kind: input, shape index: {}]   ;;  %s787_s3 = inlined_call_operand.vmem [shape: bf16[4,16,128], index: 3, kind: output, shape index: {}]  }
   0x1 LB: > { %s597_s13 = sadd.s32 4294967295, %s717_s12   ;;  %p601_p0 = scmp.ge.s32.totalorder %s717_s12, 1  ;;  %s717_s12 = sphi %s741_s12, %s13_s12  }
   0x2   : > { %p163_p1 = scmp.lt.s32.totalorder %s717_s12, 3 }
   0x4   : > { %p164_p2 = pnand %p601_p0, %p163_p1 }
   0x5   : > { %s602_s14 = sshll.u32 (!%p164_p2), %s597_s13, 1  ;;  %v719_v0 = vmov (!%p164_p2), 0.0   ;;  %vm720_vm0 = vmmov (!%p164_p2), 0   ;;  %vm348_vm1 = vcmask (!%p164_p2), 130048  }
   0x6   : > { %167 = sbr.rel (%p164_p2) target bundleno = 620 (0x26c), region = 32  ;;  %655 = vmatprep.subr.bf16.mxu0 (!%p164_p2), %v719_v0  ;;  %661 = vmatprep.subr.bf16.mxu1 (!%p164_p2), %v719_v0  ;;  %p202_p3 = scmp.lt.s32.totalorder (!%p164_p2), %s602_s14, 3 }
   0x7   : > { %657 = vmatprep.mubr.msk.bf16.mxu0 (!%p164_p2), %vm720_vm0, %v719_v0  ;;  %663 = vmatprep.mubr.msk.bf16.mxu1 (!%p164_p2), %vm720_vm0, %v719_v0 }
   0xd   : > { %s789_s14 = smov (!%p202_p3, %s602_s14), 3 }
   0xe   : > { %s751_s15 = sshll.u32 %s789_s14, 3 }
   0xf   : > { %s213_s18 = scalar_lea.vmem %s785_s1, %s751_s15  ;;  %s206_s21 = scalar_lea.vmem %s784_s0, %s751_s15 }
  0x10   : > { %v689_v1 = vld [vmem:[%s213_s18] sm:$0xff]   ;;  %v690_v2 = vld [vmem:[%s213_s18 + $0x8] sm:$0xff]   ;;  %s220_s24 = scalar_lea.vmem %s786_s2, %s751_s15  ;;  %s227_s27 = scalar_lea.vmem %s787_s3, %s751_s15 }
  0x11   : > { %656 = vmatpush3.bf16.xpose.msra.mxu0 %v689_v1  ;;  %662 = vmatpush3.bf16.xpose.msra.mxu1 %v690_v2  ;;  %v691_v3 = vld [vmem:[%s206_s21] sm:$0xff]   ;;  %v692_v4 = vld [vmem:[%s206_s21 + $0x8] sm:$0xff]  }
  0x12   : > { %667 = vmatprep.subr.bf16.mxu0 %v719_v0  ;;  %673 = vmatprep.subr.bf16.mxu1 %v719_v0  ;;  %v693_v17 = vld [vmem:[%s220_s24] sm:$0xff]   ;;  %v694_v18 = vld [vmem:[%s220_s24 + $0x8] sm:$0xff]  }
  0x18   : > { %658 = vmatmul.mubr.bf16.vlgmr.msra.gmra.mrb[0].mxu0 %v691_v3  ;;  %664 = vmatmul.mubr.bf16.vlgmr.msra.gmra.mrb[0].mxu1 %v692_v4 }
  0x19   : > { %669 = vmatprep.mubr.msk.bf16.mxu0 %vm720_vm0, %v719_v0  ;;  %675 = vmatprep.mubr.msk.bf16.mxu1 %vm720_vm0, %v719_v0 }
  0x1a   : > { %668 = vmatpush3.bf16.msra.mxu0 %v693_v17  ;;  %674 = vmatpush3.bf16.msra.mxu1 %v694_v18 }
  0xeb   : > { %v288_v5 = vpop.f32.mrb[0].mxu0  ;;  %v341_v6 = vpop.f32.mrb[0].mxu1 }
  0xec   : > { %v659_v7 = vpop.f32.mrb[1].mxu0  ;;  %v349_v8 = vsel %vm348_vm1, %v288_v5, -inf  ;;  %v665_v9 = vpop.f32.mrb[1].mxu1  ;;  %v355_v10 = vsel %vm348_vm1, %v341_v6, -inf }
  0xed   : > { %350 = vmax.xlane.f32.xlu0 %v349_v8  ;;  %v291_v11 = vpop.f32.mrb[2].mxu0  ;;  %356 = vmax.xlane.f32.xlu1 %v355_v10  ;;  %v344_v12 = vpop.f32.mrb[2].mxu1 }
  0xee   : > { %v660_v13 = vpop.f32.mrb[3].mxu0  ;;  %v666_v14 = vpop.f32.mrb[3].mxu1  ;;  %v352_v15 = vsel %vm348_vm1, %v291_v11, -inf  ;;  %v358_v16 = vsel %vm348_vm1, %v344_v12, -inf }
  0xf1   : > { %353 = vmax.xlane.f32.xlu0 %v352_v15  ;;  %359 = vmax.xlane.f32.xlu1 %v358_v16 }
 0x17a   : > { %v351_v19 = vpop.xlane.xlu0 %350  ;;  %v357_v20 = vpop.xlane.xlu1 %356 }
 0x17b   : > { %v361_v21 = vsub.f32 %v288_v5, %v351_v19  ;;  %v363_v22 = vsub.f32 %v341_v6, %v357_v20 }
 0x17d   : > { %v365_v23 = vmul.f32 1.442695, %v361_v21  ;;  %v369_v24 = vmul.f32 1.442695, %v363_v22 }
 0x17e   : > { %v354_v25 = vpop.xlane.xlu0 %353  ;;  %v360_v26 = vpop.xlane.xlu1 %359 }
 0x17f   : > { %695 = vpow2.f32 %v365_v23  ;;  %v362_v27 = vsub.f32 %v291_v11, %v354_v25  ;;  %v364_v28 = vsub.f32 %v344_v12, %v360_v26 }
 0x180   : > { %697 = vpow2.f32 %v369_v24 }
 0x181   : > { %v367_v29 = vmul.f32 1.442695, %v362_v27  ;;  %v371_v30 = vmul.f32 1.442695, %v364_v28 }
 0x183   : > { %699 = vpow2.f32 %v367_v29 }
 0x184   : > { %701 = vpow2.f32 %v371_v30 }
 0x189   : > { %v696_v31 = vpop.eup %695 }
 0x18a   : > { %v373_v32 = vsel %vm348_vm1, %v696_v31, 0.0  ;;  %v698_v33 = vpop.eup %697 }
 0x18b   : > { %374 = vadd.xlane.f32.xlu0 %v373_v32  ;;  %v379_v36 = vsel %vm348_vm1, %v698_v33, 0.0 }
 0x18d   : > { %v700_v34 = vpop.eup %699 }
 0x18e   : > { %v702_v35 = vpop.eup %701  ;;  %v376_v37 = vsel %vm348_vm1, %v700_v34, 0.0  ;;  %v389_v38 = vpack.c.bf16 %v700_v34, %v696_v31 }
 0x18f   : > { %380 = vadd.xlane.f32.xlu0 %v379_v36  ;;  %377 = vadd.xlane.f32.xlu1 %v376_v37  ;;  %v390_v39 = vpack.c.bf16 %v702_v35, %v698_v33  ;;  %v382_v40 = vsel %vm348_vm1, %v702_v35, 0.0 }
 0x190   : > { %670 = vmatmul.mubr.msk.bf16.vlgmr.msra.gmra.mrb[4].mxu0 %vm348_vm1, %v389_v38 }
 0x191   : > { %676 = vmatmul.mubr.msk.bf16.vlgmr.msra.gmra.mrb[4].mxu1 %vm348_vm1, %v390_v39 }
 0x193   : > { %383 = vadd.xlane.f32.xlu1 %v382_v40 }
 0x218   : > { %v375_v41 = vpop.xlane.xlu0 %374 }
 0x219   : > { %703 = vrcp.f32 %v375_v41 }
 0x21c   : > { %v378_v42 = vpop.xlane.xlu1 %377  ;;  %v381_v43 = vpop.xlane.xlu0 %380 }
 0x21d   : > { %705 = vrcp.f32 %v378_v42 }
 0x21e   : > { %707 = vrcp.f32 %v381_v43 }
 0x220   : > { %v384_v44 = vpop.xlane.xlu1 %383 }
 0x221   : > { %709 = vrcp.f32 %v384_v44 }
 0x223   : > { %v704_v45 = vpop.eup %703 }
 0x227   : > { %v706_v47 = vpop.eup %705 }
 0x228   : > { %v708_v50 = vpop.eup %707 }
 0x22b   : > { %v710_v53 = vpop.eup %709 }
 0x263   : > { %v434_v46 = vpop.f32.mrb[4].mxu0 }
 0x264   : > { %v484_v48 = vpop.f32.mrb[4].mxu1  ;;  %v671_v49 = vpop.f32.mrb[5].mxu0  ;;  %v491_v54 = vmul.f32 %v704_v45, %v434_v46 }
 0x265   : > { %v677_v51 = vpop.f32.mrb[5].mxu1  ;;  %v437_v52 = vpop.f32.mrb[6].mxu0  ;;  %v493_v58 = vmul.f32 %v708_v50, %v484_v48 }
 0x266   : > { %v492_v55 = vmul.f32 %v706_v47, %v437_v52  ;;  %v487_v56 = vpop.f32.mrb[6].mxu1  ;;  %v672_v57 = vpop.f32.mrb[7].mxu0 }
 0x267   : > { %v494_v59 = vmul.f32 %v710_v53, %v487_v56  ;;  %v678_v60 = vpop.f32.mrb[7].mxu1 }
 0x268   : > { %v639_v61 = vpack.c.bf16 %v492_v55, %v491_v54 }
 0x269   : > { %v644_v62 = vpack.c.bf16 %v494_v59, %v493_v58 }
 0x26a   : > { %640 = vst [vmem:[%s227_s27] sm:$0xff] %v639_v61  }
 0x26b   : > { %646 = vst [vmem:[%s227_s27 + $0x8] sm:$0xff] %v644_v62  }
 0x26c PF: > { %s13_s12 = sadd.s32 1, %s717_s12  }
 0x26d   : > { %p10_p4 = scmp.ge.s32.totalorder %s13_s12, 4  }
 0x26f   :  { %12 = sbr.rel (!%p10_p4) target bundleno = 1 (0x1), region = 68 }

// kernel: self_attention_pallas.9
= control target key start
LH: loop header
LB: loop body
LE: loop exit
PB: predicated region body
PF: predicated region fallthrough
CT: control target
= control target key end

     0   :  { %s700_s12 = smov 0   ;;  %s733_s0 = inlined_call_operand.vmem [shape: bf16[4,4,256], index: 0, kind: input, shape index: {}]   ;;  %s734_s1 = inlined_call_operand.vmem [shape: bf16[4,4,256], index: 1, kind: input, shape index: {}]   ;;  %s735_s2 = inlined_call_operand.vmem [shape: bf16[4,4,256], index: 2, kind: input, shape index: {}]   ;;  %s736_s3 = inlined_call_operand.vmem [shape: bf16[4,4,256], index: 3, kind: output, shape index: {}]  }
   0x1 LB: > { %s617_s13 = sadd.s32 4294967295, %s677_s12   ;;  %p621_p0 = scmp.ge.s32.totalorder %s677_s12, 1  ;;  %s677_s12 = sphi %s700_s12, %s13_s12  }
   0x2   : > { %p163_p1 = scmp.lt.s32.totalorder %s677_s12, 3 }
   0x4   : > { %p164_p2 = pnand %p621_p0, %p163_p1 }
   0x5   : > { %s622_s14 = sshll.u32 (!%p164_p2), %s617_s13, 1  ;;  %vm360_vm0 = vcmask (!%p164_p2), 27648   ;;  %vm396_vm1 = vcmask (!%p164_p2), 1041408   ;;  %v679_v19 = vmov (!%p164_p2), 0   ;;  %vm392_vm2 = vcmask (!%p164_p2), 31744  }
   0x6   : > { %167 = sbr.rel (%p164_p2) target bundleno = 621 (0x26d), region = 32  ;;  %p202_p3 = scmp.lt.s32.totalorder (!%p164_p2), %s622_s14, 3 }
   0xd   : > { %s738_s14 = smov (!%p202_p3, %s622_s14), 3 }
   0xe   : > { %s708_s15 = sshll.u32 %s738_s14, 2 }
   0xf   : > { %s213_s18 = scalar_lea.vmem %s734_s1, %s708_s15  ;;  %s206_s21 = scalar_lea.vmem %s733_s0, %s708_s15 }
  0x10   : > { %v635_v0 = vld.sshfl [vmem:[%s213_s18] sm:$0x33 pattern:$0x76325410]  ;;  %s220_s24 = scalar_lea.vmem %s735_s2, %s708_s15  ;;  %s227_s27 = scalar_lea.vmem %s736_s3, %s708_s15 }
  0x11   : > { %v255_v1 = vcombine.high %v635_v0, %v635_v0  ;;  %v637_v2 = vld.sshfl [vmem:[%s213_s18 + $0x4] sm:$0x33 pattern:$0x76325410] }
  0x12   : > { %v317_v3 = vcombine.high %v637_v2, %v637_v2  ;;  %v634_v4 = vld.sshfl [vmem:[%s206_s21] sm:$0x33 pattern:$0x76325410] }
  0x13   : > { %258 = vmatprep.subr.bf16.mxu0 %v255_v1  ;;  %v244_v5 = vcombine.high %v634_v4, %v634_v4  ;;  %v636_v6 = vld.sshfl [vmem:[%s206_s21 + $0x4] sm:$0x33 pattern:$0x76325410] }
  0x14   : > { %259 = vmatpush1.bf16.xpose.msra.mxu0 %v635_v0  ;;  %320 = vmatprep.subr.bf16.mxu1 %v317_v3  ;;  %v306_v7 = vcombine.high %v636_v6, %v636_v6  ;;  %v638_v18 = vld.sshfl [vmem:[%s220_s24] sm:$0x33 pattern:$0x76325410] }
  0x15   : > { %321 = vmatpush1.bf16.xpose.msra.mxu1 %v637_v2  ;;  %290 = vmatprep.mubr.bf16.mxu0 %v244_v5  ;;  %v391_v20 = vcombine.high %v638_v18, %v638_v18  ;;  %v398_v21 = vsel %vm396_vm1, %v638_v18, 0  ;;  %v641_v22 = vld.sshfl [vmem:[%s220_s24 + $0x4] sm:$0x33 pattern:$0x76325410] }
  0x16   : > { %352 = vmatprep.mubr.bf16.mxu1 %v306_v7  ;;  %v452_v23 = vcombine.high %v641_v22, %v641_v22  ;;  %v457_v24 = vsel %vm396_vm1, %v641_v22, 0 }
  0x17   : > { %639 = vmatprep.subr.msk.bf16.mxu0 %vm396_vm1, %v391_v20 }
  0x18   : > { %642 = vmatprep.subr.msk.bf16.mxu1 %vm396_vm1, %v452_v23 }
  0x1b   : > { %291 = vmatmul.mubr.bf16.vlgmr.msra.gmra.mrb[0].mxu0 %v634_v4 }
  0x1c   : > { %353 = vmatmul.mubr.bf16.vlgmr.msra.gmra.mrb[0].mxu1 %v636_v6  ;;  %435 = vmatprep.mubr.bf16.mxu0 %v679_v19 }
  0x1d   : > { %494 = vmatprep.mubr.bf16.mxu1 %v679_v19  ;;  %404 = vmatpush1.bf16.msra.mxu0 %v398_v21 }
  0x1e   : > { %463 = vmatpush1.bf16.msra.mxu1 %v457_v24 }
  0xee   : > { %v292_v8 = vpop.f32.mrb[0].mxu0 }
  0xef   : > { %v294_v9 = vpop.f32.mrb[1].mxu0  ;;  %v354_v10 = vpop.f32.mrb[0].mxu1  ;;  %v361_v11 = vsel %vm360_vm0, %v292_v8, -inf }
  0xf0   : > { %v356_v12 = vpop.f32.mrb[1].mxu1  ;;  %362 = vmax.xlane.f32.xlu0 %v361_v11  ;;  %v295_v13 = vpop.f32.mrb[2].mxu0  ;;  %v364_v16 = vsel %vm360_vm0, %v354_v10, -inf }
  0xf1   : > { %v296_v14 = vpop.f32.mrb[3].mxu0  ;;  %v357_v15 = vpop.f32.mrb[2].mxu1 }
  0xf2   : > { %v358_v17 = vpop.f32.mrb[3].mxu1 }
  0xf4   : > { %365 = vmax.xlane.f32.xlu0 %v364_v16 }
 0x17d   : > { %v363_v25 = vpop.xlane.xlu0 %362 }
 0x17e   : > { %v367_v26 = vsub.f32 %v292_v8, %v363_v25 }
 0x180   : > { %v369_v27 = vmul.f32 1.442695, %v367_v26 }
 0x181   : > { %v366_v28 = vpop.xlane.xlu0 %365 }
 0x182   : > { %663 = vpow2.f32 %v369_v27  ;;  %v368_v29 = vsub.f32 %v354_v10, %v366_v28 }
 0x184   : > { %v371_v30 = vmul.f32 1.442695, %v368_v29 }
 0x186   : > { %665 = vpow2.f32 %v371_v30 }
 0x18c   : > { %v664_v31 = vpop.eup %663 }
 0x18d   : > { %v373_v32 = vsel %vm360_vm0, %v664_v31, 0.0  ;;  %v381_v33 = vpack.c.bf16 %v664_v31, %v664_v31 }
 0x18e   : > { %374 = vadd.xlane.f32.xlu1 %v373_v32 }
 0x18f   : > { %640 = vmatmul.mubr.msk.bf16.vlgmr.msra.gmra.mrb[4].mxu0 %vm392_vm2, %v381_v33 }
 0x190   : > { %v666_v34 = vpop.eup %665 }
 0x191   : > { %v376_v35 = vsel %vm360_vm0, %v666_v34, 0.0  ;;  %v382_v36 = vpack.c.bf16 %v666_v34, %v666_v34 }
 0x192   : > { %377 = vadd.xlane.f32.xlu1 %v376_v35 }
 0x193   : > { %643 = vmatmul.mubr.msk.bf16.vlgmr.msra.gmra.mrb[4].mxu1 %vm392_vm2, %v382_v36 }
 0x21b   : > { %v375_v37 = vpop.xlane.xlu1 %374 }
 0x21c   : > { %667 = vrcp.f32 %v375_v37 }
 0x21f   : > { %v378_v38 = vpop.xlane.xlu1 %377 }
 0x220   : > { %669 = vrcp.f32 %v378_v38 }
 0x226   : > { %v668_v39 = vpop.eup %667 }
 0x22a   : > { %v670_v46 = vpop.eup %669 }
 0x262   : > { %v437_v40 = vpop.f32.mrb[4].mxu0 }
 0x263   : > { %v503_v41 = vmul.f32 %v668_v39, %v437_v40  ;;  %v439_v42 = vpop.f32.mrb[5].mxu0 }
 0x264   : > { %v504_v43 = vmul.f32 %v668_v39, %v439_v42  ;;  %v441_v44 = vpop.f32.mrb[6].mxu0 }
 0x265   : > { %v442_v45 = vpop.f32.mrb[7].mxu0 }
 0x266   : > { %v644_v47 = vpack.c.bf16 %v504_v43, %v503_v41  ;;  %v496_v48 = vpop.f32.mrb[4].mxu1 }
 0x267   : > { %v505_v49 = vmul.f32 %v670_v46, %v496_v48  ;;  %v498_v50 = vpop.f32.mrb[5].mxu1 }
 0x268   : > { %646 = vst.sshfl [vmem:[%s227_s27] sm:$0x33 pattern:$0x76325410] %v644_v47  ;;  %v506_v51 = vmul.f32 %v670_v46, %v498_v50  ;;  %v500_v52 = vpop.f32.mrb[6].mxu1 }
 0x269   : > { %v501_v53 = vpop.f32.mrb[7].mxu1 }
 0x26a   : > { %v645_v54 = vpack.c.bf16 %v506_v51, %v505_v49 }
 0x26c   : > { %647 = vst.sshfl [vmem:[%s227_s27 + $0x4] sm:$0x33 pattern:$0x76325410] %v645_v54 }
 0x26d PF: > { %s13_s12 = sadd.s32 1, %s677_s12  }
 0x26e   : > { %p10_p4 = scmp.ge.s32.totalorder %s13_s12, 4  }
 0x270   :  { %12 = sbr.rel (!%p10_p4) target bundleno = 1 (0x1), region = 68 }

// kernel: self_attention_pallas.10
= control target key start
LH: loop header
LB: loop body
LE: loop exit
PB: predicated region body
PF: predicated region fallthrough
CT: control target
= control target key end

     0   :  { %s935_s30 = smov 0   ;;  %s937_s10 = smov 0   ;;  %s1001_s0 = inlined_call_operand.vmem [shape: bf16[8,8], index: 0, kind: input, shape index: {}]   ;;  %s1002_s1 = inlined_call_operand.vmem [shape: bf16[2,8,256], index: 1, kind: input, shape index: {}]   ;;  %s1003_s2 = inlined_call_operand.vmem [shape: bf16[8,8], index: 2, kind: input, shape index: {}]   ;;  %s1004_s3 = inlined_call_operand.vmem [shape: bf16[2,8,256], index: 3, kind: input, shape index: {}]   ;;  %s1005_s4 = inlined_call_operand.vmem [shape: f32[8,1], index: 4, kind: input, shape index: {}]   ;;  %s1006_s5 = inlined_call_operand.vmem [shape: f32[2,8,256], index: 5, kind: input, shape index: {}]   ;;  %s1007_s6 = inlined_call_operand.vmem [shape: f32[8,1], index: 6, kind: input, shape index: {}]   ;;  %s1008_s7 = inlined_call_operand.vmem [shape: f32[8,1], index: 7, kind: input, shape index: {}]   ;;  %s1009_s8 = inlined_call_operand.vmem [shape: f32[2,8,256], index: 8, kind: output, shape index: {0}]   ;;  %s1010_s9 = inlined_call_operand.vmem [shape: bf16[2,8,256], index: 9, kind: output, shape index: {1}]  }
   0x1   :  { %s939_s11 = smov 0  }
   0x2 LB: > { %s32_s12 = sadd.s32 1, %s878_s10  ;;  %p801_p0 = scmp.ge.s32.totalorder %s882_s11, 1  ;;  %s882_s11 = sphi %s939_s11, %s20_s11   ;;  %s878_s10 = sphi %s937_s10, %s1012_s10   ;;  %s874_s30 = sphi %s935_s30, %s1011_s30  }
   0x3   : > { %p34_p1 = scmp.ge.s32.totalorder %s32_s12, 2  ;;  %p347_p2 = scmp.lt.s32.totalorder %s882_s11, 3 }
   0x5   : > { %s1014_s12 = smov (%p34_p1, %s32_s12), 0  ;;  %p348_p3 = pnand %p801_p0, %p347_p2 }
   0x6   : > { %p419_p4 = scmp.lt.s32.totalorder (!%p348_p3), %s874_s30, 1  ;;  %v884_v0 = vmov (!%p348_p3), 0   ;;  %v585_v1 = vld [vmem:[%s1005_s4] sm:$0xff] (!%p348_p3)  ;;  %vm482_vm0 = vcmask (!%p348_p3), 1043456   ;;  %vm478_vm1 = vcmask (!%p348_p3), 64512  }
   0x7   : > { %351 = sbr.rel (%p348_p3) target bundleno = 251 (0xfb), region = 52  ;;  %521 = vmatprep.mubr.bf16.mxu0 (!%p348_p3), %v884_v0  ;;  %576 = vmatprep.mubr.bf16.mxu1 (!%p348_p3), %v884_v0  ;;  %v607_v2 = vld [vmem:[%s1008_s7] sm:$0xff] (!%p348_p3) }
   0x8   : > { %854 = vset.pattern.permute.xlu0 (!%p348_p3), %v884_v0  ;;  %855 = vset.pattern.permute.xlu1 (!%p348_p3), %v884_v0  ;;  %v599_v3 = vld [vmem:[%s1007_s6] sm:$0xff] (!%p348_p3) }
   0x9   : > { %588 = vperm.xlu0 (!%p348_p3), %854, %v585_v1   ;;  %610 = vperm.xlu1 (!%p348_p3), %855, %v607_v2   ;;  %v471_v12 = vld [vmem:[%s1003_s2] sm:$0xf] (!%p348_p3) }
   0xa   : > { %v469_v13 = vld [vmem:[%s1001_s0] sm:$0xf] (!%p348_p3) }
   0xd   : > { %602 = vperm.xlu0 (!%p348_p3), %854, %v599_v3  }
   0xe   : > { %s1016_s30 = smov (!%p419_p4, %s874_s30), 1 }
   0xf   : > { %s962_s17 = sshll.u32 %s1016_s30, 3  ;;  %s825_s13 = sshll.u32 %s1016_s30, 4 }
  0x10   : > { %s436_s22 = scalar_lea.vmem %s1004_s3, %s962_s17  ;;  %s426_s25 = scalar_lea.vmem %s1002_s1, %s962_s17 }
  0x11   : > { %v472_v4 = vld [vmem:[%s436_s22] sm:$0xff]  ;;  %s446_s16 = scalar_lea.vmem %s1006_s5, %s825_s13  ;;  %s456_s19 = scalar_lea.vmem %s1009_s8, %s825_s13 }
  0x12   : > { %v470_v5 = vld [vmem:[%s426_s25] sm:$0xff]  ;;  %v813_v6 = vcombine.high %v472_v4, %v472_v4  ;;  %v812_v8 = vcombine.low %v472_v4, %v472_v4  ;;  %v594_v25 = vld [vmem:[%s446_s16 + $0x8] sm:$0xff]  ;;  %s466_s22 = scalar_lea.vmem %s1010_s9, %s962_s17 }
  0x13   : > { %v817_v7 = vcombine.high %v470_v5, %v470_v5  ;;  %v816_v9 = vcombine.low %v470_v5, %v470_v5  ;;  %v593_v23 = vld [vmem:[%s446_s16] sm:$0xff] }
  0x14   : > { %814 = vmatprep.subr.msk.bf16.mxu0 %vm482_vm0, %v813_v6  ;;  %v484_v10 = vsel %vm482_vm0, %v812_v8, 0 }
  0x15   : > { %818 = vmatprep.subr.msk.bf16.mxu1 %vm482_vm0, %v817_v7  ;;  %v539_v11 = vsel %vm482_vm0, %v816_v9, 0  ;;  %490 = vmatpush1.bf16.msra.mxu0 %v484_v10 }
  0x16   : > { %545 = vmatpush1.bf16.msra.mxu1 %v539_v11 }
  0x18   : > { %815 = vmatmul.mubr.msk.bf16.vlgmr.msra.gmra.mrb[0].mxu0 %vm478_vm1, %v471_v12 }
  0x19   : > { %819 = vmatmul.mubr.msk.bf16.vlgmr.msra.gmra.mrb[0].mxu1 %vm478_vm1, %v469_v13 }
  0x88   : > { %v589_v14 = vpop.permute.xlu0 %588  ;;  %v611_v32 = vpop.permute.xlu1 %610 }
  0x8c   : > { %v603_v30 = vpop.permute.xlu0 %602 }
  0xeb   : > { %v523_v15 = vpop.f32.mrb[0].mxu0 }
  0xec   : > { %v578_v16 = vpop.f32.mrb[0].mxu1  ;;  %v525_v18 = vpop.f32.mrb[1].mxu0 }
  0xed   : > { %v579_v17 = vadd.f32 %v578_v16, %v523_v15  ;;  %v580_v19 = vpop.f32.mrb[1].mxu1  ;;  %v527_v21 = vpop.f32.mrb[2].mxu0 }
  0xee   : > { %v581_v20 = vadd.f32 %v580_v19, %v525_v18  ;;  %v582_v22 = vpop.f32.mrb[2].mxu1  ;;  %v528_v26 = vpop.f32.mrb[3].mxu0 }
  0xef   : > { %v591_v24 = vadd.f32 %v589_v14, %v579_v17  ;;  %v583_v27 = vpop.f32.mrb[3].mxu1 }
  0xf0   : > { %v592_v28 = vadd.f32 %v589_v14, %v581_v20 }
  0xf1   : > { %v595_v29 = vadd.f32 %v593_v23, %v591_v24 }
  0xf2   : > { %v596_v31 = vadd.f32 %v594_v25, %v592_v28 }
  0xf3   : > { %597 = vst [vmem:[%s456_s19] sm:$0xff] %v595_v29  ;;  %v605_v33 = vmul.f32 %v603_v30, %v595_v29 }
  0xf4   : > { %598 = vst [vmem:[%s456_s19 + $0x8] sm:$0xff] %v596_v31  ;;  %v606_v34 = vmul.f32 %v603_v30, %v596_v31 }
  0xf5   : > { %v613_v35 = vadd.f32 %v611_v32, %v605_v33 }
  0xf6   : > { %v614_v36 = vadd.f32 %v611_v32, %v606_v34 }
  0xf8   : > { %v828_v37 = vpack.c.bf16 %v614_v36, %v613_v35 }
  0xfa   : > { %623 = vst [vmem:[%s466_s22] sm:$0xff] %v828_v37 }
  0xfb PF: > { %s20_s11 = sadd.s32 1, %s882_s11   ;;  %s1011_s30 = smov %s878_s10 }
  0xfc   : > { %p17_p5 = scmp.ge.s32.totalorder %s20_s11, 4   ;;  %s1012_s10 = smov %s1014_s12 }
  0xfe   :  { %19 = sbr.rel (!%p17_p5) target bundleno = 2 (0x2), region = 100 }

// kernel: self_attention_pallas.11
= control target key start
LH: loop header
LB: loop body
LE: loop exit
PB: predicated region body
PF: predicated region fallthrough
CT: control target
= control target key end

     0   :  { %s1604_s15 = smov 0   ;;  %s1606_s16 = smov 0   ;;  %s1782_s0 = inlined_call_operand.vmem [shape: bf16[2,8,290], index: 0, kind: input, shape index: {}]   ;;  %s1783_s1 = inlined_call_operand.vmem [shape: bf16[9,32,8], index: 1, kind: input, shape index: {}]   ;;  %s1784_s2 = inlined_call_operand.vmem [shape: f32[32,1], index: 2, kind: input, shape index: {}]   ;;  %s1785_s3 = inlined_call_operand.vmem [shape: f32[2,1,256], index: 3, kind: input, shape index: {}]   ;;  %s1786_s4 = inlined_call_operand.vmem [shape: bf16[2,32,256], index: 4, kind: output, shape index: {}]  }
   0x1   :  { %s1608_s17 = smov 0  }
   0x2 LB: > { %s26_s18 = sadd.s32 1, %s1564_s16  ;;  %p1343_p0 = scmp.ge.s32.totalorder %s1568_s17, 1  ;;  %s1568_s17 = sphi %s1608_s17, %s14_s17   ;;  %s1564_s16 = sphi %s1606_s16, %s1788_s16   ;;  %s1560_s15 = sphi %s1604_s15, %s1787_s15  }
   0x3   : > { %p28_p1 = scmp.ge.s32.totalorder %s26_s18, 2  ;;  %p198_p2 = scmp.lt.s32.totalorder %s1568_s17, 3 }
   0x5   : > { %s1790_s18 = smov (%p28_p1, %s26_s18), 0  ;;  %p199_p3 = pnand %p1343_p0, %p198_p2 }
   0x6   : > { %p239_p4 = scmp.lt.s32.totalorder (!%p199_p3), %s1560_s15, 1  ;;  %v1570_v0 = vmov (!%p199_p3), 0   ;;  %vm323_vm0 = vcmask (!%p199_p3), 1043456   ;;  %v1528_v5 = vld [vmem:[%s1783_s1] sm:$0xff] (!%p199_p3)   ;;  %s1571_s25 = smov (!%p199_p3), 112   ;;  %vm316_vm1 = vcmask (!%p199_p3), 64512  }
   0x7   : > { %202 = sbr.rel (%p199_p3) target bundleno = 439 (0x1b7), region = 36  ;;  %437 = vmatprep.mubr.bf16.mxu0 (!%p199_p3), %v1570_v0  ;;  %362 = vmatprep.mubr.bf16.mxu1 (!%p199_p3), %v1570_v0  ;;  %s1572_s26 = smov (!%p199_p3), 110   ;;  %v1152_v7 = vld [vmem:[%s1784_s2] sm:$0xff] (!%p199_p3)  ;;  %v1153_v8 = vld [vmem:[%s1784_s2 + $0x8] sm:$0xff] (!%p199_p3)  ;;  %v1154_v9 = vld [vmem:[%s1784_s2 + $0x10] sm:$0xff] (!%p199_p3)  ;;  %vm313_vm2 = vcmask (!%p199_p3), 916480  }
   0x8   : > { %1523 = vset.pattern.permute.xlu0 (!%p199_p3), %v1570_v0  ;;  %1524 = vset.pattern.permute.xlu1 (!%p199_p3), %v1570_v0  ;;  %s1573_s27 = smov (!%p199_p3), 111   ;;  %s1574_s28 = smov (!%p199_p3), 126   ;;  %v1155_v10 = vld [vmem:[%s1784_s2 + $0x18] sm:$0xff] (!%p199_p3)  ;;  %vm652_vm3 = vcmask (!%p199_p3), 900096   ;;  %v1529_v18 = vld [vmem:[%s1783_s1 + $0x30] sm:$0xff] (!%p199_p3)   ;;  %vm479_vm4 = vcmask (!%p199_p3), 908288  }
   0x9   : > { %s1575_s29 = smov (!%p199_p3), 127   ;;  %s1576_s30 = smov (!%p199_p3), 96   ;;  %v1530_v24 = vld [vmem:[%s1783_s1 + $0x50] sm:$0xff] (!%p199_p3)   ;;  %v1531_v27 = vld [vmem:[%s1783_s1 + $0x38] sm:$0xff] (!%p199_p3)   ;;  %vm736_vm5 = vcmask (!%p199_p3), 1031168   ;;  %vm563_vm6 = vcmask (!%p199_p3), 1039360  }
   0xa   : > { %s1577_s5 = smov (!%p199_p3), 95   ;;  %s1578_s6 = smov (!%p199_p3), 94   ;;  %v1532_v31 = vld [vmem:[%s1783_s1 + $0x58] sm:$0xff] (!%p199_p3)   ;;  %v1533_v39 = vld [vmem:[%s1783_s1 + $0x8] sm:$0xff] (!%p199_p3)   ;;  %v1534_v40 = vld [vmem:[%s1783_s1 + $0x20] sm:$0xff] (!%p199_p3)   ;;  %vm825_vm7 = vcmask (!%p199_p3), 785408  }
   0xb   : > { %v1535_v52 = vld [vmem:[%s1783_s1 + $0x40] sm:$0xff] (!%p199_p3)   ;;  %v1536_v53 = vld [vmem:[%s1783_s1 + $0x28] sm:$0xff] (!%p199_p3)   ;;  %vm922_vm8 = vcmask (!%p199_p3), 777216   ;;  %vm1019_vm9 = vcmask (!%p199_p3), 769024  }
   0xc   : > { %v1537_v60 = vld [vmem:[%s1783_s1 + $0x48] sm:$0xff] (!%p199_p3)   ;;  %v1538_v61 = vld [vmem:[%s1783_s1 + $0x60] sm:$0xff] (!%p199_p3)  }
   0xe   : > { %s1792_s15 = smov (!%p239_p4, %s1560_s15), 1 }
   0xf   : > { %s1489_s19 = smul.u32 12, %s1792_s15  ;;  %s1434_s9 = sshll.u32 %s1792_s15, 5 }
  0x10   : > { %s1767_s12 = scalar_lea.vmem %s1786_s4, %s1434_s9 }
  0x11   : > { %s243_s22 = scalar_lea.vmem %s1782_s0, %s1489_s19 }
  0x12   : > { %v1525_v1 = vld [vmem:[%s243_s22 + $0x8] ss:$0 sps:$4 sm:$0xff]   ;;  %v268_v2 = vld [vmem:[%s243_s22] sm:$0xff] }
  0x13   : > { %v1361_v3 = vcombine.low %v268_v2, %v268_v2  ;;  %v1362_v4 = vcombine.high %v268_v2, %v268_v2  ;;  %311 = vrot.lane.b32.xlu1 %v1525_v1, %s1571_s25 }
  0x15   : > { %307 = vrot.lane.b32.xlu0 %v1361_v3, %s1571_s25  ;;  %1369 = vmatprep.subr.msk.bf16.mxu0 %vm323_vm0, %v1362_v4  ;;  %v400_v6 = vsel %vm323_vm0, %v1361_v3, 0 }
  0x16   : > { %406 = vmatpush1.bf16.msra.mxu0 %v400_v6 }
  0x17   : > { %646 = vrot.lane.b32.xlu1 %v1361_v3, %s1572_s26 }
  0x19   : > { %309 = vrot.lane.b32.xlu0 %v1362_v4, %s1571_s25  ;;  %1370 = vmatmul.mubr.msk.bf16.vlgmr.msra.gmra.mrb[0].mxu0 %vm316_vm1, %v1528_v5  ;;  %v1539_v5 = vld [vmem:[%s1783_s1 + $0x10] sm:$0xff]  }
  0x1a   : > { %699 = vmatprep.mubr.bf16.mxu0 %v1570_v0 }
  0x1b   : > { %650 = vrot.lane.b32.xlu1 %v1525_v1, %s1572_s26 }
  0x1d   : > { %648 = vrot.lane.b32.xlu0 %v1362_v4, %s1572_s26 }
  0x1f   : > { %475 = vrot.lane.b32.xlu1 %v1362_v4, %s1573_s27 }
  0x21   : > { %473 = vrot.lane.b32.xlu0 %v1361_v3, %s1573_s27 }
  0x23   : > { %730 = vrot.lane.b32.xlu1 %v1361_v3, %s1574_s28 }
  0x25   : > { %477 = vrot.lane.b32.xlu0 %v1525_v1, %s1573_s27 }
  0x27   : > { %734 = vrot.lane.b32.xlu1 %v1525_v1, %s1574_s28 }
  0x29   : > { %732 = vrot.lane.b32.xlu0 %v1362_v4, %s1574_s28 }
  0x2b   : > { %559 = vrot.lane.b32.xlu1 %v1362_v4, %s1575_s29 }
  0x2d   : > { %557 = vrot.lane.b32.xlu0 %v1361_v3, %s1575_s29 }
  0x2f   : > { %819 = vrot.lane.b32.xlu1 %v1361_v3, %s1576_s30 }
  0x31   : > { %561 = vrot.lane.b32.xlu0 %v1525_v1, %s1575_s29 }
  0x33   : > { %823 = vrot.lane.b32.xlu1 %v1525_v1, %s1576_s30 }
  0x35   : > { %821 = vrot.lane.b32.xlu0 %v1362_v4, %s1576_s30 }
  0x37   : > { %918 = vrot.lane.b32.xlu1 %v1362_v4, %s1577_s5 }
  0x39   : > { %916 = vrot.lane.b32.xlu0 %v1361_v3, %s1577_s5 }
  0x3b   : > { %1013 = vrot.lane.b32.xlu1 %v1361_v3, %s1578_s6 }
  0x3d   : > { %920 = vrot.lane.b32.xlu0 %v1525_v1, %s1577_s5 }
  0x3f   : > { %1017 = vrot.lane.b32.xlu1 %v1525_v1, %s1578_s6 }
  0x41   : > { %1015 = vrot.lane.b32.xlu0 %v1362_v4, %s1578_s6 }
  0x43   : > { %1163 = vperm.xlu1 %1524, %v1153_v8   ;;  %v1541_v8 = vld [vmem:[%s1783_s1 + $0x18] sm:$0xff]  }
  0x45   : > { %1158 = vperm.xlu0 %1523, %v1152_v7  }
  0x47   : > { %1168 = vperm.xlu1 %1524, %v1154_v9   ;;  %v1542_v9 = vld [vmem:[%s1783_s1 + $0x80] sm:$0xff]  }
  0x49   : > { %1173 = vperm.xlu0 %1523, %v1155_v10   ;;  %v1543_v10 = vld [vmem:[%s1783_s1 + $0x70] sm:$0xff]  }
  0x85   : > { %v312_v11 = vpop.permute.xlu1 %311 }
  0x87   : > { %v308_v12 = vpop.permute.xlu0 %307 }
  0x89   : > { %v647_v13 = vpop.permute.xlu1 %646 }
  0x8b   : > { %v310_v14 = vpop.permute.xlu0 %309 }
  0x8c   : > { %v315_v15 = vsel %vm313_vm2, %v310_v14, %v312_v11  ;;  %v314_v16 = vsel %vm313_vm2, %v308_v12, %v310_v14  ;;  %v1544_v11 = vld [vmem:[%s1783_s1 + $0x88] sm:$0xff]   ;;  %v1545_v12 = vld [vmem:[%s1783_s1 + $0x78] sm:$0xff]  }
  0x8d   : > { %1364 = vmatprep.subr.msk.bf16.mxu1 %vm323_vm0, %v315_v15  ;;  %v325_v17 = vsel %vm323_vm0, %v314_v16, 0  ;;  %v651_v19 = vpop.permute.xlu1 %650 }
  0x8e   : > { %331 = vmatpush1.bf16.msra.mxu1 %v325_v17 }
  0x8f   : > { %v649_v20 = vpop.permute.xlu0 %648  ;;  %1439 = vmatprep.subr.msk.bf16.mxu1 %vm323_vm0, %v1362_v4 }
  0x90   : > { %v653_v21 = vsel %vm652_vm3, %v647_v13, %v649_v20  ;;  %v654_v22 = vsel %vm652_vm3, %v649_v20, %v651_v19 }
  0x91   : > { %v662_v23 = vsel %vm323_vm0, %v653_v21, 0  ;;  %1365 = vmatmul.mubr.msk.bf16.vlgmr.msra.gmra.mrb[0].mxu1 %vm316_vm1, %v1529_v18  ;;  %1392 = vmatprep.subr.msk.bf16.mxu0 %vm323_vm0, %v654_v22  ;;  %v476_v25 = vpop.permute.xlu1 %475 }
  0x92   : > { %1440 = vmatpush1.bf16.msra.mxu1 %v400_v6  ;;  %668 = vmatpush1.bf16.msra.mxu0 %v662_v23  ;;  %v1540_v6 = vld [vmem:[%s1783_s1 + $0x68] sm:$0xff]  }
  0x93   : > { %v474_v26 = vpop.permute.xlu0 %473  ;;  %372 = vmatprep.mubr.bf16.mxu1 %v1570_v0 }
  0x94   : > { %v480_v41 = vsel %vm479_vm4, %v474_v26, %v476_v25 }
  0x95   : > { %1393 = vmatmul.mubr.msk.bf16.vlgmr.msra.gmra.mrb[4].mxu0 %vm316_vm1, %v1530_v24  ;;  %v731_v28 = vpop.permute.xlu1 %730  ;;  %v489_v45 = vsel %vm323_vm0, %v480_v41, 0  ;;  %v1095_v41 = vld [vmem:[%s1785_s3] sm:$0x3] }
  0x96   : > { %709 = vmatprep.mubr.bf16.mxu0 %v1570_v0 }
  0x97   : > { %v478_v29 = vpop.permute.xlu0 %477 }
  0x98   : > { %v481_v30 = vsel %vm479_vm4, %v476_v25, %v478_v29 }
  0x99   : > { %1366 = vmatmul.mubr.msk.bf16.gmra.mrb[4].mxu1 %vm316_vm1, %v1531_v27  ;;  %1378 = vmatprep.subr.msk.bf16.mxu1 %vm323_vm0, %v481_v30  ;;  %v735_v32 = vpop.permute.xlu1 %734 }
  0x9a   : > { %447 = vmatprep.mubr.bf16.mxu1 %v1570_v0 }
  0x9b   : > { %v733_v33 = vpop.permute.xlu0 %732 }
  0x9c   : > { %v737_v34 = vsel %vm736_vm5, %v731_v28, %v733_v33  ;;  %v738_v35 = vsel %vm736_vm5, %v733_v33, %v735_v32  ;;  %v1097_v28 = vlaneseq }
  0x9d   : > { %v746_v36 = vsel %vm323_vm0, %v737_v34, 0  ;;  %1394 = vmatmul.mubr.msk.bf16.gmra.mrb[8].mxu0 %vm316_vm1, %v1532_v31  ;;  %1397 = vmatprep.subr.msk.bf16.mxu0 %vm323_vm0, %v738_v35  ;;  %v560_v37 = vpop.permute.xlu1 %559 }
  0x9e   : > { %752 = vmatpush1.bf16.msra.mxu0 %v746_v36  ;;  %783 = vmatprep.mubr.bf16.mxu0 %v1570_v0  ;;  %v1098_v36 = vshrl.u32 %v1097_v28, 7 }
  0x9f   : > { %v558_v38 = vpop.permute.xlu0 %557 }
  0xa0   : > { %v564_v48 = vsel %vm563_vm6, %v558_v38, %v560_v37  ;;  %v1099_v38 = vsub.s32 0, %v1098_v36 }
  0xa1   : > { %v820_v42 = vpop.permute.xlu1 %819  ;;  %v573_v55 = vsel %vm323_vm0, %v564_v48, 0 }
  0xa3   : > { %v562_v43 = vpop.permute.xlu0 %561 }
  0xa4   : > { %v565_v44 = vsel %vm563_vm6, %v560_v37, %v562_v43  ;;  %v1427_v43 = vld [vmem:[%s1785_s3 + $0x2] sm:$0x3] }
  0xa5   : > { %1371 = vmatmul.mubr.msk.bf16.vlgmr.msra.gmra.mrb[4].mxu1 %vm316_vm1, %v1533_v39  ;;  %1398 = vmatmul.mubr.msk.bf16.vlgmr.msra.gmra.mrb[4].mxu0 %vm316_vm1, %v1534_v40  ;;  %v824_v46 = vpop.permute.xlu1 %823  ;;  %v1103_v40 = vsub.s32 1, %v1098_v36  ;;  %v1129_v48 = vrot.slane %v1427_v43, %v1099_v38 }
  0xa6   : > { %495 = vmatpush1.bf16.msra.mxu1 %v489_v45  ;;  %526 = vmatprep.mubr.bf16.mxu1 %v1570_v0 }
  0xa7   : > { %1383 = vmatprep.subr.msk.bf16.mxu1 %vm323_vm0, %v565_v44  ;;  %v822_v47 = vpop.permute.xlu0 %821  ;;  %793 = vmatprep.mubr.bf16.mxu0 %v1570_v0 }
  0xa8   : > { %v826_v49 = vsel %vm825_vm7, %v820_v42, %v822_v47  ;;  %v827_v50 = vsel %vm825_vm7, %v822_v47, %v824_v46  ;;  %v1100_v46 = vrot.slane %v1095_v41, %v1099_v38  ;;  %v1104_v47 = vrot.slane %v1095_v41, %v1103_v40 }
  0xa9   : > { %v835_v51 = vsel %vm323_vm0, %v826_v49, 0  ;;  %1406 = vmatprep.subr.msk.bf16.mxu0 %vm323_vm0, %v827_v50  ;;  %v919_v54 = vpop.permute.xlu1 %918  ;;  %v1133_v49 = vrot.slane %v1427_v43, %v1103_v40 }
  0xaa   : > { %841 = vmatpush1.bf16.msra.mxu0 %v835_v51 }
  0xab   : > { %v917_v56 = vpop.permute.xlu0 %916 }
  0xac   : > { %v923_v4 = vsel %vm922_vm8, %v917_v56, %v919_v54 }
  0xad   : > { %1379 = vmatmul.mubr.msk.bf16.vlgmr.msra.gmra.mrb[8].mxu1 %vm316_vm1, %v1535_v52  ;;  %1399 = vmatmul.mubr.msk.bf16.gmra.mrb[8].mxu0 %vm316_vm1, %v1536_v53  ;;  %v1014_v57 = vpop.permute.xlu1 %1013  ;;  %v932_v7 = vsel %vm323_vm0, %v923_v4, 0 }
  0xae   : > { %579 = vmatpush1.bf16.msra.mxu1 %v573_v55  ;;  %536 = vmatprep.mubr.bf16.mxu1 %v1570_v0 }
  0xaf   : > { %v921_v58 = vpop.permute.xlu0 %920  ;;  %872 = vmatprep.mubr.bf16.mxu0 %v1570_v0 }
  0xb0   : > { %v924_v59 = vsel %vm922_vm8, %v919_v54, %v921_v58 }
  0xb1   : > { %1415 = vmatprep.subr.msk.bf16.mxu1 %vm323_vm0, %v924_v59  ;;  %v1018_v62 = vpop.permute.xlu1 %1017 }
  0xb3   : > { %v1016_v63 = vpop.permute.xlu0 %1015 }
  0xb4   : > { %v1020_v1 = vsel %vm1019_vm9, %v1014_v57, %v1016_v63  ;;  %v1021_v2 = vsel %vm1019_vm9, %v1016_v63, %v1018_v62 }
  0xb5   : > { %1380 = vmatmul.mubr.msk.bf16.gmra.mrb[12].mxu1 %vm316_vm1, %v1537_v60  ;;  %1407 = vmatmul.mubr.msk.bf16.vlgmr.msra.gmra.mrb[0].mxu0 %vm316_vm1, %v1538_v61  ;;  %v1029_v3 = vsel %vm323_vm0, %v1020_v1, 0 }
  0xb6   : > { %1424 = vmatprep.subr.msk.bf16.mxu0 %vm323_vm0, %v1021_v2  ;;  %610 = vmatprep.mubr.bf16.mxu1 %v1570_v0 }
  0xb7   : > { %1035 = vmatpush1.bf16.msra.mxu0 %v1029_v3  ;;  %882 = vmatprep.mubr.bf16.mxu0 %v1570_v0 }
  0xbd   : > { %1384 = vmatmul.mubr.msk.bf16.vlgmr.msra.gmra.mrb[8].mxu1 %vm316_vm1, %v1539_v5  ;;  %1408 = vmatmul.mubr.msk.bf16.gmra.mrb[12].mxu0 %vm316_vm1, %v1540_v6 }
  0xbe   : > { %938 = vmatpush1.bf16.msra.mxu1 %v932_v7  ;;  %620 = vmatprep.mubr.bf16.mxu1 %v1570_v0 }
  0xbf   : > { %1066 = vmatprep.mubr.bf16.mxu0 %v1570_v0 }
  0xc4   : > { %v1159_v51 = vpop.permute.xlu0 %1158 }
  0xc5   : > { %1385 = vmatmul.mubr.msk.bf16.gmra.mrb[12].mxu1 %vm316_vm1, %v1541_v8  ;;  %1425 = vmatmul.mubr.msk.bf16.vlgmr.msra.gmra.mrb[4].mxu0 %vm316_vm1, %v1542_v9 }
  0xc6   : > { %969 = vmatprep.mubr.bf16.mxu1 %v1570_v0  ;;  %1076 = vmatprep.mubr.bf16.mxu0 %v1570_v0 }
  0xcd   : > { %1416 = vmatmul.mubr.msk.bf16.vlgmr.msra.gmra.mrb[8].mxu1 %vm316_vm1, %v1543_v10  ;;  %1426 = vmatmul.mubr.msk.bf16.gmra.mrb[8].mxu0 %vm316_vm1, %v1544_v11  ;;  %v1164_v10 = vpop.permute.xlu1 %1163 }
  0xce   : > { %979 = vmatprep.mubr.bf16.mxu1 %v1570_v0 }
  0xd5   : > { %1417 = vmatmul.mubr.msk.bf16.gmra.mrb[12].mxu1 %vm316_vm1, %v1545_v12 }
 0x164   : > { %v364_v13 = vpop.f32.mrb[0].mxu1 }
 0x165   : > { %v366_v14 = vpop.f32.mrb[1].mxu1 }
 0x166   : > { %v368_v15 = vpop.f32.mrb[2].mxu1 }
 0x167   : > { %v370_v16 = vpop.f32.mrb[3].mxu1 }
 0x178   : > { %v449_v17 = vpop.f32.mrb[4].mxu1 }
 0x179   : > { %v451_v18 = vpop.f32.mrb[5].mxu1 }
 0x17a   : > { %v453_v19 = vpop.f32.mrb[6].mxu1 }
 0x17b   : > { %v455_v20 = vpop.f32.mrb[7].mxu1 }
 0x188   : > { %v874_v21 = vpop.f32.mrb[0].mxu0 }
 0x189   : > { %v1441_v22 = vadd.f32 %v874_v21, %v364_v13  ;;  %v876_v23 = vpop.f32.mrb[1].mxu0 }
 0x18a   : > { %v1442_v24 = vadd.f32 %v876_v23, %v366_v14  ;;  %v878_v25 = vpop.f32.mrb[2].mxu0 }
 0x18b   : > { %v1443_v0 = vadd.f32 %v878_v25, %v368_v15  ;;  %v880_v26 = vpop.f32.mrb[3].mxu0  ;;  %v1107_v50 = vmul.f32 %v1441_v22, %v1100_v46 }
 0x18c   : > { %v1444_v27 = vadd.f32 %v880_v26, %v370_v16  ;;  %v1108_v54 = vmul.f32 %v1442_v24, %v1104_v47 }
 0x18d   : > { %v1109_v59 = vmul.f32 %v1443_v0, %v1100_v46 }
 0x18e   : > { %v1110_v1 = vmul.f32 %v1444_v27, %v1104_v47 }
 0x190   : > { %v884_v29 = vpop.f32.mrb[12].mxu0 }
 0x191   : > { %v1445_v30 = vadd.f32 %v884_v29, %v449_v17  ;;  %v886_v31 = vpop.f32.mrb[13].mxu0 }
 0x192   : > { %v1446_v32 = vadd.f32 %v886_v31, %v451_v18  ;;  %v888_v33 = vpop.f32.mrb[14].mxu0 }
 0x193   : > { %v1447_v34 = vadd.f32 %v888_v33, %v453_v19  ;;  %v890_v35 = vpop.f32.mrb[15].mxu0  ;;  %v1111_v17 = vmul.f32 %v1445_v30, %v1100_v46  ;;  %v1169_v33 = vpop.permute.xlu1 %1168 }
 0x194   : > { %v1448_v37 = vadd.f32 %v890_v35, %v455_v20  ;;  %v1112_v21 = vmul.f32 %v1446_v32, %v1104_v47 }
 0x195   : > { %v1113_v22 = vmul.f32 %v1447_v34, %v1100_v46 }
 0x196   : > { %v1114_v26 = vmul.f32 %v1448_v37, %v1104_v47 }
 0x198   : > { %v1068_v39 = vpop.f32.mrb[4].mxu0 }
 0x199   : > { %v1070_v42 = vpop.f32.mrb[5].mxu0  ;;  %v1136_v55 = vmul.f32 %v1129_v48, %v1068_v39 }
 0x19a   : > { %v1072_v44 = vpop.f32.mrb[6].mxu0  ;;  %v1137_v60 = vmul.f32 %v1133_v49, %v1070_v42 }
 0x19b   : > { %v1074_v45 = vpop.f32.mrb[7].mxu0  ;;  %v1138_v2 = vmul.f32 %v1129_v48, %v1072_v44  ;;  %v1174_v44 = vpop.permute.xlu0 %1173 }
 0x19c   : > { %v1139_v7 = vmul.f32 %v1133_v49, %v1074_v45 }
 0x1a0   : > { %v971_v52 = vpop.f32.mrb[8].mxu1  ;;  %v1078_v53 = vpop.f32.mrb[8].mxu0 }
 0x1a1   : > { %v1115_v56 = vadd.f32 %v1107_v50, %v971_v52  ;;  %v973_v57 = vpop.f32.mrb[9].mxu1  ;;  %v1080_v58 = vpop.f32.mrb[9].mxu0  ;;  %v1140_v23 = vmul.f32 %v1129_v48, %v1078_v53 }
 0x1a2   : > { %v1116_v61 = vadd.f32 %v1108_v54, %v973_v57  ;;  %v975_v62 = vpop.f32.mrb[10].mxu1  ;;  %v1082_v63 = vpop.f32.mrb[10].mxu0  ;;  %v1141_v27 = vmul.f32 %v1133_v49, %v1080_v58 }
 0x1a3   : > { %v1144_v3 = vadd.f32 %v1136_v55, %v1115_v56  ;;  %v1117_v4 = vadd.f32 %v1109_v59, %v975_v62  ;;  %v977_v5 = vpop.f32.mrb[11].mxu1  ;;  %v1084_v6 = vpop.f32.mrb[11].mxu0  ;;  %v1142_v32 = vmul.f32 %v1129_v48, %v1082_v63 }
 0x1a4   : > { %v1145_v8 = vadd.f32 %v1137_v60, %v1116_v61  ;;  %v1118_v9 = vadd.f32 %v1110_v1, %v977_v5  ;;  %v1143_v38 = vmul.f32 %v1133_v49, %v1084_v6 }
 0x1a5   : > { %v1146_v11 = vadd.f32 %v1138_v2, %v1117_v4  ;;  %v1176_v12 = vadd.f32 %v1159_v51, %v1144_v3 }
 0x1a6   : > { %v1147_v13 = vadd.f32 %v1139_v7, %v1118_v9  ;;  %v1177_v14 = vadd.f32 %v1159_v51, %v1145_v8 }
 0x1a7   : > { %v1184_v15 = vmax.f32 %v1176_v12, 0.0  ;;  %v1178_v16 = vadd.f32 %v1164_v10, %v1146_v11 }
 0x1a8   : > { %v1185_v18 = vmax.f32 %v1177_v14, 0.0  ;;  %v1179_v19 = vadd.f32 %v1164_v10, %v1147_v13  ;;  %v981_v20 = vpop.f32.mrb[12].mxu1 }
 0x1a9   : > { %v1186_v24 = vmax.f32 %v1178_v16, 0.0  ;;  %v1119_v25 = vadd.f32 %v1111_v17, %v981_v20  ;;  %v983_v0 = vpop.f32.mrb[13].mxu1 }
 0x1aa   : > { %v1435_v28 = vpack.c.bf16 %v1185_v18, %v1184_v15  ;;  %v1187_v29 = vmax.f32 %v1179_v19, 0.0  ;;  %v1120_v30 = vadd.f32 %v1112_v21, %v983_v0  ;;  %v985_v31 = vpop.f32.mrb[14].mxu1 }
 0x1ab   : > { %v1121_v34 = vadd.f32 %v1113_v22, %v985_v31  ;;  %v987_v35 = vpop.f32.mrb[15].mxu1  ;;  %v1148_v36 = vadd.f32 %v1140_v23, %v1119_v25 }
 0x1ac   : > { %1216 = vst [vmem:[%s1767_s12] sm:$0xff] %v1435_v28  ;;  %v1436_v39 = vpack.c.bf16 %v1187_v29, %v1186_v24  ;;  %v1122_v40 = vadd.f32 %v1114_v26, %v987_v35  ;;  %v1149_v41 = vadd.f32 %v1141_v27, %v1120_v30 }
 0x1ad   : > { %v1180_v42 = vadd.f32 %v1169_v33, %v1148_v36  ;;  %v1150_v37 = vadd.f32 %v1142_v32, %v1121_v34 }
 0x1ae   : > { %1217 = vst [vmem:[%s1767_s12 + $0x8] sm:$0xff] %v1436_v39  ;;  %v1181_v43 = vadd.f32 %v1169_v33, %v1149_v41  ;;  %v1151_v45 = vadd.f32 %v1143_v38, %v1122_v40 }
 0x1af   : > { %v1188_v46 = vmax.f32 %v1180_v42, 0.0  ;;  %v1182_v47 = vadd.f32 %v1174_v44, %v1150_v37 }
 0x1b0   : > { %v1189_v50 = vmax.f32 %v1181_v43, 0.0  ;;  %v1183_v48 = vadd.f32 %v1174_v44, %v1151_v45 }
 0x1b1   : > { %v1190_v51 = vmax.f32 %v1182_v47, 0.0 }
 0x1b2   : > { %v1437_v52 = vpack.c.bf16 %v1189_v50, %v1188_v46  ;;  %v1191_v53 = vmax.f32 %v1183_v48, 0.0 }
 0x1b4   : > { %1218 = vst [vmem:[%s1767_s12 + $0x10] sm:$0xff] %v1437_v52  ;;  %v1438_v49 = vpack.c.bf16 %v1191_v53, %v1190_v51 }
 0x1b6   : > { %1219 = vst [vmem:[%s1767_s12 + $0x18] sm:$0xff] %v1438_v49 }
 0x1b7 PF: > { %s14_s17 = sadd.s32 1, %s1568_s17   ;;  %s1787_s15 = smov %s1564_s16 }
 0x1b8   : > { %p11_p5 = scmp.ge.s32.totalorder %s14_s17, 4   ;;  %s1788_s16 = smov %s1790_s18 }
 0x1ba   :  { %13 = sbr.rel (!%p11_p5) target bundleno = 2 (0x2), region = 81 }

// kernel: self_attention_pallas.13
= control target key start
LH: loop header
LB: loop body
LE: loop exit
PB: predicated region body
PF: predicated region fallthrough
CT: control target
= control target key end

     0   :  { %s686_s15 = smov 0   ;;  %s688_s16 = smov 0   ;;  %s728_s0 = inlined_call_operand.vmem [shape: bf16[8,32], index: 0, kind: input, shape index: {}]   ;;  %s729_s1 = inlined_call_operand.vmem [shape: bf16[2,32,256], index: 1, kind: input, shape index: {}]   ;;  %s730_s2 = inlined_call_operand.vmem [shape: f32[8,1], index: 2, kind: input, shape index: {}]   ;;  %s731_s3 = inlined_call_operand.vmem [shape: f32[2,8,256], index: 3, kind: input, shape index: {}]   ;;  %s732_s4 = inlined_call_operand.vmem [shape: f32[2,8,256], index: 4, kind: output, shape index: {}]  }
   0x1   :  { %s690_s17 = smov 0  }
   0x2 LB: > { %s33_s18 = sadd.s32 1, %s654_s16  ;;  %p587_p0 = scmp.ge.s32.totalorder %s658_s17, 1  ;;  %s658_s17 = sphi %s690_s17, %s14_s17   ;;  %s654_s16 = sphi %s688_s16, %s734_s16   ;;  %s650_s15 = sphi %s686_s15, %s733_s15  }
   0x3   : > { %p35_p1 = scmp.ge.s32.totalorder %s33_s18, 2  ;;  %p233_p2 = scmp.lt.s32.totalorder %s658_s17, 3 }
   0x5   : > { %s736_s18 = smov (%p35_p1, %s33_s18), 0  ;;  %p234_p3 = pnand %p587_p0, %p233_p2 }
   0x6   : > { %p297_p4 = scmp.lt.s32.totalorder (!%p234_p3), %s650_s15, 1  ;;  %v344_v0 = vld [vmem:[%s730_s2] sm:$0xff] (!%p234_p3)  ;;  %v660_v1 = vmov (!%p234_p3), 0   ;;  %vm370_vm0 = vcmask (!%p234_p3), 261120  }
   0x7   : > { %237 = sbr.rel (%p234_p3) target bundleno = 244 (0xf4), region = 36  ;;  %406 = vmatprep.mubr.bf16.mxu0 (!%p234_p3), %v660_v1  ;;  %629 = vset.pattern.permute.xlu0 (!%p234_p3), %v660_v1  ;;  %v339_v6 = vld [vmem:[%s728_s0] sm:$0xf] (!%p234_p3) }
   0x8   : > { %347 = vperm.xlu0 (!%p234_p3), %629, %v344_v0  }
   0xe   : > { %s738_s15 = smov (!%p297_p4, %s650_s15), 1 }
   0xf   : > { %s601_s21 = sshll.u32 %s738_s15, 5  ;;  %s602_s27 = sshll.u32 %s738_s15, 4 }
  0x10   : > { %s304_s24 = scalar_lea.vmem %s729_s1, %s601_s21  ;;  %s322_s30 = scalar_lea.vmem %s731_s3, %s602_s27 }
  0x11   : > { %v630_v2 = vld [vmem:[%s304_s24 + $0x4] ss:$8 sps:$4 sm:$0xff]   ;;  %v632_v3 = vld [vmem:[%s304_s24] ss:$8 sps:$4 sm:$0xff]   ;;  %v633_v4 = vld [vmem:[%s304_s24 + $0x14] ss:$8 sps:$4 sm:$0xff]   ;;  %s336_s7 = scalar_lea.vmem %s732_s4, %s602_s27 }
  0x12   : > { %374 = vmatprep.subr.bf16.mxu0 %v630_v2  ;;  %v635_v5 = vld [vmem:[%s304_s24 + $0x10] ss:$8 sps:$4 sm:$0xff]   ;;  %v415_v9 = vld [vmem:[%s322_s30] sm:$0xff]  ;;  %v416_v12 = vld [vmem:[%s322_s30 + $0x8] sm:$0xff] }
  0x13   : > { %375 = vmatpush1.bf16.msra.mxu0 %v632_v3 }
  0x14   : > { %376 = vmatprep.subr.bf16.mxu0 %v633_v4 }
  0x17   : > { %377 = vmatpush1.bf16.msra.mxu0 %v635_v5 }
  0x1a   : > { %598 = vmatmul.mubr.msk.bf16.vlgmr.msra.gmra.mrb[0].mxu0 %vm370_vm0, %v339_v6 }
  0x87   : > { %v348_v7 = vpop.permute.xlu0 %347 }
  0xed   : > { %v408_v8 = vpop.f32.mrb[0].mxu0 }
  0xee   : > { %v409_v10 = vadd.f32 %v408_v8, %v348_v7  ;;  %v410_v11 = vpop.f32.mrb[1].mxu0 }
  0xef   : > { %v411_v13 = vadd.f32 %v410_v11, %v348_v7  ;;  %v412_v14 = vpop.f32.mrb[2].mxu0 }
  0xf0   : > { %v417_v15 = vadd.f32 %v415_v9, %v409_v10  ;;  %v413_v16 = vpop.f32.mrb[3].mxu0 }
  0xf1   : > { %v418_v17 = vadd.f32 %v416_v12, %v411_v13 }
  0xf2   : > { %419 = vst [vmem:[%s336_s7] sm:$0xff] %v417_v15 }
  0xf3   : > { %420 = vst [vmem:[%s336_s7 + $0x8] sm:$0xff] %v418_v17 }
  0xf4 PF: > { %s14_s17 = sadd.s32 1, %s658_s17   ;;  %s733_s15 = smov %s654_s16 }
  0xf5   : > { %p11_p5 = scmp.ge.s32.totalorder %s14_s17, 4   ;;  %s734_s16 = smov %s736_s18 }
  0xf7   :  { %13 = sbr.rel (!%p11_p5) target bundleno = 2 (0x2), region = 75 }

// kernel: self_attention_pallas.12
= control target key start
LH: loop header
LB: loop body
LE: loop exit
PB: predicated region body
PF: predicated region fallthrough
CT: control target
= control target key end

     0   :  { %s1674_s15 = smov 0   ;;  %s1676_s16 = smov 0   ;;  %s1903_s0 = inlined_call_operand.vmem [shape: bf16[2,32,290], index: 0, kind: input, shape index: {}]   ;;  %s1904_s1 = inlined_call_operand.vmem [shape: bf16[9,32,32], index: 1, kind: input, shape index: {}]   ;;  %s1905_s2 = inlined_call_operand.vmem [shape: f32[32,1], index: 2, kind: input, shape index: {}]   ;;  %s1906_s3 = inlined_call_operand.vmem [shape: f32[2,1,256], index: 3, kind: input, shape index: {}]   ;;  %s1907_s4 = inlined_call_operand.vmem [shape: bf16[2,32,256], index: 4, kind: output, shape index: {}]  }
   0x1   :  { %s1678_s17 = smov 0  }
   0x2 LB: > { %s26_s18 = sadd.s32 1, %s1634_s16  ;;  %p1412_p0 = scmp.ge.s32.totalorder %s1638_s17, 1  ;;  %s1638_s17 = sphi %s1678_s17, %s14_s17   ;;  %s1634_s16 = sphi %s1676_s16, %s1909_s16   ;;  %s1630_s15 = sphi %s1674_s15, %s1908_s15  }
   0x3   : > { %p28_p1 = scmp.ge.s32.totalorder %s26_s18, 2  ;;  %p198_p2 = scmp.lt.s32.totalorder %s1638_s17, 3 }
   0x5   : > { %s1911_s18 = smov (%p28_p1, %s26_s18), 0  ;;  %p199_p3 = pnand %p1412_p0, %p198_p2 }
   0x6   : > { %p239_p4 = scmp.lt.s32.totalorder (!%p199_p3), %s1630_s15, 1  ;;  %s1640_s23 = smov (!%p199_p3), 112   ;;  %v1641_v6 = vmov (!%p199_p3), 0   ;;  %v1599_v7 = vld [vmem:[%s1904_s1] sm:$0xff] (!%p199_p3)   ;;  %vm352_vm0 = vcmask (!%p199_p3), 261120   ;;  %v1222_v9 = vld [vmem:[%s1905_s2 + $0x8] sm:$0xff] (!%p199_p3) }
   0x7   : > { %202 = sbr.rel (%p199_p3) target bundleno = 465 (0x1d1), region = 36  ;;  %391 = vmatprep.mubr.bf16.mxu1 (!%p199_p3), %v1641_v6  ;;  %464 = vmatprep.mubr.bf16.mxu0 (!%p199_p3), %v1641_v6  ;;  %s1642_s26 = smov (!%p199_p3), 110   ;;  %v1221_v8 = vld [vmem:[%s1905_s2] sm:$0xff] (!%p199_p3)  ;;  %v1224_v10 = vld [vmem:[%s1905_s2 + $0x18] sm:$0xff] (!%p199_p3)  ;;  %v1223_v11 = vld [vmem:[%s1905_s2 + $0x10] sm:$0xff] (!%p199_p3)  ;;  %vm343_vm1 = vcmask (!%p199_p3), 916480  }
   0x8   : > { %1588 = vset.pattern.permute.xlu0 (!%p199_p3), %v1641_v6  ;;  %1589 = vset.pattern.permute.xlu1 (!%p199_p3), %v1641_v6  ;;  %s1643_s27 = smov (!%p199_p3), 111   ;;  %s1644_s28 = smov (!%p199_p3), 126   ;;  %v1598_v22 = vld [vmem:[%s1904_s1 + $0x30] sm:$0xff] (!%p199_p3)   ;;  %vm697_vm2 = vcmask (!%p199_p3), 900096   ;;  %v1600_v29 = vld [vmem:[%s1904_s1 + $0x38] sm:$0xff] (!%p199_p3)   ;;  %vm512_vm3 = vcmask (!%p199_p3), 908288  }
   0x9   : > { %s1645_s29 = smov (!%p199_p3), 127   ;;  %s1646_s30 = smov (!%p199_p3), 96   ;;  %v1602_v34 = vld [vmem:[%s1904_s1 + $0x50] sm:$0xff] (!%p199_p3)   ;;  %vm787_vm4 = vcmask (!%p199_p3), 1031168   ;;  %v1601_v41 = vld [vmem:[%s1904_s1 + $0x8] sm:$0xff] (!%p199_p3)   ;;  %v1603_v42 = vld [vmem:[%s1904_s1 + $0x58] sm:$0xff] (!%p199_p3)  }
   0xa   : > { %s1647_s5 = smov (!%p199_p3), 95   ;;  %s1648_s6 = smov (!%p199_p3), 94   ;;  %v1605_v56 = vld [vmem:[%s1904_s1 + $0x40] sm:$0xff] (!%p199_p3)   ;;  %vm602_vm5 = vcmask (!%p199_p3), 1039360   ;;  %vm882_vm6 = vcmask (!%p199_p3), 785408   ;;  %vm985_vm7 = vcmask (!%p199_p3), 777216  }
   0xb   : > { %v1604_v58 = vld [vmem:[%s1904_s1 + $0x20] sm:$0xff] (!%p199_p3)   ;;  %vm1088_vm8 = vcmask (!%p199_p3), 769024  }
   0xe   : > { %s1913_s15 = smov (!%p239_p4, %s1630_s15), 1 }
   0xf   : > { %s1554_s19 = smul.u32 48, %s1913_s15  ;;  %s1497_s9 = sshll.u32 %s1913_s15, 5 }
  0x10   : > { %s1888_s12 = scalar_lea.vmem %s1907_s4, %s1497_s9 }
  0x11   : > { %s243_s22 = scalar_lea.vmem %s1903_s0, %s1554_s19 }
  0x12   : > { %v1698_v0 = vld [vmem:[%s243_s22 + $0x4] ss:$12 sps:$4 sm:$0xff]   ;;  %v1700_v1 = vld [vmem:[%s243_s22] ss:$12 sps:$4 sm:$0xff]   ;;  %v1593_v2 = vld [vmem:[%s243_s22 + $0x8] ss:$12 sps:$4 sm:$0xff]  }
  0x13   : > { %333 = vrot.lane.b32.xlu0 %v1698_v0, %s1640_s23  ;;  %432 = vmatprep.subr.bf16.mxu0 %v1698_v0  ;;  %v1705_v3 = vld [vmem:[%s243_s22 + $0x1c] ss:$12 sps:$4 sm:$0xff]   ;;  %v1596_v4 = vld [vmem:[%s243_s22 + $0x20] ss:$12 sps:$4 sm:$0xff]   ;;  %v1708_v5 = vld [vmem:[%s243_s22 + $0x18] ss:$12 sps:$4 sm:$0xff]  }
  0x14   : > { %331 = vrot.lane.b32.xlu1 %v1700_v1, %s1640_s23  ;;  %433 = vmatpush1.bf16.msra.mxu0 %v1700_v1 }
  0x15   : > { %434 = vmatprep.subr.bf16.mxu0 %v1705_v3 }
  0x17   : > { %335 = vrot.lane.b32.xlu0 %v1593_v2, %s1640_s23 }
  0x18   : > { %339 = vrot.lane.b32.xlu1 %v1705_v3, %s1640_s23  ;;  %435 = vmatpush1.bf16.msra.mxu0 %v1708_v5 }
  0x1b   : > { %341 = vrot.lane.b32.xlu0 %v1596_v4, %s1640_s23  ;;  %1440 = vmatmul.mubr.msk.bf16.vlgmr.msra.gmra.mrb[0].mxu0 %vm352_vm0, %v1599_v7 }
  0x1c   : > { %337 = vrot.lane.b32.xlu1 %v1708_v5, %s1640_s23  ;;  %744 = vmatprep.mubr.bf16.mxu0 %v1641_v6 }
  0x1f   : > { %687 = vrot.lane.b32.xlu0 %v1698_v0, %s1642_s26 }
  0x20   : > { %689 = vrot.lane.b32.xlu1 %v1593_v2, %s1642_s26 }
  0x23   : > { %685 = vrot.lane.b32.xlu0 %v1700_v1, %s1642_s26 }
  0x24   : > { %693 = vrot.lane.b32.xlu1 %v1705_v3, %s1642_s26 }
  0x27   : > { %695 = vrot.lane.b32.xlu0 %v1596_v4, %s1642_s26 }
  0x28   : > { %691 = vrot.lane.b32.xlu1 %v1708_v5, %s1642_s26 }
  0x2b   : > { %502 = vrot.lane.b32.xlu0 %v1698_v0, %s1643_s27 }
  0x2c   : > { %504 = vrot.lane.b32.xlu1 %v1593_v2, %s1643_s27 }
  0x2f   : > { %777 = vrot.lane.b32.xlu0 %v1698_v0, %s1644_s28 }
  0x30   : > { %779 = vrot.lane.b32.xlu1 %v1593_v2, %s1644_s28 }
  0x33   : > { %500 = vrot.lane.b32.xlu0 %v1700_v1, %s1643_s27 }
  0x34   : > { %775 = vrot.lane.b32.xlu1 %v1700_v1, %s1644_s28 }
  0x37   : > { %508 = vrot.lane.b32.xlu0 %v1705_v3, %s1643_s27 }
  0x38   : > { %510 = vrot.lane.b32.xlu1 %v1596_v4, %s1643_s27 }
  0x3b   : > { %783 = vrot.lane.b32.xlu0 %v1705_v3, %s1644_s28 }
  0x3c   : > { %785 = vrot.lane.b32.xlu1 %v1596_v4, %s1644_s28 }
  0x3f   : > { %506 = vrot.lane.b32.xlu0 %v1708_v5, %s1643_s27 }
  0x40   : > { %781 = vrot.lane.b32.xlu1 %v1708_v5, %s1644_s28 }
  0x43   : > { %592 = vrot.lane.b32.xlu0 %v1698_v0, %s1645_s29 }
  0x44   : > { %594 = vrot.lane.b32.xlu1 %v1593_v2, %s1645_s29 }
  0x47   : > { %872 = vrot.lane.b32.xlu0 %v1698_v0, %s1646_s30 }
  0x48   : > { %874 = vrot.lane.b32.xlu1 %v1593_v2, %s1646_s30 }
  0x4b   : > { %590 = vrot.lane.b32.xlu0 %v1700_v1, %s1645_s29 }
  0x4c   : > { %870 = vrot.lane.b32.xlu1 %v1700_v1, %s1646_s30 }
  0x4f   : > { %598 = vrot.lane.b32.xlu0 %v1705_v3, %s1645_s29 }
  0x50   : > { %600 = vrot.lane.b32.xlu1 %v1596_v4, %s1645_s29 }
  0x53   : > { %878 = vrot.lane.b32.xlu0 %v1705_v3, %s1646_s30 }
  0x54   : > { %880 = vrot.lane.b32.xlu1 %v1596_v4, %s1646_s30 }
  0x57   : > { %596 = vrot.lane.b32.xlu0 %v1708_v5, %s1645_s29 }
  0x58   : > { %876 = vrot.lane.b32.xlu1 %v1708_v5, %s1646_s30 }
  0x5b   : > { %975 = vrot.lane.b32.xlu0 %v1698_v0, %s1647_s5 }
  0x5c   : > { %977 = vrot.lane.b32.xlu1 %v1593_v2, %s1647_s5 }
  0x5f   : > { %1078 = vrot.lane.b32.xlu0 %v1698_v0, %s1648_s6 }
  0x60   : > { %1080 = vrot.lane.b32.xlu1 %v1593_v2, %s1648_s6  ;;  %v1606_v2 = vld [vmem:[%s1904_s1 + $0x28] sm:$0xff]  }
  0x63   : > { %973 = vrot.lane.b32.xlu0 %v1700_v1, %s1647_s5 }
  0x64   : > { %1076 = vrot.lane.b32.xlu1 %v1700_v1, %s1648_s6 }
  0x67   : > { %981 = vrot.lane.b32.xlu0 %v1705_v3, %s1647_s5 }
  0x68   : > { %983 = vrot.lane.b32.xlu1 %v1596_v4, %s1647_s5 }
  0x6b   : > { %1084 = vrot.lane.b32.xlu0 %v1705_v3, %s1648_s6 }
  0x6c   : > { %1086 = vrot.lane.b32.xlu1 %v1596_v4, %s1648_s6 }
  0x6f   : > { %979 = vrot.lane.b32.xlu0 %v1708_v5, %s1647_s5 }
  0x70   : > { %1082 = vrot.lane.b32.xlu1 %v1708_v5, %s1648_s6 }
  0x73   : > { %1227 = vperm.xlu0 %1588, %v1221_v8  }
  0x74   : > { %1232 = vperm.xlu1 %1589, %v1222_v9  }
  0x77   : > { %1242 = vperm.xlu0 %1588, %v1224_v10  }
  0x78   : > { %1237 = vperm.xlu1 %1589, %v1223_v11  }
  0x85   : > { %v334_v12 = vpop.permute.xlu0 %333 }
  0x86   : > { %v332_v13 = vpop.permute.xlu1 %331 }
  0x87   : > { %v344_v17 = vsel %vm343_vm1, %v332_v13, %v334_v12 }
  0x89   : > { %v336_v14 = vpop.permute.xlu0 %335 }
  0x8a   : > { %v340_v15 = vpop.permute.xlu1 %339  ;;  %v345_v16 = vsel %vm343_vm1, %v334_v12, %v336_v14 }
  0x8b   : > { %359 = vmatprep.subr.bf16.mxu1 %v345_v16 }
  0x8c   : > { %360 = vmatpush1.bf16.msra.mxu1 %v344_v17  ;;  %v1609_v17 = vld [vmem:[%s1904_s1 + $0x10] sm:$0xff]  }
  0x8d   : > { %v342_v18 = vpop.permute.xlu0 %341 }
  0x8e   : > { %v338_v19 = vpop.permute.xlu1 %337  ;;  %v347_v20 = vsel %vm343_vm1, %v340_v15, %v342_v18 }
  0x8f   : > { %361 = vmatprep.subr.bf16.mxu1 %v347_v20  ;;  %v346_v21 = vsel %vm343_vm1, %v338_v19, %v340_v15  ;;  %v1608_v19 = vld [vmem:[%s1904_s1 + $0x60] sm:$0xff]  }
  0x90   : > { %362 = vmatpush1.bf16.msra.mxu1 %v346_v21 }
  0x91   : > { %v688_v23 = vpop.permute.xlu0 %687  ;;  %1502 = vmatprep.subr.bf16.mxu1 %v1698_v0  ;;  %v1607_v0 = vld [vmem:[%s1904_s1 + $0x48] sm:$0xff]  }
  0x92   : > { %v690_v24 = vpop.permute.xlu1 %689 }
  0x93   : > { %1436 = vmatmul.mubr.msk.bf16.vlgmr.msra.gmra.mrb[0].mxu1 %vm352_vm0, %v1598_v22  ;;  %v699_v25 = vsel %vm697_vm2, %v688_v23, %v690_v24 }
  0x94   : > { %712 = vmatprep.subr.bf16.mxu0 %v699_v25  ;;  %401 = vmatprep.mubr.bf16.mxu1 %v1641_v6  ;;  %v1611_v25 = vld [vmem:[%s1904_s1 + $0x18] sm:$0xff]  }
  0x95   : > { %v686_v26 = vpop.permute.xlu0 %685  ;;  %1504 = vmatpush1.bf16.msra.mxu1 %v1700_v1 }
  0x96   : > { %v698_v27 = vsel %vm697_vm2, %v686_v26, %v688_v23  ;;  %v694_v28 = vpop.permute.xlu1 %693  ;;  %1503 = vmatprep.subr.bf16.mxu1 %v1705_v3 }
  0x97   : > { %713 = vmatpush1.bf16.msra.mxu0 %v698_v27  ;;  %v1610_v27 = vld [vmem:[%s1904_s1 + $0x68] sm:$0xff]  }
  0x99   : > { %v696_v30 = vpop.permute.xlu0 %695  ;;  %1505 = vmatpush1.bf16.msra.mxu1 %v1708_v5 }
  0x9a   : > { %v692_v31 = vpop.permute.xlu1 %691  ;;  %v701_v32 = vsel %vm697_vm2, %v694_v28, %v696_v30 }
  0x9b   : > { %v700_v33 = vsel %vm697_vm2, %v692_v31, %v694_v28  ;;  %1437 = vmatmul.mubr.msk.bf16.gmra.mrb[4].mxu1 %vm352_vm0, %v1600_v29  ;;  %714 = vmatprep.subr.bf16.mxu0 %v701_v32 }
  0x9c   : > { %715 = vmatpush1.bf16.msra.mxu0 %v700_v33  ;;  %474 = vmatprep.mubr.bf16.mxu1 %v1641_v6 }
  0x9d   : > { %v503_v35 = vpop.permute.xlu0 %502 }
  0x9e   : > { %v505_v36 = vpop.permute.xlu1 %504 }
  0x9f   : > { %v514_v37 = vsel %vm512_vm3, %v503_v35, %v505_v36  ;;  %1460 = vmatmul.mubr.msk.bf16.vlgmr.msra.gmra.mrb[4].mxu0 %vm352_vm0, %v1602_v34 }
  0xa0   : > { %527 = vmatprep.subr.bf16.mxu1 %v514_v37  ;;  %754 = vmatprep.mubr.bf16.mxu0 %v1641_v6 }
  0xa1   : > { %v778_v38 = vpop.permute.xlu0 %777 }
  0xa2   : > { %v780_v39 = vpop.permute.xlu1 %779 }
  0xa3   : > { %v789_v40 = vsel %vm787_vm4, %v778_v38, %v780_v39 }
  0xa4   : > { %802 = vmatprep.subr.bf16.mxu0 %v789_v40 }
  0xa5   : > { %v501_v43 = vpop.permute.xlu0 %500 }
  0xa6   : > { %v513_v44 = vsel %vm512_vm3, %v501_v43, %v503_v35  ;;  %v776_v45 = vpop.permute.xlu1 %775  ;;  %v1613_v43 = vld [vmem:[%s1904_s1 + $0x80] sm:$0xff]  }
  0xa7   : > { %v788_v46 = vsel %vm787_vm4, %v776_v45, %v778_v38  ;;  %1441 = vmatmul.mubr.msk.bf16.vlgmr.msra.gmra.mrb[4].mxu1 %vm352_vm0, %v1601_v41  ;;  %1461 = vmatmul.mubr.msk.bf16.gmra.mrb[8].mxu0 %vm352_vm0, %v1603_v42  ;;  %v1612_v41 = vld [vmem:[%s1904_s1 + $0x70] sm:$0xff]   ;;  %v1615_v45 = vld [vmem:[%s1904_s1 + $0x88] sm:$0xff]  }
  0xa8   : > { %528 = vmatpush1.bf16.msra.mxu1 %v513_v44  ;;  %803 = vmatpush1.bf16.msra.mxu0 %v788_v46  ;;  %v1614_v44 = vld [vmem:[%s1904_s1 + $0x78] sm:$0xff]  }
  0xa9   : > { %v509_v47 = vpop.permute.xlu0 %508  ;;  %834 = vmatprep.mubr.bf16.mxu0 %v1641_v6  ;;  %559 = vmatprep.mubr.bf16.mxu1 %v1641_v6 }
  0xaa   : > { %v511_v48 = vpop.permute.xlu1 %510 }
  0xab   : > { %v516_v49 = vsel %vm512_vm3, %v509_v47, %v511_v48 }
  0xac   : > { %529 = vmatprep.subr.bf16.mxu1 %v516_v49 }
  0xad   : > { %v784_v50 = vpop.permute.xlu0 %783 }
  0xae   : > { %v786_v51 = vpop.permute.xlu1 %785 }
  0xaf   : > { %v791_v52 = vsel %vm787_vm4, %v784_v50, %v786_v51 }
  0xb0   : > { %804 = vmatprep.subr.bf16.mxu0 %v791_v52 }
  0xb1   : > { %v507_v53 = vpop.permute.xlu0 %506 }
  0xb2   : > { %v515_v54 = vsel %vm512_vm3, %v507_v53, %v509_v47  ;;  %v782_v55 = vpop.permute.xlu1 %781 }
  0xb3   : > { %v790_v57 = vsel %vm787_vm4, %v782_v55, %v784_v50  ;;  %530 = vmatpush1.bf16.msra.mxu1 %v515_v54 }
  0xb4   : > { %805 = vmatpush1.bf16.msra.mxu0 %v790_v57 }
  0xb5   : > { %v593_v59 = vpop.permute.xlu0 %592 }
  0xb6   : > { %v595_v60 = vpop.permute.xlu1 %594  ;;  %1448 = vmatmul.mubr.msk.bf16.vlgmr.msra.gmra.mrb[8].mxu1 %vm352_vm0, %v1605_v56 }
  0xb7   : > { %v604_v61 = vsel %vm602_vm5, %v593_v59, %v595_v60  ;;  %1464 = vmatmul.mubr.msk.bf16.vlgmr.msra.gmra.mrb[4].mxu0 %vm352_vm0, %v1604_v58  ;;  %569 = vmatprep.mubr.bf16.mxu1 %v1641_v6 }
  0xb8   : > { %617 = vmatprep.subr.bf16.mxu1 %v604_v61  ;;  %844 = vmatprep.mubr.bf16.mxu0 %v1641_v6  ;;  %v1166_v61 = vlaneseq }
  0xb9   : > { %v873_v62 = vpop.permute.xlu0 %872 }
  0xba   : > { %v875_v63 = vpop.permute.xlu1 %874 }
  0xbb   : > { %v884_v1 = vsel %vm882_vm6, %v873_v62, %v875_v63 }
  0xbc   : > { %897 = vmatprep.subr.bf16.mxu0 %v884_v1 }
  0xbd   : > { %v591_v3 = vpop.permute.xlu0 %590 }
  0xbe   : > { %v603_v4 = vsel %vm602_vm5, %v591_v3, %v593_v59  ;;  %v871_v5 = vpop.permute.xlu1 %870  ;;  %1449 = vmatmul.mubr.msk.bf16.gmra.mrb[12].mxu1 %vm352_vm0, %v1607_v0  ;;  %v1167_v3 = vshrl.u32 %v1166_v61, 7 }
  0xbf   : > { %v883_v7 = vsel %vm882_vm6, %v871_v5, %v873_v62  ;;  %618 = vmatpush1.bf16.msra.mxu1 %v603_v4  ;;  %1465 = vmatmul.mubr.msk.bf16.gmra.mrb[8].mxu0 %vm352_vm0, %v1606_v2 }
  0xc0   : > { %898 = vmatpush1.bf16.msra.mxu0 %v883_v7  ;;  %929 = vmatprep.mubr.bf16.mxu0 %v1641_v6 }
  0xc1   : > { %v599_v8 = vpop.permute.xlu0 %598  ;;  %649 = vmatprep.mubr.bf16.mxu1 %v1641_v6 }
  0xc2   : > { %v601_v9 = vpop.permute.xlu1 %600 }
  0xc3   : > { %v606_v10 = vsel %vm602_vm5, %v599_v8, %v601_v9  ;;  %v1164_v9 = vld [vmem:[%s1906_s3] sm:$0x3] }
  0xc4   : > { %619 = vmatprep.subr.bf16.mxu1 %v606_v10  ;;  %v1172_v10 = vsub.s32 1, %v1167_v3 }
  0xc5   : > { %v879_v11 = vpop.permute.xlu0 %878 }
  0xc6   : > { %v881_v12 = vpop.permute.xlu1 %880 }
  0xc7   : > { %v886_v13 = vsel %vm882_vm6, %v879_v11, %v881_v12  ;;  %v1490_v12 = vld [vmem:[%s1906_s3 + $0x2] sm:$0x3] }
  0xc8   : > { %899 = vmatprep.subr.bf16.mxu0 %v886_v13  ;;  %v1173_v13 = vrot.slane %v1164_v9, %v1172_v10 }
  0xc9   : > { %v597_v14 = vpop.permute.xlu0 %596 }
  0xca   : > { %v605_v15 = vsel %vm602_vm5, %v597_v14, %v599_v8  ;;  %v877_v16 = vpop.permute.xlu1 %876  ;;  %v1168_v8 = vsub.s32 0, %v1167_v3 }
  0xcb   : > { %v885_v18 = vsel %vm882_vm6, %v877_v16, %v879_v11  ;;  %620 = vmatpush1.bf16.msra.mxu1 %v605_v15  ;;  %v1202_v16 = vrot.slane %v1490_v12, %v1172_v10 }
  0xcc   : > { %900 = vmatpush1.bf16.msra.mxu0 %v885_v18  ;;  %v1169_v11 = vrot.slane %v1164_v9, %v1168_v8  ;;  %v1198_v14 = vrot.slane %v1490_v12, %v1168_v8 }
  0xcd   : > { %v976_v20 = vpop.permute.xlu0 %975 }
  0xce   : > { %v978_v21 = vpop.permute.xlu1 %977  ;;  %1452 = vmatmul.mubr.msk.bf16.vlgmr.msra.gmra.mrb[8].mxu1 %vm352_vm0, %v1609_v17 }
  0xcf   : > { %1472 = vmatmul.mubr.msk.bf16.vlgmr.msra.gmra.mrb[0].mxu0 %vm352_vm0, %v1608_v19  ;;  %v987_v22 = vsel %vm985_vm7, %v976_v20, %v978_v21  ;;  %659 = vmatprep.mubr.bf16.mxu1 %v1641_v6 }
  0xd0   : > { %1000 = vmatprep.subr.bf16.mxu1 %v987_v22  ;;  %939 = vmatprep.mubr.bf16.mxu0 %v1641_v6 }
  0xd1   : > { %v1079_v23 = vpop.permute.xlu0 %1078 }
  0xd2   : > { %v1081_v24 = vpop.permute.xlu1 %1080 }
  0xd3   : > { %v1090_v26 = vsel %vm1088_vm8, %v1079_v23, %v1081_v24 }
  0xd4   : > { %1103 = vmatprep.subr.bf16.mxu0 %v1090_v26 }
  0xd5   : > { %v974_v28 = vpop.permute.xlu0 %973 }
  0xd6   : > { %v986_v29 = vsel %vm985_vm7, %v974_v28, %v976_v20  ;;  %v1077_v30 = vpop.permute.xlu1 %1076  ;;  %1453 = vmatmul.mubr.msk.bf16.gmra.mrb[12].mxu1 %vm352_vm0, %v1611_v25 }
  0xd7   : > { %v1089_v31 = vsel %vm1088_vm8, %v1077_v30, %v1079_v23  ;;  %1473 = vmatmul.mubr.msk.bf16.gmra.mrb[12].mxu0 %vm352_vm0, %v1610_v27  ;;  %1001 = vmatpush1.bf16.msra.mxu1 %v986_v29 }
  0xd8   : > { %1104 = vmatpush1.bf16.msra.mxu0 %v1089_v31  ;;  %1032 = vmatprep.mubr.bf16.mxu1 %v1641_v6 }
  0xd9   : > { %v982_v32 = vpop.permute.xlu0 %981  ;;  %1135 = vmatprep.mubr.bf16.mxu0 %v1641_v6 }
  0xda   : > { %v984_v33 = vpop.permute.xlu1 %983 }
  0xdb   : > { %v989_v34 = vsel %vm985_vm7, %v982_v32, %v984_v33 }
  0xdc   : > { %1002 = vmatprep.subr.bf16.mxu1 %v989_v34 }
  0xdd   : > { %v1085_v35 = vpop.permute.xlu0 %1084 }
  0xde   : > { %v1087_v36 = vpop.permute.xlu1 %1086 }
  0xdf   : > { %v1092_v37 = vsel %vm1088_vm8, %v1085_v35, %v1087_v36 }
  0xe0   : > { %1105 = vmatprep.subr.bf16.mxu0 %v1092_v37 }
  0xe1   : > { %v980_v38 = vpop.permute.xlu0 %979 }
  0xe2   : > { %v988_v39 = vsel %vm985_vm7, %v980_v38, %v982_v32  ;;  %v1083_v40 = vpop.permute.xlu1 %1082 }
  0xe3   : > { %v1091_v42 = vsel %vm1088_vm8, %v1083_v40, %v1085_v35  ;;  %1003 = vmatpush1.bf16.msra.mxu1 %v988_v39 }
  0xe4   : > { %1106 = vmatpush1.bf16.msra.mxu0 %v1091_v42 }
  0xe6   : > { %1480 = vmatmul.mubr.msk.bf16.vlgmr.msra.gmra.mrb[8].mxu1 %vm352_vm0, %v1612_v41 }
  0xe7   : > { %1488 = vmatmul.mubr.msk.bf16.vlgmr.msra.gmra.mrb[4].mxu0 %vm352_vm0, %v1613_v43  ;;  %1042 = vmatprep.mubr.bf16.mxu1 %v1641_v6 }
  0xe8   : > { %1145 = vmatprep.mubr.bf16.mxu0 %v1641_v6 }
  0xee   : > { %1481 = vmatmul.mubr.msk.bf16.gmra.mrb[12].mxu1 %vm352_vm0, %v1614_v44 }
  0xef   : > { %1489 = vmatmul.mubr.msk.bf16.gmra.mrb[8].mxu0 %vm352_vm0, %v1615_v45 }
  0xf2   : > { %v1228_v17 = vpop.permute.xlu0 %1227 }
  0xf3   : > { %v1233_v20 = vpop.permute.xlu1 %1232 }
 0x166   : > { %v393_v46 = vpop.f32.mrb[0].mxu1 }
 0x167   : > { %v395_v47 = vpop.f32.mrb[1].mxu1 }
 0x168   : > { %v397_v48 = vpop.f32.mrb[2].mxu1 }
 0x169   : > { %v399_v49 = vpop.f32.mrb[3].mxu1 }
 0x17a   : > { %v476_v50 = vpop.f32.mrb[4].mxu1 }
 0x17b   : > { %v478_v51 = vpop.f32.mrb[5].mxu1 }
 0x17c   : > { %v480_v52 = vpop.f32.mrb[6].mxu1 }
 0x17d   : > { %v482_v6 = vpop.f32.mrb[7].mxu1 }
 0x1a2   : > { %v931_v53 = vpop.f32.mrb[0].mxu0 }
 0x1a3   : > { %v1506_v54 = vadd.f32 %v931_v53, %v393_v46  ;;  %v933_v55 = vpop.f32.mrb[1].mxu0 }
 0x1a4   : > { %v1507_v56 = vadd.f32 %v933_v55, %v395_v47  ;;  %v935_v57 = vpop.f32.mrb[2].mxu0 }
 0x1a5   : > { %v1508_v58 = vadd.f32 %v935_v57, %v397_v48  ;;  %v937_v59 = vpop.f32.mrb[3].mxu0  ;;  %v1176_v15 = vmul.f32 %v1506_v54, %v1169_v11 }
 0x1a6   : > { %v1509_v60 = vadd.f32 %v937_v59, %v399_v49  ;;  %v1177_v19 = vmul.f32 %v1507_v56, %v1173_v13  ;;  %v1238_v49 = vpop.permute.xlu1 %1237 }
 0x1a7   : > { %v1178_v24 = vmul.f32 %v1508_v58, %v1169_v11 }
 0x1a8   : > { %v1179_v29 = vmul.f32 %v1509_v60, %v1173_v13 }
 0x1aa   : > { %v941_v62 = vpop.f32.mrb[12].mxu0 }
 0x1ab   : > { %v1510_v63 = vadd.f32 %v941_v62, %v476_v50  ;;  %v943_v0 = vpop.f32.mrb[13].mxu0 }
 0x1ac   : > { %v1511_v1 = vadd.f32 %v943_v0, %v478_v51  ;;  %v945_v2 = vpop.f32.mrb[14].mxu0 }
 0x1ad   : > { %v1512_v4 = vadd.f32 %v945_v2, %v480_v52  ;;  %v947_v5 = vpop.f32.mrb[15].mxu0  ;;  %v1180_v44 = vmul.f32 %v1510_v63, %v1169_v11 }
 0x1ae   : > { %v1513_v7 = vadd.f32 %v947_v5, %v482_v6  ;;  %v1181_v48 = vmul.f32 %v1511_v1, %v1173_v13 }
 0x1af   : > { %v1182_v54 = vmul.f32 %v1512_v4, %v1169_v11 }
 0x1b0   : > { %v1183_v60 = vmul.f32 %v1513_v7, %v1173_v13  ;;  %v1243_v13 = vpop.permute.xlu0 %1242 }
 0x1b9   : > { %v1034_v18 = vpop.f32.mrb[8].mxu1 }
 0x1ba   : > { %v1184_v21 = vadd.f32 %v1176_v15, %v1034_v18  ;;  %v1137_v22 = vpop.f32.mrb[4].mxu0  ;;  %v1036_v23 = vpop.f32.mrb[9].mxu1 }
 0x1bb   : > { %v1205_v25 = vmul.f32 %v1198_v14, %v1137_v22  ;;  %v1185_v26 = vadd.f32 %v1177_v19, %v1036_v23  ;;  %v1139_v27 = vpop.f32.mrb[5].mxu0  ;;  %v1038_v28 = vpop.f32.mrb[10].mxu1 }
 0x1bc   : > { %v1206_v30 = vmul.f32 %v1202_v16, %v1139_v27  ;;  %v1186_v31 = vadd.f32 %v1178_v24, %v1038_v28  ;;  %v1141_v32 = vpop.f32.mrb[6].mxu0  ;;  %v1040_v33 = vpop.f32.mrb[11].mxu1 }
 0x1bd   : > { %v1213_v34 = vadd.f32 %v1205_v25, %v1184_v21  ;;  %v1207_v35 = vmul.f32 %v1198_v14, %v1141_v32  ;;  %v1187_v36 = vadd.f32 %v1179_v29, %v1040_v33  ;;  %v1143_v37 = vpop.f32.mrb[7].mxu0 }
 0x1be   : > { %v1214_v38 = vadd.f32 %v1206_v30, %v1185_v26  ;;  %v1208_v39 = vmul.f32 %v1202_v16, %v1143_v37 }
 0x1bf   : > { %v1215_v40 = vadd.f32 %v1207_v35, %v1186_v31  ;;  %v1245_v41 = vadd.f32 %v1228_v17, %v1213_v34 }
 0x1c0   : > { %v1216_v42 = vadd.f32 %v1208_v39, %v1187_v36  ;;  %v1246_v43 = vadd.f32 %v1228_v17, %v1214_v38 }
 0x1c1   : > { %v1253_v45 = vmax.f32 %v1245_v41, 0.0  ;;  %v1247_v46 = vadd.f32 %v1233_v20, %v1215_v40  ;;  %v1044_v47 = vpop.f32.mrb[12].mxu1 }
 0x1c2   : > { %v1254_v50 = vmax.f32 %v1246_v43, 0.0  ;;  %v1248_v51 = vadd.f32 %v1233_v20, %v1216_v42  ;;  %v1188_v52 = vadd.f32 %v1180_v44, %v1044_v47  ;;  %v1147_v6 = vpop.f32.mrb[8].mxu0  ;;  %v1046_v53 = vpop.f32.mrb[13].mxu1 }
 0x1c3   : > { %v1255_v55 = vmax.f32 %v1247_v46, 0.0  ;;  %v1209_v56 = vmul.f32 %v1198_v14, %v1147_v6  ;;  %v1189_v57 = vadd.f32 %v1181_v48, %v1046_v53  ;;  %v1149_v58 = vpop.f32.mrb[9].mxu0  ;;  %v1048_v59 = vpop.f32.mrb[14].mxu1 }
 0x1c4   : > { %v1498_v61 = vpack.c.bf16 %v1254_v50, %v1253_v45  ;;  %v1256_v62 = vmax.f32 %v1248_v51, 0.0  ;;  %v1210_v63 = vmul.f32 %v1202_v16, %v1149_v58  ;;  %v1190_v0 = vadd.f32 %v1182_v54, %v1048_v59  ;;  %v1151_v1 = vpop.f32.mrb[10].mxu0  ;;  %v1050_v2 = vpop.f32.mrb[15].mxu1 }
 0x1c5   : > { %v1211_v3 = vmul.f32 %v1198_v14, %v1151_v1  ;;  %v1191_v4 = vadd.f32 %v1183_v60, %v1050_v2  ;;  %v1153_v5 = vpop.f32.mrb[11].mxu0  ;;  %v1217_v8 = vadd.f32 %v1209_v56, %v1188_v52 }
 0x1c6   : > { %1285 = vst [vmem:[%s1888_s12] sm:$0xff] %v1498_v61  ;;  %v1499_v9 = vpack.c.bf16 %v1256_v62, %v1255_v55  ;;  %v1212_v10 = vmul.f32 %v1202_v16, %v1153_v5  ;;  %v1218_v11 = vadd.f32 %v1210_v63, %v1189_v57 }
 0x1c7   : > { %v1249_v12 = vadd.f32 %v1238_v49, %v1217_v8  ;;  %v1219_v15 = vadd.f32 %v1211_v3, %v1190_v0 }
 0x1c8   : > { %1286 = vst [vmem:[%s1888_s12 + $0x8] sm:$0xff] %v1499_v9  ;;  %v1250_v7 = vadd.f32 %v1238_v49, %v1218_v11  ;;  %v1220_v17 = vadd.f32 %v1212_v10, %v1191_v4 }
 0x1c9   : > { %v1257_v18 = vmax.f32 %v1249_v12, 0.0  ;;  %v1251_v19 = vadd.f32 %v1243_v13, %v1219_v15 }
 0x1ca   : > { %v1258_v20 = vmax.f32 %v1250_v7, 0.0  ;;  %v1252_v21 = vadd.f32 %v1243_v13, %v1220_v17 }
 0x1cb   : > { %v1259_v14 = vmax.f32 %v1251_v19, 0.0 }
 0x1cc   : > { %v1500_v22 = vpack.c.bf16 %v1258_v20, %v1257_v18  ;;  %v1260_v23 = vmax.f32 %v1252_v21, 0.0 }
 0x1ce   : > { %1287 = vst [vmem:[%s1888_s12 + $0x10] sm:$0xff] %v1500_v22  ;;  %v1501_v24 = vpack.c.bf16 %v1260_v23, %v1259_v14 }
 0x1d0   : > { %1288 = vst [vmem:[%s1888_s12 + $0x18] sm:$0xff] %v1501_v24 }
 0x1d1 PF: > { %s14_s17 = sadd.s32 1, %s1638_s17   ;;  %s1908_s15 = smov %s1634_s16 }
 0x1d2   : > { %p11_p5 = scmp.ge.s32.totalorder %s14_s17, 4   ;;  %s1909_s16 = smov %s1911_s18 }
 0x1d4   :  { %13 = sbr.rel (!%p11_p5) target bundleno = 2 (0x2), region = 81 }

</bundles_post_ra>
